<compile_context>
chip_gen: v7x
topology: tpu7x:2x2x1
jax: 0.10.0
libtpu: 0.0.40
codegen_flags: <defaults>
</compile_context>

<pallas_src>
import functools

import jax
import jax.numpy as jnp
from jax.experimental import pallas as pl
from jax.experimental.pallas import tpu as pltpu

_LEAKY_SLOPE = 0.01
_BN_EPS = 1e-5
_LANE = 128
_VMEM_STEP_BUDGET = 6 << 20    # target per-grid-step working set (bytes)
_VMEM_LIMIT = 32 << 20         # scoped VMEM request (<< v7x's 64 MiB physical)


def _round_up(x, m):
    return (x + m - 1) // m * m


# ----------------------------------------------------------------------------
# Phase 1: 3x3 conv (lazy in-VMEM im2col -> one big-K MXU matmul) + BN stats.
# ----------------------------------------------------------------------------
def _conv_stats_kernel(m_total, x_ref, w_ref, g_ref, b_ref, y_ref, st_ref,
                       s1_ref, s2_ref):
    # x_ref : (TH+2, W+2, Cin) bf16 haloed input row band
    # w_ref : (9*Cin, TC)      bf16 weight tile
    # g_ref, b_ref : (1, TC)   f32 BN gamma / beta
    # y_ref : (TH, W, TC)      bf16 raw conv output tile
    # st_ref: (2, TC)          f32 [scale; shift], written on the last M step
    # s1/s2 : (1, TC)          f32 running per-channel sum / sum-of-squares
    th, w_out, _ = y_ref.shape
    cin = x_ref.shape[-1]

    first_m = jnp.logical_and(pl.program_id(1) == 0, pl.program_id(2) == 0)
    last_m = jnp.logical_and(pl.program_id(1) == pl.num_programs(1) - 1,
                             pl.program_id(2) == pl.num_programs(2) - 1)

    @pl.when(first_m)
    def _():
        s1_ref[...] = jnp.zeros_like(s1_ref)
        s2_ref[...] = jnp.zeros_like(s2_ref)

    # Lazy im2col in VMEM (no HBM blow-up): 9 shifted views of the haloed tile.
    x = x_ref[...]
    taps = [x[dy:dy + th, dx:dx + w_out, :]
            for dy in range(3) for dx in range(3)]
    patches = jnp.concatenate(taps, axis=-1).reshape(th * w_out, 9 * cin)

    # One MXU matmul with the full contraction dimension, f32 accumulation.
    acc = jnp.dot(patches, w_ref[...], preferred_element_type=jnp.float32)

    # Per-channel running statistics (single pass: sum + sum of squares).
    s1_ref[...] += jnp.sum(acc, axis=0, keepdims=True)
    s2_ref[...] += jnp.sum(acc * acc, axis=0, keepdims=True)

    y_ref[...] = acc.reshape(y_ref.shape).astype(y_ref.dtype)

    @pl.when(last_m)
    def _():
        inv_m = 1.0 / m_total
        mean = s1_ref[...] * inv_m
        # NOTE: E[x^2]-mean^2 in f32; acceptable at the 5e-2 check tolerance.
        var = jnp.maximum(s2_ref[...] * inv_m - mean * mean, 0.0)
        scale = g_ref[...] * jax.lax.rsqrt(var + _BN_EPS)   # EUP rsqrt
        shift = b_ref[...] - mean * scale
        st_ref[...] = jnp.concatenate([scale, shift], axis=0)


# ----------------------------------------------------------------------------
# Phase 2: apply BN (scale/shift) + LeakyReLU; optionally fused 2x2 max pool.
# ----------------------------------------------------------------------------
def _bn_lrelu_kernel(y_ref, st_ref, o_ref):
    scale = st_ref[0:1, :]
    shift = st_ref[1:2, :]
    z = y_ref[...].astype(jnp.float32) * scale + shift
    o_ref[...] = jnp.where(z > 0, z, _LEAKY_SLOPE * z).astype(o_ref.dtype)


def _bn_lrelu_pool_kernel(y_ref, st_ref, skip_ref, pool_ref):
    th, w, tc = y_ref.shape
    scale = st_ref[0:1, :]
    shift = st_ref[1:2, :]
    z = y_ref[...].astype(jnp.float32) * scale + shift
    z = jnp.where(z > 0, z, _LEAKY_SLOPE * z)
    skip_ref[...] = z.astype(skip_ref.dtype)

    # Fused 2x2/stride-2 max pool on data already resident in VMEM.
    # TODO(synk): strided-view variant once verified copy-free in the MLIR dump.
    t = z.reshape(th // 2, 2, w, tc)
    t = jnp.maximum(t[:, 0], t[:, 1])                    # (TH/2, W, TC)
    t = t.reshape((th // 2) * (w // 2), 2, tc)
    t = jnp.maximum(t[:, 0], t[:, 1])                    # (TH/2*W/2, TC)
    pool_ref[...] = t.reshape(th // 2, w // 2, tc).astype(pool_ref.dtype)


# ----------------------------------------------------------------------------
# Wrapper: tiling choice + layout/dtype glue + the two pallas_calls per conv.
# ----------------------------------------------------------------------------
def _pick_tile_h(h, w, cin, need_even):
    """Largest row-band TH dividing H whose per-step working set fits budget."""
    best = None
    for th in range(1, h + 1):
        if h % th:
            continue
        if need_even and th % 2:
            continue
        step_bytes = ((th + 2) * (w + 2) * cin * 2          # haloed input (bf16)
                      + th * w * 9 * cin * 2                # patch slab (bf16)
                      + th * w * _LANE * (4 + 2 + 4))       # acc f32 + y bf16 + epilogue f32
        if step_bytes <= _VMEM_STEP_BUDGET:
            best = th
    if best is None:
        best = 2 if (need_even and h % 2 == 0) else 1
    return best


def conv3x3_bn_lrelu(x, w, gamma, beta, *, out_dtype=jnp.float32,
                     fuse_pool=False):
    """3x3 'SAME' conv + training-mode BatchNorm + LeakyReLU(0.01).

    Returns channel-padded outputs (Cpad = round_up(Cout, 128)); callers slice
    back to Cout (XLA fuses the slice into the consumer).  The conv bias is
    omitted on purpose: training-mode BN subtracts the batch mean, cancelling it.
    """
    n, h, wd, cin = x.shape
    cout = w.shape[0]
    assert w.shape[1] == cin and w.shape[2] == 3 and w.shape[3] == 3
    if fuse_pool:
        assert h % 2 == 0 and wd % 2 == 0, "fused 2x2 pool needs even H and W"

    cpad = _round_up(cout, _LANE)
    tc = _LANE
    n_ct = cpad // tc
    th = _pick_tile_h(h, wd, cin, need_even=fuse_pool)
    n_bands = h // th
    k = 9 * cin
    m_total = n * h * wd

    # Wrapper glue (plain XLA): halo pad + row-band split in bf16.  Duplication
    # is only the 2-row halo per band (vs. the old 9x im2col blow-up).
    xp = jnp.pad(x.astype(jnp.bfloat16), ((0, 0), (1, 1), (1, 1), (0, 0)))
    xb = jnp.stack([xp[:, i * th:i * th + th + 2] for i in range(n_bands)],
                   axis=1)                        # (N, n_bands, TH+2, W+2, Cin)

    # torch OIHW -> (9*Cin, Cpad), K ordered (dy, dx, ci); lane-dense Cout pad.
    wk = jnp.pad(jnp.transpose(w, (2, 3, 1, 0)),
                 ((0, 0), (0, 0), (0, 0), (0, cpad - cout)))
    wk = wk.reshape(k, cpad).astype(jnp.bfloat16)
    g2 = jnp.pad(gamma.astype(jnp.float32), (0, cpad - cout),
                 constant_values=1.0).reshape(1, cpad)
    b2 = jnp.pad(beta.astype(jnp.float32), (0, cpad - cout)).reshape(1, cpad)

    grid = (n_ct, n, n_bands)

    # Phase 1: conv matmul per (Cout-tile, image, row-band) + BN statistics.
    y_raw, stats = pl.pallas_call(
        functools.partial(_conv_stats_kernel, float(m_total)),
        grid=grid,
        in_specs=[
            pl.BlockSpec((None, None, th + 2, wd + 2, cin),
                         lambda j, nn, bb: (nn, bb, 0, 0, 0)),
            pl.BlockSpec((k, tc), lambda j, nn, bb: (0, j)),
            pl.BlockSpec((1, tc), lambda j, nn, bb: (0, j)),
            pl.BlockSpec((1, tc), lambda j, nn, bb: (0, j)),
        ],
        out_specs=(
            pl.BlockSpec((None, th, wd, tc), lambda j, nn, bb: (nn, bb, 0, j)),
            pl.BlockSpec((2, tc), lambda j, nn, bb: (0, j)),
        ),
        out_shape=(jax.ShapeDtypeStruct((n, h, wd, cpad), jnp.bfloat16),
                   jax.ShapeDtypeStruct((2, cpad), jnp.float32)),
        scratch_shapes=[pltpu.VMEM((1, tc), jnp.float32),
                        pltpu.VMEM((1, tc), jnp.float32)],
        compiler_params=pltpu.CompilerParams(
            dimension_semantics=("parallel", "arbitrary", "arbitrary"),
            vmem_limit_bytes=_VMEM_LIMIT),
    )(xb, wk, g2, b2)

    # Phase 2: apply scale/shift + LeakyReLU (+ fused pool for the second conv).
    in_specs2 = [
        pl.BlockSpec((None, th, wd, tc), lambda j, nn, bb: (nn, bb, 0, j)),
        pl.BlockSpec((2, tc), lambda j, nn, bb: (0, j)),
    ]
    cparams2 = pltpu.CompilerParams(
        dimension_semantics=("parallel", "parallel", "parallel"),
        vmem_limit_bytes=_VMEM_LIMIT)

    if fuse_pool:
        skip, pooled = pl.pallas_call(
            _bn_lrelu_pool_kernel,
            grid=grid,
            in_specs=in_specs2,
            out_specs=(
                pl.BlockSpec((None, th, wd, tc),
                             lambda j, nn, bb: (nn, bb, 0, j)),
                pl.BlockSpec((None, th // 2, wd // 2, tc),
                             lambda j, nn, bb: (nn, bb, 0, j)),
            ),
            out_shape=(jax.ShapeDtypeStruct((n, h, wd, cpad), out_dtype),
                       jax.ShapeDtypeStruct((n, h // 2, wd // 2, cpad),
                                            out_dtype)),
            compiler_params=cparams2,
        )(y_raw, stats)
        return skip, pooled

    return pl.pallas_call(
        _bn_lrelu_kernel,
        grid=grid,
        in_specs=in_specs2,
        out_specs=pl.BlockSpec((None, th, wd, tc),
                               lambda j, nn, bb: (nn, bb, 0, j)),
        out_shape=jax.ShapeDtypeStruct((n, h, wd, cpad), out_dtype),
        compiler_params=cparams2,
    )(y_raw, stats)


# ----------------------------------------------------------------------------
# Encoder forward (Pallas path).  Returns (pooled, skip) like the PyTorch module.
# ----------------------------------------------------------------------------
def encoder_forward_nhwc(params, x):
    cout = params['w1'].shape[0]
    # conv1 output is internal and only feeds conv2's bf16 matmul -> keep bf16.
    h_pad = conv3x3_bn_lrelu(x, params['w1'], params['g1'], params['be1'],
                             out_dtype=jnp.bfloat16, fuse_pool=False)
    h = h_pad[..., :cout]          # fuses into conv2's pad/band-split gather
    skip_pad, pooled_pad = conv3x3_bn_lrelu(h, params['w2'], params['g2'],
                                            params['be2'],
                                            out_dtype=jnp.float32,
                                            fuse_pool=True)
    return pooled_pad[..., :cout], skip_pad[..., :cout]


def encoder_forward_nchw(params, x_nchw):
    x = jnp.transpose(x_nchw, (0, 2, 3, 1))
    pooled, skip = encoder_forward_nhwc(params, x)
    return (jnp.transpose(pooled, (0, 3, 1, 2)),
            jnp.transpose(skip, (0, 3, 1, 2)))


# ----------------------------------------------------------------------------
# Pure-JAX f32 reference (numerical sanity check; includes the conv bias).
# ----------------------------------------------------------------------------
def _ref_encoder_nchw(p, x_nchw):
    x = jnp.transpose(x_nchw, (0, 2, 3, 1))
    for (w, b, g, be) in ((p['w1'], p['b1'], p['g1'], p['be1']),
                          (p['w2'], p['b2'], p['g2'], p['be2'])):
        y = jax.lax.conv_general_dilated(
            x, jnp.transpose(w, (2, 3, 1, 0)), (1, 1), 'SAME',
            dimension_numbers=('NHWC', 'HWIO', 'NHWC')) + b
        mean = jnp.mean(y, axis=(0, 1, 2), keepdims=True)
        var = jnp.mean((y - mean) ** 2, axis=(0, 1, 2), keepdims=True)
        y = (y - mean) * g * jax.lax.rsqrt(var + _BN_EPS) + be
        x = jnp.where(y > 0, y, _LEAKY_SLOPE * y)
    skip = x
    pooled = jax.lax.reduce_window(x, -jnp.inf, jax.lax.max,
                                   (1, 2, 2, 1), (1, 2, 2, 1), 'VALID')
    return (jnp.transpose(pooled, (0, 3, 1, 2)),
            jnp.transpose(skip, (0, 3, 1, 2)))


# ----------------------------------------------------------------------------
# Deterministic parameter init (PyTorch-like shapes & scaling).
# ----------------------------------------------------------------------------
def init_params(key, cin, cout):
    k1, k2 = jax.random.split(key)

    def conv2d(k, co, ci, ksz):
        kw, kb = jax.random.split(k)
        bound = float((ci * ksz * ksz) ** -0.5)
        w = jax.random.uniform(kw, (co, ci, ksz, ksz), jnp.float32, -bound, bound)
        b = jax.random.uniform(kb, (co,), jnp.float32, -bound, bound)
        return w, b

    w1, b1 = conv2d(k1, cout, cin, 3)
    w2, b2 = conv2d(k2, cout, cout, 3)
    ones = jnp.ones((cout,), jnp.float32)
    zeros = jnp.zeros((cout,), jnp.float32)
    # b1/b2 are only consumed by the reference; the Pallas path omits them
    # because training-mode BN subtracts the batch mean (exact cancellation).
    return dict(w1=w1, b1=b1, g1=ones, be1=zeros,
                w2=w2, b2=b2, g2=ones, be2=zeros)


if __name__ == "__main__":
    key = jax.random.PRNGKey(0)
    k_param, k_x = jax.random.split(key)

    N, Cin, H, W = 2, 4, 16, 16
    Cout = 64

    params = init_params(k_param, Cin, Cout)
    x_nchw = jax.random.normal(k_x, (N, Cin, H, W), jnp.float32)

    pooled, skip = jax.block_until_ready(
        jax.jit(encoder_forward_nchw)(params, x_nchw))

    assert pooled.shape == (N, Cout, H // 2, W // 2), pooled.shape
    assert skip.shape == (N, Cout, H, W), skip.shape
    assert bool(jnp.all(jnp.isfinite(pooled)))
    assert bool(jnp.all(jnp.isfinite(skip)))

    ref_pooled, ref_skip = jax.block_until_ready(
        jax.jit(_ref_encoder_nchw)(params, x_nchw))

    for out, ref in ((pooled, ref_pooled), (skip, ref_skip)):
        max_err = float(jnp.max(jnp.abs(out - ref)))
        scale = float(jnp.max(jnp.abs(ref))) + 1e-6
        assert max_err / scale < 5e-2, (max_err, scale)

    print("KERNEL_OK")
</pallas_src>

<mosaic_0001>
module attributes {stable_mosaic.version = 11 : i64} {
  func.func @_conv_stats_kernel(%arg0: i32, %arg1: i32, %arg2: i32, %arg3: memref<1x1x18x18x4xbf16, #tpu.memory_space<vmem>>, %arg4: memref<36x128xbf16, #tpu.memory_space<vmem>>, %arg5: memref<1x128xf32, #tpu.memory_space<vmem>>, %arg6: memref<1x128xf32, #tpu.memory_space<vmem>>, %arg7: memref<1x16x16x128xbf16, #tpu.memory_space<vmem>>, %arg8: memref<2x128xf32, #tpu.memory_space<vmem>>, %arg9: memref<1x128xf32, #tpu.memory_space<vmem>>, %arg10: memref<1x128xf32, #tpu.memory_space<vmem>>) attributes {dimension_semantics = [#tpu.dimension_semantics<parallel>, #tpu.dimension_semantics<arbitrary>, #tpu.dimension_semantics<arbitrary>], iteration_bounds = array<i64: 1, 2, 1>, scalar_prefetch = 0 : i64, scratch_operands = 2 : i64, tpu.core_type = #tpu.core_type<tc>, window_params = [{transform_indices = @transform_0, window_bounds = array<i64: 1, 1, 18, 18, 4>}, {transform_indices = @transform_1, window_bounds = array<i64: 36, 128>}, {transform_indices = @transform_2, window_bounds = array<i64: 1, 128>}, {transform_indices = @transform_3, window_bounds = array<i64: 1, 128>}, {transform_indices = @transform_4, window_bounds = array<i64: 1, 16, 16, 128>}, {transform_indices = @transform_5, window_bounds = array<i64: 2, 128>}]} {
    %c0_i32 = arith.constant 0 : i32
    %0 = arith.cmpi eq, %arg1, %c0_i32 : i32
    %c0_i32_0 = arith.constant 0 : i32
    %1 = arith.cmpi eq, %arg2, %c0_i32_0 : i32
    %2 = arith.andi %0, %1 : i1
    %c1_i32 = arith.constant 1 : i32
    %3 = arith.cmpi eq, %arg1, %c1_i32 : i32
    %c0_i32_1 = arith.constant 0 : i32
    %4 = arith.cmpi eq, %arg2, %c0_i32_1 : i32
    %5 = arith.andi %3, %4 : i1
    %6 = arith.extui %2 : i1 to i32
    %c0_i32_2 = arith.constant 0 : i32
    %7 = arith.cmpi ne, %6, %c0_i32_2 : i32
    scf.if %7 {
      %cst_24 = arith.constant 0.000000e+00 : f32
      %41 = vector.broadcast %cst_24 : f32 to vector<1x128xf32>
      %c0_25 = arith.constant 0 : index
      %c0_26 = arith.constant 0 : index
      %42 = vector.load %arg9[%c0_25, %c0_26] : memref<1x128xf32, #tpu.memory_space<vmem>>, vector<1x128xf32>
      tpu.vector_store %arg9[%c0_25, %c0_26], %41 {strides = array<i32>} : memref<1x128xf32, #tpu.memory_space<vmem>>, vector<1x128xf32>,
      %cst_27 = arith.constant 0.000000e+00 : f32
      %43 = vector.broadcast %cst_27 : f32 to vector<1x128xf32>
      %c0_28 = arith.constant 0 : index
      %c0_29 = arith.constant 0 : index
      %44 = vector.load %arg10[%c0_28, %c0_29] : memref<1x128xf32, #tpu.memory_space<vmem>>, vector<1x128xf32>
      tpu.vector_store %arg10[%c0_28, %c0_29], %43 {strides = array<i32>} : memref<1x128xf32, #tpu.memory_space<vmem>>, vector<1x128xf32>,
    } else {
    }
    %c0 = arith.constant 0 : index
    %c0_3 = arith.constant 0 : index
    %c0_4 = arith.constant 0 : index
    %c0_5 = arith.constant 0 : index
    %c0_6 = arith.constant 0 : index
    %8 = vector.load %arg3[%c0, %c0_3, %c0_4, %c0_5, %c0_6] : memref<1x1x18x18x4xbf16, #tpu.memory_space<vmem>>, vector<1x1x18x18x4xbf16>
    %9 = vector.shape_cast %8 : vector<1x1x18x18x4xbf16> to vector<18x18x4xbf16>
    %10 = vector.extract_strided_slice %9 {offsets = [0, 0, 0], sizes = [16, 16, 4], strides = [1, 1, 1]} : vector<18x18x4xbf16> to vector<16x16x4xbf16>
    %11 = vector.extract_strided_slice %9 {offsets = [0, 1, 0], sizes = [16, 16, 4], strides = [1, 1, 1]} : vector<18x18x4xbf16> to vector<16x16x4xbf16>
    %12 = vector.extract_strided_slice %9 {offsets = [0, 2, 0], sizes = [16, 16, 4], strides = [1, 1, 1]} : vector<18x18x4xbf16> to vector<16x16x4xbf16>
    %13 = vector.extract_strided_slice %9 {offsets = [1, 0, 0], sizes = [16, 16, 4], strides = [1, 1, 1]} : vector<18x18x4xbf16> to vector<16x16x4xbf16>
    %14 = vector.extract_strided_slice %9 {offsets = [1, 1, 0], sizes = [16, 16, 4], strides = [1, 1, 1]} : vector<18x18x4xbf16> to vector<16x16x4xbf16>
    %15 = vector.extract_strided_slice %9 {offsets = [1, 2, 0], sizes = [16, 16, 4], strides = [1, 1, 1]} : vector<18x18x4xbf16> to vector<16x16x4xbf16>
    %16 = vector.extract_strided_slice %9 {offsets = [2, 0, 0], sizes = [16, 16, 4], strides = [1, 1, 1]} : vector<18x18x4xbf16> to vector<16x16x4xbf16>
    %17 = vector.extract_strided_slice %9 {offsets = [2, 1, 0], sizes = [16, 16, 4], strides = [1, 1, 1]} : vector<18x18x4xbf16> to vector<16x16x4xbf16>
    %18 = vector.extract_strided_slice %9 {offsets = [2, 2, 0], sizes = [16, 16, 4], strides = [1, 1, 1]} : vector<18x18x4xbf16> to vector<16x16x4xbf16>
    %19 = tpu.concatenate %10, %11, %12, %13, %14, %15, %16, %17, %18 in 2 : vector<16x16x4xbf16>, vector<16x16x4xbf16>, vector<16x16x4xbf16>, vector<16x16x4xbf16>, vector<16x16x4xbf16>, vector<16x16x4xbf16>, vector<16x16x4xbf16>, vector<16x16x4xbf16>, vector<16x16x4xbf16> -> vector<16x16x36xbf16>
    %20 = vector.shape_cast %19 : vector<16x16x36xbf16> to vector<256x36xbf16>
    %c0_7 = arith.constant 0 : index
    %c0_8 = arith.constant 0 : index
    %21 = vector.load %arg4[%c0_7, %c0_8] : memref<36x128xbf16, #tpu.memory_space<vmem>>, vector<36x128xbf16>
    %cst = arith.constant dense<0.000000e+00> : vector<256x128xf32>
    %22 = tpu.matmul %20, %21, %cst {dimension_numbers = #tpu.dot_dimension_numbers<[1], [0], [0], [1], [0, 0, 1, 1], [], []>} : vector<256x36xbf16>, vector<36x128xbf16>, vector<256x128xf32> -> vector<256x128xf32>
    %c0_9 = arith.constant 0 : index
    %c0_10 = arith.constant 0 : index
    %23 = vector.load %arg9[%c0_9, %c0_10] : memref<1x128xf32, #tpu.memory_space<vmem>>, vector<1x128xf32>
    %cst_11 = arith.constant dense<0.000000e+00> : vector<128xf32>
    %24 = vector.multi_reduction <add>, %22, %cst_11 [0] : vector<256x128xf32> to vector<128xf32>
    %25 = vector.shape_cast %24 : vector<128xf32> to vector<1x128xf32>
    %26 = arith.addf %23, %25 : vector<1x128xf32>
    %c0_12 = arith.constant 0 : index
    %c0_13 = arith.constant 0 : index
    %27 = vector.load %arg9[%c0_12, %c0_13] : memref<1x128xf32, #tpu.memory_space<vmem>>, vector<1x128xf32>
    tpu.vector_store %arg9[%c0_12, %c0_13], %26 {strides = array<i32>} : memref<1x128xf32, #tpu.memory_space<vmem>>, vector<1x128xf32>,
    %c0_14 = arith.constant 0 : index
    %c0_15 = arith.constant 0 : index
    %28 = vector.load %arg10[%c0_14, %c0_15] : memref<1x128xf32, #tpu.memory_space<vmem>>, vector<1x128xf32>
    %29 = arith.mulf %22, %22 : vector<256x128xf32>
    %cst_16 = arith.constant dense<0.000000e+00> : vector<128xf32>
    %30 = vector.multi_reduction <add>, %29, %cst_16 [0] : vector<256x128xf32> to vector<128xf32>
    %31 = vector.shape_cast %30 : vector<128xf32> to vector<1x128xf32>
    %32 = arith.addf %28, %31 : vector<1x128xf32>
    %c0_17 = arith.constant 0 : index
    %c0_18 = arith.constant 0 : index
    %33 = vector.load %arg10[%c0_17, %c0_18] : memref<1x128xf32, #tpu.memory_space<vmem>>, vector<1x128xf32>
    tpu.vector_store %arg10[%c0_17, %c0_18], %32 {strides = array<i32>} : memref<1x128xf32, #tpu.memory_space<vmem>>, vector<1x128xf32>,
    %34 = vector.shape_cast %22 : vector<256x128xf32> to vector<16x16x128xf32>
    %35 = arith.truncf %34 : vector<16x16x128xf32> to vector<16x16x128xbf16>
    %c0_19 = arith.constant 0 : index
    %c0_20 = arith.constant 0 : index
    %c0_21 = arith.constant 0 : index
    %c0_22 = arith.constant 0 : index
    %36 = vector.load %arg7[%c0_19, %c0_20, %c0_21, %c0_22] : memref<1x16x16x128xbf16, #tpu.memory_space<vmem>>, vector<1x16x16x128xbf16>
    %37 = vector.shape_cast %36 : vector<1x16x16x128xbf16> to vector<16x16x128xbf16>
    %38 = vector.shape_cast %35 : vector<16x16x128xbf16> to vector<1x16x16x128xbf16>
    tpu.vector_store %arg7[%c0_19, %c0_20, %c0_21, %c0_22], %38 {strides = array<i32>} : memref<1x16x16x128xbf16, #tpu.memory_space<vmem>>, vector<1x16x16x128xbf16>,
    %39 = arith.extui %5 : i1 to i32
    %c0_i32_23 = arith.constant 0 : i32
    %40 = arith.cmpi ne, %39, %c0_i32_23 : i32
    scf.if %40 {
      %c0_24 = arith.constant 0 : index
      %c0_25 = arith.constant 0 : index
      %41 = vector.load %arg9[%c0_24, %c0_25] : memref<1x128xf32, #tpu.memory_space<vmem>>, vector<1x128xf32>
      %cst_26 = arith.constant 0.001953125 : f32
      %42 = vector.broadcast %cst_26 : f32 to vector<1x128xf32>
      %43 = arith.mulf %41, %42 : vector<1x128xf32>
      %c0_27 = arith.constant 0 : index
      %c0_28 = arith.constant 0 : index
      %44 = vector.load %arg10[%c0_27, %c0_28] : memref<1x128xf32, #tpu.memory_space<vmem>>, vector<1x128xf32>
      %cst_29 = arith.constant 0.001953125 : f32
      %45 = vector.broadcast %cst_29 : f32 to vector<1x128xf32>
      %46 = arith.mulf %44, %45 : vector<1x128xf32>
      %47 = arith.mulf %43, %43 : vector<1x128xf32>
      %48 = arith.subf %46, %47 : vector<1x128xf32>
      %cst_30 = arith.constant 0.000000e+00 : f32
      %49 = vector.broadcast %cst_30 : f32 to vector<1x128xf32>
      %50 = arith.maximumf %48, %49 : vector<1x128xf32>
      %c0_31 = arith.constant 0 : index
      %c0_32 = arith.constant 0 : index
      %51 = vector.load %arg5[%c0_31, %c0_32] : memref<1x128xf32, #tpu.memory_space<vmem>>, vector<1x128xf32>
      %cst_33 = arith.constant 9.99999974E-6 : f32
      %52 = vector.broadcast %cst_33 : f32 to vector<1x128xf32>
      %53 = arith.addf %50, %52 : vector<1x128xf32>
      %54 = math.rsqrt %53 : vector<1x128xf32>
      %55 = arith.mulf %51, %54 : vector<1x128xf32>
      %c0_34 = arith.constant 0 : index
      %c0_35 = arith.constant 0 : index
      %56 = vector.load %arg6[%c0_34, %c0_35] : memref<1x128xf32, #tpu.memory_space<vmem>>, vector<1x128xf32>
      %57 = arith.mulf %43, %55 : vector<1x128xf32>
      %58 = arith.subf %56, %57 : vector<1x128xf32>
      %59 = tpu.concatenate %55, %58 in 0 : vector<1x128xf32>, vector<1x128xf32> -> vector<2x128xf32>
      %c0_36 = arith.constant 0 : index
      %c0_37 = arith.constant 0 : index
      %60 = vector.load %arg8[%c0_36, %c0_37] : memref<2x128xf32, #tpu.memory_space<vmem>>, vector<2x128xf32>
      tpu.vector_store %arg8[%c0_36, %c0_37], %59 {strides = array<i32>} : memref<2x128xf32, #tpu.memory_space<vmem>>, vector<2x128xf32>,
    } else {
    }
    return
  }
  func.func @transform_0(%arg0: i32, %arg1: i32, %arg2: i32) -> (i32, i32, i32, i32, i32) {
    %c0_i32 = arith.constant 0 : i32
    %c0_i32_0 = arith.constant 0 : i32
    %c0_i32_1 = arith.constant 0 : i32
    %c0_i32_2 = arith.constant 0 : i32
    return %arg1, %arg2, %c0_i32, %c0_i32_0, %c0_i32_1 : i32, i32, i32, i32, i32
  }
  func.func @transform_1(%arg0: i32, %arg1: i32, %arg2: i32) -> (i32, i32) {
    %c0_i32 = arith.constant 0 : i32
    %c0_i32_0 = arith.constant 0 : i32
    return %c0_i32, %arg0 : i32, i32
  }
  func.func @transform_2(%arg0: i32, %arg1: i32, %arg2: i32) -> (i32, i32) {
    %c0_i32 = arith.constant 0 : i32
    %c0_i32_0 = arith.constant 0 : i32
    return %c0_i32, %arg0 : i32, i32
  }
  func.func @transform_3(%arg0: i32, %arg1: i32, %arg2: i32) -> (i32, i32) {
    %c0_i32 = arith.constant 0 : i32
    %c0_i32_0 = arith.constant 0 : i32
    return %c0_i32, %arg0 : i32, i32
  }
  func.func @transform_4(%arg0: i32, %arg1: i32, %arg2: i32) -> (i32, i32, i32, i32) {
    %c0_i32 = arith.constant 0 : i32
    %c0_i32_0 = arith.constant 0 : i32
    return %arg1, %arg2, %c0_i32, %arg0 : i32, i32, i32, i32
  }
  func.func @transform_5(%arg0: i32, %arg1: i32, %arg2: i32) -> (i32, i32) {
    %c0_i32 = arith.constant 0 : i32
    %c0_i32_0 = arith.constant 0 : i32
    return %c0_i32, %arg0 : i32, i32
  }
}

module attributes {stable_mosaic.version = 11 : i64} {
  func.func @_bn_lrelu_kernel(%arg0: i32, %arg1: i32, %arg2: i32, %arg3: memref<1x16x16x128xbf16, #tpu.memory_space<vmem>>, %arg4: memref<2x128xf32, #tpu.memory_space<vmem>>, %arg5: memref<1x16x16x128xbf16, #tpu.memory_space<vmem>>) attributes {dimension_semantics = [#tpu.dimension_semantics<parallel>, #tpu.dimension_semantics<parallel>, #tpu.dimension_semantics<parallel>], iteration_bounds = array<i64: 1, 2, 1>, scalar_prefetch = 0 : i64, scratch_operands = 0 : i64, tpu.core_type = #tpu.core_type<tc>, window_params = [{transform_indices = @transform_0, window_bounds = array<i64: 1, 16, 16, 128>}, {transform_indices = @transform_1, window_bounds = array<i64: 2, 128>}, {transform_indices = @transform_2, window_bounds = array<i64: 1, 16, 16, 128>}]} {
    %c0 = arith.constant 0 : index
    %c0_0 = arith.constant 0 : index
    %0 = vector.load %arg4[%c0, %c0_0] : memref<2x128xf32, #tpu.memory_space<vmem>>, vector<1x128xf32>
    %c1 = arith.constant 1 : index
    %c0_1 = arith.constant 0 : index
    %1 = vector.load %arg4[%c1, %c0_1] : memref<2x128xf32, #tpu.memory_space<vmem>>, vector<1x128xf32>
    %c0_2 = arith.constant 0 : index
    %c0_3 = arith.constant 0 : index
    %c0_4 = arith.constant 0 : index
    %c0_5 = arith.constant 0 : index
    %2 = vector.load %arg3[%c0_2, %c0_3, %c0_4, %c0_5] : memref<1x16x16x128xbf16, #tpu.memory_space<vmem>>, vector<1x16x16x128xbf16>
    %3 = vector.shape_cast %2 : vector<1x16x16x128xbf16> to vector<16x16x128xbf16>
    %4 = arith.extf %3 : vector<16x16x128xbf16> to vector<16x16x128xf32>
    %5 = vector.shape_cast %0 : vector<1x128xf32> to vector<1x1x128xf32>
    %6 = vector.broadcast %5 : vector<1x1x128xf32> to vector<16x16x128xf32>
    %7 = arith.mulf %4, %6 : vector<16x16x128xf32>
    %8 = vector.shape_cast %1 : vector<1x128xf32> to vector<1x1x128xf32>
    %9 = vector.broadcast %8 : vector<1x1x128xf32> to vector<16x16x128xf32>
    %10 = arith.addf %7, %9 : vector<16x16x128xf32>
    %cst = arith.constant 0.000000e+00 : f32
    %11 = vector.broadcast %cst : f32 to vector<16x16x128xf32>
    %12 = arith.cmpf ogt, %10, %11 : vector<16x16x128xf32>
    %cst_6 = arith.constant 0.00999999977 : f32
    %13 = vector.broadcast %cst_6 : f32 to vector<16x16x128xf32>
    %14 = arith.mulf %13, %10 : vector<16x16x128xf32>
    %15 = arith.select %12, %10, %14 : vector<16x16x128xi1>, vector<16x16x128xf32>
    %16 = arith.truncf %15 : vector<16x16x128xf32> to vector<16x16x128xbf16>
    %c0_7 = arith.constant 0 : index
    %c0_8 = arith.constant 0 : index
    %c0_9 = arith.constant 0 : index
    %c0_10 = arith.constant 0 : index
    %17 = vector.load %arg5[%c0_7, %c0_8, %c0_9, %c0_10] : memref<1x16x16x128xbf16, #tpu.memory_space<vmem>>, vector<1x16x16x128xbf16>
    %18 = vector.shape_cast %17 : vector<1x16x16x128xbf16> to vector<16x16x128xbf16>
    %19 = vector.shape_cast %16 : vector<16x16x128xbf16> to vector<1x16x16x128xbf16>
    tpu.vector_store %arg5[%c0_7, %c0_8, %c0_9, %c0_10], %19 {strides = array<i32>} : memref<1x16x16x128xbf16, #tpu.memory_space<vmem>>, vector<1x16x16x128xbf16>,
    return
  }
  func.func @transform_0(%arg0: i32, %arg1: i32, %arg2: i32) -> (i32, i32, i32, i32) {
    %c0_i32 = arith.constant 0 : i32
    %c0_i32_0 = arith.constant 0 : i32
    return %arg1, %arg2, %c0_i32, %arg0 : i32, i32, i32, i32
  }
  func.func @transform_1(%arg0: i32, %arg1: i32, %arg2: i32) -> (i32, i32) {
    %c0_i32 = arith.constant 0 : i32
    %c0_i32_0 = arith.constant 0 : i32
    return %c0_i32, %arg0 : i32, i32
  }
  func.func @transform_2(%arg0: i32, %arg1: i32, %arg2: i32) -> (i32, i32, i32, i32) {
    %c0_i32 = arith.constant 0 : i32
    %c0_i32_0 = arith.constant 0 : i32
    return %arg1, %arg2, %c0_i32, %arg0 : i32, i32, i32, i32
  }
}

module attributes {stable_mosaic.version = 11 : i64} {
  func.func @_conv_stats_kernel(%arg0: i32, %arg1: i32, %arg2: i32, %arg3: memref<1x1x18x18x64xbf16, #tpu.memory_space<vmem>>, %arg4: memref<576x128xbf16, #tpu.memory_space<vmem>>, %arg5: memref<1x128xf32, #tpu.memory_space<vmem>>, %arg6: memref<1x128xf32, #tpu.memory_space<vmem>>, %arg7: memref<1x16x16x128xbf16, #tpu.memory_space<vmem>>, %arg8: memref<2x128xf32, #tpu.memory_space<vmem>>, %arg9: memref<1x128xf32, #tpu.memory_space<vmem>>, %arg10: memref<1x128xf32, #tpu.memory_space<vmem>>) attributes {dimension_semantics = [#tpu.dimension_semantics<parallel>, #tpu.dimension_semantics<arbitrary>, #tpu.dimension_semantics<arbitrary>], iteration_bounds = array<i64: 1, 2, 1>, scalar_prefetch = 0 : i64, scratch_operands = 2 : i64, tpu.core_type = #tpu.core_type<tc>, window_params = [{transform_indices = @transform_0, window_bounds = array<i64: 1, 1, 18, 18, 64>}, {transform_indices = @transform_1, window_bounds = array<i64: 576, 128>}, {transform_indices = @transform_2, window_bounds = array<i64: 1, 128>}, {transform_indices = @transform_3, window_bounds = array<i64: 1, 128>}, {transform_indices = @transform_4, window_bounds = array<i64: 1, 16, 16, 128>}, {transform_indices = @transform_5, window_bounds = array<i64: 2, 128>}]} {
    %c0_i32 = arith.constant 0 : i32
    %0 = arith.cmpi eq, %arg1, %c0_i32 : i32
    %c0_i32_0 = arith.constant 0 : i32
    %1 = arith.cmpi eq, %arg2, %c0_i32_0 : i32
    %2 = arith.andi %0, %1 : i1
    %c1_i32 = arith.constant 1 : i32
    %3 = arith.cmpi eq, %arg1, %c1_i32 : i32
    %c0_i32_1 = arith.constant 0 : i32
    %4 = arith.cmpi eq, %arg2, %c0_i32_1 : i32
    %5 = arith.andi %3, %4 : i1
    %6 = arith.extui %2 : i1 to i32
    %c0_i32_2 = arith.constant 0 : i32
    %7 = arith.cmpi ne, %6, %c0_i32_2 : i32
    scf.if %7 {
      %cst_24 = arith.constant 0.000000e+00 : f32
      %41 = vector.broadcast %cst_24 : f32 to vector<1x128xf32>
      %c0_25 = arith.constant 0 : index
      %c0_26 = arith.constant 0 : index
      %42 = vector.load %arg9[%c0_25, %c0_26] : memref<1x128xf32, #tpu.memory_space<vmem>>, vector<1x128xf32>
      tpu.vector_store %arg9[%c0_25, %c0_26], %41 {strides = array<i32>} : memref<1x128xf32, #tpu.memory_space<vmem>>, vector<1x128xf32>,
      %cst_27 = arith.constant 0.000000e+00 : f32
      %43 = vector.broadcast %cst_27 : f32 to vector<1x128xf32>
      %c0_28 = arith.constant 0 : index
      %c0_29 = arith.constant 0 : index
      %44 = vector.load %arg10[%c0_28, %c0_29] : memref<1x128xf32, #tpu.memory_space<vmem>>, vector<1x128xf32>
      tpu.vector_store %arg10[%c0_28, %c0_29], %43 {strides = array<i32>} : memref<1x128xf32, #tpu.memory_space<vmem>>, vector<1x128xf32>,
    } else {
    }
    %c0 = arith.constant 0 : index
    %c0_3 = arith.constant 0 : index
    %c0_4 = arith.constant 0 : index
    %c0_5 = arith.constant 0 : index
    %c0_6 = arith.constant 0 : index
    %8 = vector.load %arg3[%c0, %c0_3, %c0_4, %c0_5, %c0_6] : memref<1x1x18x18x64xbf16, #tpu.memory_space<vmem>>, vector<1x1x18x18x64xbf16>
    %9 = vector.shape_cast %8 : vector<1x1x18x18x64xbf16> to vector<18x18x64xbf16>
    %10 = vector.extract_strided_slice %9 {offsets = [0, 0, 0], sizes = [16, 16, 64], strides = [1, 1, 1]} : vector<18x18x64xbf16> to vector<16x16x64xbf16>
    %11 = vector.extract_strided_slice %9 {offsets = [0, 1, 0], sizes = [16, 16, 64], strides = [1, 1, 1]} : vector<18x18x64xbf16> to vector<16x16x64xbf16>
    %12 = vector.extract_strided_slice %9 {offsets = [0, 2, 0], sizes = [16, 16, 64], strides = [1, 1, 1]} : vector<18x18x64xbf16> to vector<16x16x64xbf16>
    %13 = vector.extract_strided_slice %9 {offsets = [1, 0, 0], sizes = [16, 16, 64], strides = [1, 1, 1]} : vector<18x18x64xbf16> to vector<16x16x64xbf16>
    %14 = vector.extract_strided_slice %9 {offsets = [1, 1, 0], sizes = [16, 16, 64], strides = [1, 1, 1]} : vector<18x18x64xbf16> to vector<16x16x64xbf16>
    %15 = vector.extract_strided_slice %9 {offsets = [1, 2, 0], sizes = [16, 16, 64], strides = [1, 1, 1]} : vector<18x18x64xbf16> to vector<16x16x64xbf16>
    %16 = vector.extract_strided_slice %9 {offsets = [2, 0, 0], sizes = [16, 16, 64], strides = [1, 1, 1]} : vector<18x18x64xbf16> to vector<16x16x64xbf16>
    %17 = vector.extract_strided_slice %9 {offsets = [2, 1, 0], sizes = [16, 16, 64], strides = [1, 1, 1]} : vector<18x18x64xbf16> to vector<16x16x64xbf16>
    %18 = vector.extract_strided_slice %9 {offsets = [2, 2, 0], sizes = [16, 16, 64], strides = [1, 1, 1]} : vector<18x18x64xbf16> to vector<16x16x64xbf16>
    %19 = tpu.concatenate %10, %11, %12, %13, %14, %15, %16, %17, %18 in 2 : vector<16x16x64xbf16>, vector<16x16x64xbf16>, vector<16x16x64xbf16>, vector<16x16x64xbf16>, vector<16x16x64xbf16>, vector<16x16x64xbf16>, vector<16x16x64xbf16>, vector<16x16x64xbf16>, vector<16x16x64xbf16> -> vector<16x16x576xbf16>
    %20 = vector.shape_cast %19 : vector<16x16x576xbf16> to vector<256x576xbf16>
    %c0_7 = arith.constant 0 : index
    %c0_8 = arith.constant 0 : index
    %21 = vector.load %arg4[%c0_7, %c0_8] : memref<576x128xbf16, #tpu.memory_space<vmem>>, vector<576x128xbf16>
    %cst = arith.constant dense<0.000000e+00> : vector<256x128xf32>
    %22 = tpu.matmul %20, %21, %cst {dimension_numbers = #tpu.dot_dimension_numbers<[1], [0], [0], [1], [0, 0, 1, 1], [], []>} : vector<256x576xbf16>, vector<576x128xbf16>, vector<256x128xf32> -> vector<256x128xf32>
    %c0_9 = arith.constant 0 : index
    %c0_10 = arith.constant 0 : index
    %23 = vector.load %arg9[%c0_9, %c0_10] : memref<1x128xf32, #tpu.memory_space<vmem>>, vector<1x128xf32>
    %cst_11 = arith.constant dense<0.000000e+00> : vector<128xf32>
    %24 = vector.multi_reduction <add>, %22, %cst_11 [0] : vector<256x128xf32> to vector<128xf32>
    %25 = vector.shape_cast %24 : vector<128xf32> to vector<1x128xf32>
    %26 = arith.addf %23, %25 : vector<1x128xf32>
    %c0_12 = arith.constant 0 : index
    %c0_13 = arith.constant 0 : index
    %27 = vector.load %arg9[%c0_12, %c0_13] : memref<1x128xf32, #tpu.memory_space<vmem>>, vector<1x128xf32>
    tpu.vector_store %arg9[%c0_12, %c0_13], %26 {strides = array<i32>} : memref<1x128xf32, #tpu.memory_space<vmem>>, vector<1x128xf32>,
    %c0_14 = arith.constant 0 : index
    %c0_15 = arith.constant 0 : index
    %28 = vector.load %arg10[%c0_14, %c0_15] : memref<1x128xf32, #tpu.memory_space<vmem>>, vector<1x128xf32>
    %29 = arith.mulf %22, %22 : vector<256x128xf32>
    %cst_16 = arith.constant dense<0.000000e+00> : vector<128xf32>
    %30 = vector.multi_reduction <add>, %29, %cst_16 [0] : vector<256x128xf32> to vector<128xf32>
    %31 = vector.shape_cast %30 : vector<128xf32> to vector<1x128xf32>
    %32 = arith.addf %28, %31 : vector<1x128xf32>
    %c0_17 = arith.constant 0 : index
    %c0_18 = arith.constant 0 : index
    %33 = vector.load %arg10[%c0_17, %c0_18] : memref<1x128xf32, #tpu.memory_space<vmem>>, vector<1x128xf32>
    tpu.vector_store %arg10[%c0_17, %c0_18], %32 {strides = array<i32>} : memref<1x128xf32, #tpu.memory_space<vmem>>, vector<1x128xf32>,
    %34 = vector.shape_cast %22 : vector<256x128xf32> to vector<16x16x128xf32>
    %35 = arith.truncf %34 : vector<16x16x128xf32> to vector<16x16x128xbf16>
    %c0_19 = arith.constant 0 : index
    %c0_20 = arith.constant 0 : index
    %c0_21 = arith.constant 0 : index
    %c0_22 = arith.constant 0 : index
    %36 = vector.load %arg7[%c0_19, %c0_20, %c0_21, %c0_22] : memref<1x16x16x128xbf16, #tpu.memory_space<vmem>>, vector<1x16x16x128xbf16>
    %37 = vector.shape_cast %36 : vector<1x16x16x128xbf16> to vector<16x16x128xbf16>
    %38 = vector.shape_cast %35 : vector<16x16x128xbf16> to vector<1x16x16x128xbf16>
    tpu.vector_store %arg7[%c0_19, %c0_20, %c0_21, %c0_22], %38 {strides = array<i32>} : memref<1x16x16x128xbf16, #tpu.memory_space<vmem>>, vector<1x16x16x128xbf16>,
    %39 = arith.extui %5 : i1 to i32
    %c0_i32_23 = arith.constant 0 : i32
    %40 = arith.cmpi ne, %39, %c0_i32_23 : i32
    scf.if %40 {
      %c0_24 = arith.constant 0 : index
      %c0_25 = arith.constant 0 : index
      %41 = vector.load %arg9[%c0_24, %c0_25] : memref<1x128xf32, #tpu.memory_space<vmem>>, vector<1x128xf32>
      %cst_26 = arith.constant 0.001953125 : f32
      %42 = vector.broadcast %cst_26 : f32 to vector<1x128xf32>
      %43 = arith.mulf %41, %42 : vector<1x128xf32>
      %c0_27 = arith.constant 0 : index
      %c0_28 = arith.constant 0 : index
      %44 = vector.load %arg10[%c0_27, %c0_28] : memref<1x128xf32, #tpu.memory_space<vmem>>, vector<1x128xf32>
      %cst_29 = arith.constant 0.001953125 : f32
      %45 = vector.broadcast %cst_29 : f32 to vector<1x128xf32>
      %46 = arith.mulf %44, %45 : vector<1x128xf32>
      %47 = arith.mulf %43, %43 : vector<1x128xf32>
      %48 = arith.subf %46, %47 : vector<1x128xf32>
      %cst_30 = arith.constant 0.000000e+00 : f32
      %49 = vector.broadcast %cst_30 : f32 to vector<1x128xf32>
      %50 = arith.maximumf %48, %49 : vector<1x128xf32>
      %c0_31 = arith.constant 0 : index
      %c0_32 = arith.constant 0 : index
      %51 = vector.load %arg5[%c0_31, %c0_32] : memref<1x128xf32, #tpu.memory_space<vmem>>, vector<1x128xf32>
      %cst_33 = arith.constant 9.99999974E-6 : f32
      %52 = vector.broadcast %cst_33 : f32 to vector<1x128xf32>
      %53 = arith.addf %50, %52 : vector<1x128xf32>
      %54 = math.rsqrt %53 : vector<1x128xf32>
      %55 = arith.mulf %51, %54 : vector<1x128xf32>
      %c0_34 = arith.constant 0 : index
      %c0_35 = arith.constant 0 : index
      %56 = vector.load %arg6[%c0_34, %c0_35] : memref<1x128xf32, #tpu.memory_space<vmem>>, vector<1x128xf32>
      %57 = arith.mulf %43, %55 : vector<1x128xf32>
      %58 = arith.subf %56, %57 : vector<1x128xf32>
      %59 = tpu.concatenate %55, %58 in 0 : vector<1x128xf32>, vector<1x128xf32> -> vector<2x128xf32>
      %c0_36 = arith.constant 0 : index
      %c0_37 = arith.constant 0 : index
      %60 = vector.load %arg8[%c0_36, %c0_37] : memref<2x128xf32, #tpu.memory_space<vmem>>, vector<2x128xf32>
      tpu.vector_store %arg8[%c0_36, %c0_37], %59 {strides = array<i32>} : memref<2x128xf32, #tpu.memory_space<vmem>>, vector<2x128xf32>,
    } else {
    }
    return
  }
  func.func @transform_0(%arg0: i32, %arg1: i32, %arg2: i32) -> (i32, i32, i32, i32, i32) {
    %c0_i32 = arith.constant 0 : i32
    %c0_i32_0 = arith.constant 0 : i32
    %c0_i32_1 = arith.constant 0 : i32
    %c0_i32_2 = arith.constant 0 : i32
    return %arg1, %arg2, %c0_i32, %c0_i32_0, %c0_i32_1 : i32, i32, i32, i32, i32
  }
  func.func @transform_1(%arg0: i32, %arg1: i32, %arg2: i32) -> (i32, i32) {
    %c0_i32 = arith.constant 0 : i32
    %c0_i32_0 = arith.constant 0 : i32
    return %c0_i32, %arg0 : i32, i32
  }
  func.func @transform_2(%arg0: i32, %arg1: i32, %arg2: i32) -> (i32, i32) {
    %c0_i32 = arith.constant 0 : i32
    %c0_i32_0 = arith.constant 0 : i32
    return %c0_i32, %arg0 : i32, i32
  }
  func.func @transform_3(%arg0: i32, %arg1: i32, %arg2: i32) -> (i32, i32) {
    %c0_i32 = arith.constant 0 : i32
    %c0_i32_0 = arith.constant 0 : i32
    return %c0_i32, %arg0 : i32, i32
  }
  func.func @transform_4(%arg0: i32, %arg1: i32, %arg2: i32) -> (i32, i32, i32, i32) {
    %c0_i32 = arith.constant 0 : i32
    %c0_i32_0 = arith.constant 0 : i32
    return %arg1, %arg2, %c0_i32, %arg0 : i32, i32, i32, i32
  }
  func.func @transform_5(%arg0: i32, %arg1: i32, %arg2: i32) -> (i32, i32) {
    %c0_i32 = arith.constant 0 : i32
    %c0_i32_0 = arith.constant 0 : i32
    return %c0_i32, %arg0 : i32, i32
  }
}

module attributes {stable_mosaic.version = 11 : i64} {
  func.func @_bn_lrelu_pool_kernel(%arg0: i32, %arg1: i32, %arg2: i32, %arg3: memref<1x16x16x128xbf16, #tpu.memory_space<vmem>>, %arg4: memref<2x128xf32, #tpu.memory_space<vmem>>, %arg5: memref<1x16x16x128xf32, #tpu.memory_space<vmem>>, %arg6: memref<1x8x8x128xf32, #tpu.memory_space<vmem>>) attributes {dimension_semantics = [#tpu.dimension_semantics<parallel>, #tpu.dimension_semantics<parallel>, #tpu.dimension_semantics<parallel>], iteration_bounds = array<i64: 1, 2, 1>, scalar_prefetch = 0 : i64, scratch_operands = 0 : i64, tpu.core_type = #tpu.core_type<tc>, window_params = [{transform_indices = @transform_0, window_bounds = array<i64: 1, 16, 16, 128>}, {transform_indices = @transform_1, window_bounds = array<i64: 2, 128>}, {transform_indices = @transform_2, window_bounds = array<i64: 1, 16, 16, 128>}, {transform_indices = @transform_3, window_bounds = array<i64: 1, 8, 8, 128>}]} {
    %c0 = arith.constant 0 : index
    %c0_0 = arith.constant 0 : index
    %0 = vector.load %arg4[%c0, %c0_0] : memref<2x128xf32, #tpu.memory_space<vmem>>, vector<1x128xf32>
    %c1 = arith.constant 1 : index
    %c0_1 = arith.constant 0 : index
    %1 = vector.load %arg4[%c1, %c0_1] : memref<2x128xf32, #tpu.memory_space<vmem>>, vector<1x128xf32>
    %c0_2 = arith.constant 0 : index
    %c0_3 = arith.constant 0 : index
    %c0_4 = arith.constant 0 : index
    %c0_5 = arith.constant 0 : index
    %2 = vector.load %arg3[%c0_2, %c0_3, %c0_4, %c0_5] : memref<1x16x16x128xbf16, #tpu.memory_space<vmem>>, vector<1x16x16x128xbf16>
    %3 = vector.shape_cast %2 : vector<1x16x16x128xbf16> to vector<16x16x128xbf16>
    %4 = arith.extf %3 : vector<16x16x128xbf16> to vector<16x16x128xf32>
    %5 = vector.shape_cast %0 : vector<1x128xf32> to vector<1x1x128xf32>
    %6 = vector.broadcast %5 : vector<1x1x128xf32> to vector<16x16x128xf32>
    %7 = arith.mulf %4, %6 : vector<16x16x128xf32>
    %8 = vector.shape_cast %1 : vector<1x128xf32> to vector<1x1x128xf32>
    %9 = vector.broadcast %8 : vector<1x1x128xf32> to vector<16x16x128xf32>
    %10 = arith.addf %7, %9 : vector<16x16x128xf32>
    %cst = arith.constant 0.000000e+00 : f32
    %11 = vector.broadcast %cst : f32 to vector<16x16x128xf32>
    %12 = arith.cmpf ogt, %10, %11 : vector<16x16x128xf32>
    %cst_6 = arith.constant 0.00999999977 : f32
    %13 = vector.broadcast %cst_6 : f32 to vector<16x16x128xf32>
    %14 = arith.mulf %13, %10 : vector<16x16x128xf32>
    %15 = arith.select %12, %10, %14 : vector<16x16x128xi1>, vector<16x16x128xf32>
    %c0_7 = arith.constant 0 : index
    %c0_8 = arith.constant 0 : index
    %c0_9 = arith.constant 0 : index
    %c0_10 = arith.constant 0 : index
    %16 = vector.load %arg5[%c0_7, %c0_8, %c0_9, %c0_10] : memref<1x16x16x128xf32, #tpu.memory_space<vmem>>, vector<1x16x16x128xf32>
    %17 = vector.shape_cast %16 : vector<1x16x16x128xf32> to vector<16x16x128xf32>
    %18 = vector.shape_cast %15 : vector<16x16x128xf32> to vector<1x16x16x128xf32>
    tpu.vector_store %arg5[%c0_7, %c0_8, %c0_9, %c0_10], %18 {strides = array<i32>} : memref<1x16x16x128xf32, #tpu.memory_space<vmem>>, vector<1x16x16x128xf32>,
    %19 = vector.shape_cast %15 : vector<16x16x128xf32> to vector<8x2x16x128xf32>
    %20 = vector.extract_strided_slice %19 {offsets = [0, 0, 0, 0], sizes = [8, 1, 16, 128], strides = [1, 1, 1, 1]} : vector<8x2x16x128xf32> to vector<8x1x16x128xf32>
    %21 = vector.shape_cast %20 : vector<8x1x16x128xf32> to vector<8x16x128xf32>
    %22 = vector.extract_strided_slice %19 {offsets = [0, 1, 0, 0], sizes = [8, 1, 16, 128], strides = [1, 1, 1, 1]} : vector<8x2x16x128xf32> to vector<8x1x16x128xf32>
    %23 = vector.shape_cast %22 : vector<8x1x16x128xf32> to vector<8x16x128xf32>
    %24 = arith.maximumf %21, %23 : vector<8x16x128xf32>
    %25 = vector.shape_cast %24 : vector<8x16x128xf32> to vector<64x2x128xf32>
    %26 = vector.extract_strided_slice %25 {offsets = [0, 0, 0], sizes = [64, 1, 128], strides = [1, 1, 1]} : vector<64x2x128xf32> to vector<64x1x128xf32>
    %27 = vector.shape_cast %26 : vector<64x1x128xf32> to vector<64x128xf32>
    %28 = vector.extract_strided_slice %25 {offsets = [0, 1, 0], sizes = [64, 1, 128], strides = [1, 1, 1]} : vector<64x2x128xf32> to vector<64x1x128xf32>
    %29 = vector.shape_cast %28 : vector<64x1x128xf32> to vector<64x128xf32>
    %30 = arith.maximumf %27, %29 : vector<64x128xf32>
    %31 = vector.shape_cast %30 : vector<64x128xf32> to vector<8x8x128xf32>
    %c0_11 = arith.constant 0 : index
    %c0_12 = arith.constant 0 : index
    %c0_13 = arith.constant 0 : index
    %c0_14 = arith.constant 0 : index
    %32 = vector.load %arg6[%c0_11, %c0_12, %c0_13, %c0_14] : memref<1x8x8x128xf32, #tpu.memory_space<vmem>>, vector<1x8x8x128xf32>
    %33 = vector.shape_cast %32 : vector<1x8x8x128xf32> to vector<8x8x128xf32>
    %34 = vector.shape_cast %31 : vector<8x8x128xf32> to vector<1x8x8x128xf32>
    tpu.vector_store %arg6[%c0_11, %c0_12, %c0_13, %c0_14], %34 {strides = array<i32>} : memref<1x8x8x128xf32, #tpu.memory_space<vmem>>, vector<1x8x8x128xf32>,
    return
  }
  func.func @transform_0(%arg0: i32, %arg1: i32, %arg2: i32) -> (i32, i32, i32, i32) {
    %c0_i32 = arith.constant 0 : i32
    %c0_i32_0 = arith.constant 0 : i32
    return %arg1, %arg2, %c0_i32, %arg0 : i32, i32, i32, i32
  }
  func.func @transform_1(%arg0: i32, %arg1: i32, %arg2: i32) -> (i32, i32) {
    %c0_i32 = arith.constant 0 : i32
    %c0_i32_0 = arith.constant 0 : i32
    return %c0_i32, %arg0 : i32, i32
  }
  func.func @transform_2(%arg0: i32, %arg1: i32, %arg2: i32) -> (i32, i32, i32, i32) {
    %c0_i32 = arith.constant 0 : i32
    %c0_i32_0 = arith.constant 0 : i32
    return %arg1, %arg2, %c0_i32, %arg0 : i32, i32, i32, i32
  }
  func.func @transform_3(%arg0: i32, %arg1: i32, %arg2: i32) -> (i32, i32, i32, i32) {
    %c0_i32 = arith.constant 0 : i32
    %c0_i32_0 = arith.constant 0 : i32
    return %arg1, %arg2, %c0_i32, %arg0 : i32, i32, i32, i32
  }
}

</mosaic_0001>

<bundles_post_ra>
// kernel: encoder_forward_nchw.5
= control target key start
LH: loop header
LB: loop body
LE: loop exit
PB: predicated region body
PF: predicated region fallthrough
CT: control target
= control target key end

     0   :  { %s1069_s9 = smov 0   ;;  %s1071_s10 = smov 0   ;;  %s1220_s0 = inlined_call_operand.vmem [shape: bf16[2,16,16,128], index: 0, kind: input, shape index: {}]   ;;  %s1221_s1 = inlined_call_operand.vmem [shape: f32[2,128], index: 1, kind: input, shape index: {}]   ;;  %s1222_s2 = inlined_call_operand.vmem [shape: bf16[2,16,16,128], index: 2, kind: output, shape index: {}]  }
   0x1   :  { %s1073_s11 = smov 0  }
   0x2 LB: > { %s27_s12 = sadd.s32 1, %s1048_s10  ;;  %p757_p0 = scmp.ge.s32.totalorder %s1052_s11, 1  ;;  %s1052_s11 = sphi %s1073_s11, %s12_s11   ;;  %s1048_s10 = sphi %s1071_s10, %s1224_s10   ;;  %s1044_s9 = sphi %s1069_s9, %s1223_s9  }
   0x3   : > { %p29_p1 = scmp.ge.s32.totalorder %s27_s12, 2  ;;  %p157_p2 = scmp.lt.s32.totalorder %s1052_s11, 3 }
   0x5   : > { %s1226_s12 = smov (%p29_p1, %s27_s12), 0  ;;  %p158_p3 = pnand %p757_p0, %p157_p2 }
   0x6   : > { %p200_p4 = scmp.lt.s32.totalorder (!%p158_p3), %s1044_s9, 1  ;;  %v1100_v0 = vld [vmem:[%s1221_s1] ss:$0 sm:$0xff] (!%p158_p3)  ;;  %v1109_v9 = vld [vmem:[%s1221_s1 + $0x1] ss:$0 sm:$0xff] (!%p158_p3) }
   0x7   : > { %161 = sbr.rel (%p158_p3) target bundleno = 77 (0x4d), region = 28 }
   0xe   : > { %s1228_s9 = smov (!%p200_p4, %s1044_s9), 1 }
   0xf   : > { %s798_s13 = sshll.u32 %s1228_s9, 7 }
  0x10   : > { %s1095_s16 = scalar_lea.vmem %s1220_s0, %s798_s13  ;;  %s1132_s23 = scalar_lea.vmem %s1222_s2, %s798_s13 }
  0x11   : > { %v833_v1 = vld [vmem:[%s1095_s16] sm:$0xff]   ;;  %v976_v2 = vld [vmem:[%s1095_s16 + $0x8] sm:$0xff]   ;;  %v977_v3 = vld [vmem:[%s1095_s16 + $0x10] sm:$0xff]  }
  0x12   : > { %v834_v4 = vunpack.c.l.bf16 %v833_v1  ;;  %v835_v5 = vunpack.c.h.bf16 %v833_v1  ;;  %v838_v6 = vunpack.c.l.bf16 %v976_v2  ;;  %v839_v7 = vunpack.c.h.bf16 %v976_v2  ;;  %v978_v8 = vld [vmem:[%s1095_s16 + $0x18] sm:$0xff]   ;;  %v979_v36 = vld [vmem:[%s1095_s16 + $0x20] sm:$0xff]   ;;  %v980_v41 = vld [vmem:[%s1095_s16 + $0x28] sm:$0xff]  }
  0x13   : > { %v842_v10 = vunpack.c.l.bf16 %v977_v3  ;;  %v843_v11 = vunpack.c.h.bf16 %v977_v3  ;;  %v846_v12 = vunpack.c.l.bf16 %v978_v8  ;;  %v847_v13 = vunpack.c.h.bf16 %v978_v8  ;;  %v981_v52 = vld [vmem:[%s1095_s16 + $0x30] sm:$0xff]   ;;  %v982_v53 = vld [vmem:[%s1095_s16 + $0x38] sm:$0xff]  }
  0x14   : > { %v301_v14 = vmul.f32 %v834_v4, %v1100_v0  ;;  %v302_v15 = vmul.f32 %v835_v5, %v1100_v0  ;;  %v303_v16 = vmul.f32 %v838_v6, %v1100_v0  ;;  %v304_v17 = vmul.f32 %v839_v7, %v1100_v0 }
  0x15   : > { %v305_v18 = vmul.f32 %v842_v10, %v1100_v0  ;;  %v306_v19 = vmul.f32 %v843_v11, %v1100_v0  ;;  %v307_v20 = vmul.f32 %v846_v12, %v1100_v0  ;;  %v308_v21 = vmul.f32 %v847_v13, %v1100_v0 }
  0x16   : > { %v337_v22 = vadd.f32 %v1109_v9, %v301_v14  ;;  %v338_v23 = vadd.f32 %v1109_v9, %v302_v15  ;;  %v339_v24 = vadd.f32 %v1109_v9, %v303_v16  ;;  %v340_v25 = vadd.f32 %v1109_v9, %v304_v17 }
  0x17   : > { %v341_v26 = vadd.f32 %v1109_v9, %v305_v18  ;;  %v342_v27 = vadd.f32 %v1109_v9, %v306_v19  ;;  %v343_v28 = vadd.f32 %v1109_v9, %v307_v20  ;;  %v344_v29 = vadd.f32 %v1109_v9, %v308_v21  ;;  %v983_v20 = vld [vmem:[%s1095_s16 + $0x40] sm:$0xff]  }
  0x18   : > { %vm369_vm0 = vcmp.gt.f32.partialorder %v337_v22, 0.0  ;;  %vm370_vm1 = vcmp.gt.f32.partialorder %v338_v23, 0.0  ;;  %v401_v30 = vmul.f32 0.01, %v337_v22  ;;  %v402_v31 = vmul.f32 0.01, %v338_v23 }
  0x19   : > { %vm371_vm2 = vcmp.gt.f32.partialorder %v339_v24, 0.0  ;;  %vm372_vm3 = vcmp.gt.f32.partialorder %v340_v25, 0.0  ;;  %v403_v32 = vmul.f32 0.01, %v339_v24  ;;  %v404_v33 = vmul.f32 0.01, %v340_v25 }
  0x1a   : > { %v433_v34 = vsel %vm369_vm0, %v337_v22, %v401_v30  ;;  %v434_v35 = vsel %vm370_vm1, %v338_v23, %v402_v31  ;;  %vm373_vm4 = vcmp.gt.f32.partialorder %v341_v26, 0.0  ;;  %vm374_vm5 = vcmp.gt.f32.partialorder %v342_v27, 0.0 }
  0x1b   : > { %v899_v37 = vpack.c.bf16 %v434_v35, %v433_v34  ;;  %v435_v38 = vsel %vm371_vm2, %v339_v24, %v403_v32  ;;  %v436_v39 = vsel %vm372_vm3, %v340_v25, %v404_v33  ;;  %v405_v40 = vmul.f32 0.01, %v341_v26  ;;  %v984_v24 = vld [vmem:[%s1095_s16 + $0x48] sm:$0xff]  }
  0x1c   : > { %v904_v42 = vpack.c.bf16 %v436_v39, %v435_v38  ;;  %v406_v43 = vmul.f32 0.01, %v342_v27  ;;  %vm375_vm6 = vcmp.gt.f32.partialorder %v343_v28, 0.0  ;;  %vm376_vm7 = vcmp.gt.f32.partialorder %v344_v29, 0.0 }
  0x1d   : > { %900 = vst [vmem:[%s1132_s23] sm:$0xff] %v899_v37   ;;  %v437_v44 = vsel %vm373_vm4, %v341_v26, %v405_v40  ;;  %v407_v45 = vmul.f32 0.01, %v343_v28  ;;  %v408_v46 = vmul.f32 0.01, %v344_v29  ;;  %v850_v47 = vunpack.c.l.bf16 %v979_v36 }
  0x1e   : > { %991 = vst [vmem:[%s1132_s23 + $0x8] sm:$0xff] %v904_v42   ;;  %v438_v48 = vsel %vm374_vm5, %v342_v27, %v406_v43  ;;  %v851_v49 = vunpack.c.h.bf16 %v979_v36  ;;  %v854_v50 = vunpack.c.l.bf16 %v980_v41  ;;  %v855_v51 = vunpack.c.h.bf16 %v980_v41  ;;  %v985_v36 = vld [vmem:[%s1095_s16 + $0x50] sm:$0xff]  }
  0x1f   : > { %v909_v54 = vpack.c.bf16 %v438_v48, %v437_v44  ;;  %v439_v55 = vsel %vm375_vm6, %v343_v28, %v407_v45  ;;  %v440_v56 = vsel %vm376_vm7, %v344_v29, %v408_v46  ;;  %v309_v57 = vmul.f32 %v850_v47, %v1100_v0 }
  0x20   : > { %v914_v58 = vpack.c.bf16 %v440_v56, %v439_v55  ;;  %v310_v59 = vmul.f32 %v851_v49, %v1100_v0  ;;  %v311_v60 = vmul.f32 %v854_v50, %v1100_v0  ;;  %v312_v61 = vmul.f32 %v855_v51, %v1100_v0  ;;  %v986_v55 = vld [vmem:[%s1095_s16 + $0x58] sm:$0xff]  }
  0x21   : > { %992 = vst [vmem:[%s1132_s23 + $0x10] sm:$0xff] %v909_v54   ;;  %v345_v62 = vadd.f32 %v1109_v9, %v309_v57  ;;  %v858_v63 = vunpack.c.l.bf16 %v981_v52  ;;  %v859_v1 = vunpack.c.h.bf16 %v981_v52  ;;  %v862_v2 = vunpack.c.l.bf16 %v982_v53 }
  0x22   : > { %993 = vst [vmem:[%s1132_s23 + $0x18] sm:$0xff] %v914_v58   ;;  %v346_v3 = vadd.f32 %v1109_v9, %v310_v59  ;;  %v347_v4 = vadd.f32 %v1109_v9, %v311_v60  ;;  %v348_v5 = vadd.f32 %v1109_v9, %v312_v61  ;;  %v863_v6 = vunpack.c.h.bf16 %v982_v53 }
  0x23   : > { %vm377_vm8 = vcmp.gt.f32.partialorder %v345_v62, 0.0  ;;  %v409_v7 = vmul.f32 0.01, %v345_v62  ;;  %v313_v8 = vmul.f32 %v858_v63, %v1100_v0  ;;  %v314_v10 = vmul.f32 %v859_v1, %v1100_v0  ;;  %v987_v1 = vld [vmem:[%s1095_s16 + $0x60] sm:$0xff]  }
  0x24   : > { %vm378_vm9 = vcmp.gt.f32.partialorder %v346_v3, 0.0  ;;  %v410_v11 = vmul.f32 0.01, %v346_v3  ;;  %vm379_vm10 = vcmp.gt.f32.partialorder %v347_v4, 0.0  ;;  %vm380_vm11 = vcmp.gt.f32.partialorder %v348_v5, 0.0 }
  0x25   : > { %v441_v12 = vsel %vm377_vm8, %v345_v62, %v409_v7  ;;  %v411_v13 = vmul.f32 0.01, %v347_v4  ;;  %v412_v14 = vmul.f32 0.01, %v348_v5  ;;  %v349_v15 = vadd.f32 %v1109_v9, %v313_v8 }
  0x26   : > { %v442_v16 = vsel %vm378_vm9, %v346_v3, %v410_v11  ;;  %v350_v17 = vadd.f32 %v1109_v9, %v314_v10  ;;  %v315_v18 = vmul.f32 %v862_v2, %v1100_v0  ;;  %v316_v19 = vmul.f32 %v863_v6, %v1100_v0  ;;  %v988_v6 = vld [vmem:[%s1095_s16 + $0x68] sm:$0xff]  }
  0x27   : > { %v919_v21 = vpack.c.bf16 %v442_v16, %v441_v12  ;;  %v443_v22 = vsel %vm379_vm10, %v347_v4, %v411_v13  ;;  %v444_v23 = vsel %vm380_vm11, %v348_v5, %v412_v14  ;;  %vm381_vm12 = vcmp.gt.f32.partialorder %v349_v15, 0.0 }
  0x28   : > { %v924_v25 = vpack.c.bf16 %v444_v23, %v443_v22  ;;  %vm382_vm13 = vcmp.gt.f32.partialorder %v350_v17, 0.0  ;;  %v413_v26 = vmul.f32 0.01, %v349_v15  ;;  %v414_v27 = vmul.f32 0.01, %v350_v17  ;;  %v989_v22 = vld [vmem:[%s1095_s16 + $0x70] sm:$0xff]  }
  0x29   : > { %994 = vst [vmem:[%s1132_s23 + $0x20] sm:$0xff] %v919_v21   ;;  %v351_v28 = vadd.f32 %v1109_v9, %v315_v18  ;;  %v352_v29 = vadd.f32 %v1109_v9, %v316_v19  ;;  %v866_v30 = vunpack.c.l.bf16 %v983_v20  ;;  %v867_v31 = vunpack.c.h.bf16 %v983_v20 }
  0x2a   : > { %995 = vst [vmem:[%s1132_s23 + $0x28] sm:$0xff] %v924_v25   ;;  %v445_v32 = vsel %vm381_vm12, %v349_v15, %v413_v26  ;;  %v446_v33 = vsel %vm382_vm13, %v350_v17, %v414_v27  ;;  %v870_v34 = vunpack.c.l.bf16 %v984_v24  ;;  %v871_v35 = vunpack.c.h.bf16 %v984_v24 }
  0x2b   : > { %v929_v37 = vpack.c.bf16 %v446_v33, %v445_v32  ;;  %vm383_vm14 = vcmp.gt.f32.partialorder %v351_v28, 0.0  ;;  %vm384_vm15 = vcmp.gt.f32.partialorder %v352_v29, 0.0  ;;  %v415_v38 = vmul.f32 0.01, %v351_v28 }
  0x2c   : > { %v416_v39 = vmul.f32 0.01, %v352_v29  ;;  %v317_v40 = vmul.f32 %v866_v30, %v1100_v0  ;;  %v318_v41 = vmul.f32 %v867_v31, %v1100_v0  ;;  %v319_v42 = vmul.f32 %v870_v34, %v1100_v0 }
  0x2d   : > { %996 = vst [vmem:[%s1132_s23 + $0x30] sm:$0xff] %v929_v37   ;;  %v447_v43 = vsel %vm383_vm14, %v351_v28, %v415_v38  ;;  %v320_v44 = vmul.f32 %v871_v35, %v1100_v0  ;;  %v874_v45 = vunpack.c.l.bf16 %v985_v36  ;;  %v875_v46 = vunpack.c.h.bf16 %v985_v36 }
  0x2e   : > { %v448_v47 = vsel %vm384_vm15, %v352_v29, %v416_v39  ;;  %v353_v48 = vadd.f32 %v1109_v9, %v317_v40  ;;  %v354_v49 = vadd.f32 %v1109_v9, %v318_v41  ;;  %v355_v50 = vadd.f32 %v1109_v9, %v319_v42  ;;  %v990_v41 = vld [vmem:[%s1095_s16 + $0x78] sm:$0xff]  }
  0x2f   : > { %v934_v51 = vpack.c.bf16 %v448_v47, %v447_v43  ;;  %v356_v52 = vadd.f32 %v1109_v9, %v320_v44  ;;  %v321_v53 = vmul.f32 %v874_v45, %v1100_v0  ;;  %v322_v54 = vmul.f32 %v875_v46, %v1100_v0 }
  0x30   : > { %vm385_vm0 = vcmp.gt.f32.partialorder %v353_v48, 0.0  ;;  %vm386_vm1 = vcmp.gt.f32.partialorder %v354_v49, 0.0  ;;  %v417_v56 = vmul.f32 0.01, %v353_v48  ;;  %v418_v57 = vmul.f32 0.01, %v354_v49 }
  0x31   : > { %997 = vst [vmem:[%s1132_s23 + $0x38] sm:$0xff] %v934_v51   ;;  %vm387_vm2 = vcmp.gt.f32.partialorder %v355_v50, 0.0  ;;  %vm388_vm3 = vcmp.gt.f32.partialorder %v356_v52, 0.0  ;;  %v419_v58 = vmul.f32 0.01, %v355_v50  ;;  %v357_v62 = vadd.f32 %v1109_v9, %v321_v53 }
  0x32   : > { %v420_v59 = vmul.f32 0.01, %v356_v52  ;;  %v449_v60 = vsel %vm385_vm0, %v353_v48, %v417_v56  ;;  %v450_v61 = vsel %vm386_vm1, %v354_v49, %v418_v57  ;;  %v358_v63 = vadd.f32 %v1109_v9, %v322_v54 }
  0x33   : > { %v939_v2 = vpack.c.bf16 %v450_v61, %v449_v60  ;;  %v451_v3 = vsel %vm387_vm2, %v355_v50, %v419_v58  ;;  %v878_v5 = vunpack.c.l.bf16 %v986_v55  ;;  %vm389_vm4 = vcmp.gt.f32.partialorder %v357_v62, 0.0 }
  0x34   : > { %v452_v4 = vsel %vm388_vm3, %v356_v52, %v420_v59  ;;  %vm390_vm5 = vcmp.gt.f32.partialorder %v358_v63, 0.0  ;;  %v421_v8 = vmul.f32 0.01, %v357_v62  ;;  %v422_v10 = vmul.f32 0.01, %v358_v63 }
  0x35   : > { %v944_v7 = vpack.c.bf16 %v452_v4, %v451_v3  ;;  %998 = vst [vmem:[%s1132_s23 + $0x40] sm:$0xff] %v939_v2   ;;  %v879_v11 = vunpack.c.h.bf16 %v986_v55  ;;  %v323_v12 = vmul.f32 %v878_v5, %v1100_v0  ;;  %v882_v13 = vunpack.c.l.bf16 %v987_v1 }
  0x36   : > { %v453_v14 = vsel %vm389_vm4, %v357_v62, %v421_v8  ;;  %v883_v15 = vunpack.c.h.bf16 %v987_v1  ;;  %v886_v16 = vunpack.c.l.bf16 %v988_v6  ;;  %v887_v17 = vunpack.c.h.bf16 %v988_v6 }
  0x37   : > { %999 = vst [vmem:[%s1132_s23 + $0x48] sm:$0xff] %v944_v7   ;;  %v454_v18 = vsel %vm390_vm5, %v358_v63, %v422_v10  ;;  %v324_v19 = vmul.f32 %v879_v11, %v1100_v0  ;;  %v359_v20 = vadd.f32 %v1109_v9, %v323_v12  ;;  %v325_v21 = vmul.f32 %v882_v13, %v1100_v0 }
  0x38   : > { %v949_v23 = vpack.c.bf16 %v454_v18, %v453_v14  ;;  %v326_v24 = vmul.f32 %v883_v15, %v1100_v0  ;;  %v327_v25 = vmul.f32 %v886_v16, %v1100_v0  ;;  %v328_v26 = vmul.f32 %v887_v17, %v1100_v0 }
  0x39   : > { %v360_v27 = vadd.f32 %v1109_v9, %v324_v19  ;;  %vm391_vm6 = vcmp.gt.f32.partialorder %v359_v20, 0.0  ;;  %v423_v28 = vmul.f32 0.01, %v359_v20  ;;  %v361_v29 = vadd.f32 %v1109_v9, %v325_v21 }
  0x3a   : > { %1000 = vst [vmem:[%s1132_s23 + $0x50] sm:$0xff] %v949_v23   ;;  %v362_v30 = vadd.f32 %v1109_v9, %v326_v24  ;;  %v363_v31 = vadd.f32 %v1109_v9, %v327_v25  ;;  %v364_v32 = vadd.f32 %v1109_v9, %v328_v26  ;;  %v890_v33 = vunpack.c.l.bf16 %v989_v22 }
  0x3b   : > { %vm392_vm7 = vcmp.gt.f32.partialorder %v360_v27, 0.0  ;;  %v424_v34 = vmul.f32 0.01, %v360_v27  ;;  %v455_v35 = vsel %vm391_vm6, %v359_v20, %v423_v28  ;;  %vm393_vm8 = vcmp.gt.f32.partialorder %v361_v29, 0.0 }
  0x3c   : > { %vm394_vm9 = vcmp.gt.f32.partialorder %v362_v30, 0.0  ;;  %v425_v36 = vmul.f32 0.01, %v361_v29  ;;  %v426_v37 = vmul.f32 0.01, %v362_v30  ;;  %vm395_vm10 = vcmp.gt.f32.partialorder %v363_v31, 0.0 }
  0x3d   : > { %v456_v38 = vsel %vm392_vm7, %v360_v27, %v424_v34  ;;  %vm396_vm11 = vcmp.gt.f32.partialorder %v364_v32, 0.0  ;;  %v427_v39 = vmul.f32 0.01, %v363_v31  ;;  %v428_v40 = vmul.f32 0.01, %v364_v32 }
  0x3e   : > { %v954_v42 = vpack.c.bf16 %v456_v38, %v455_v35  ;;  %v457_v43 = vsel %vm393_vm8, %v361_v29, %v425_v36  ;;  %v458_v44 = vsel %vm394_vm9, %v362_v30, %v426_v37  ;;  %v891_v45 = vunpack.c.h.bf16 %v989_v22 }
  0x3f   : > { %v959_v46 = vpack.c.bf16 %v458_v44, %v457_v43  ;;  %v459_v47 = vsel %vm395_vm10, %v363_v31, %v427_v39  ;;  %v460_v48 = vsel %vm396_vm11, %v364_v32, %v428_v40  ;;  %v329_v49 = vmul.f32 %v890_v33, %v1100_v0 }
  0x40   : > { %1001 = vst [vmem:[%s1132_s23 + $0x58] sm:$0xff] %v954_v42   ;;  %v964_v50 = vpack.c.bf16 %v460_v48, %v459_v47  ;;  %v330_v51 = vmul.f32 %v891_v45, %v1100_v0  ;;  %v894_v52 = vunpack.c.l.bf16 %v990_v41  ;;  %v895_v53 = vunpack.c.h.bf16 %v990_v41 }
  0x41   : > { %1002 = vst [vmem:[%s1132_s23 + $0x60] sm:$0xff] %v959_v46   ;;  %v365_v54 = vadd.f32 %v1109_v9, %v329_v49 }
  0x42   : > { %1003 = vst [vmem:[%s1132_s23 + $0x68] sm:$0xff] %v964_v50   ;;  %v366_v55 = vadd.f32 %v1109_v9, %v330_v51  ;;  %v331_v56 = vmul.f32 %v894_v52, %v1100_v0  ;;  %v332_v57 = vmul.f32 %v895_v53, %v1100_v0 }
  0x43   : > { %vm397_vm12 = vcmp.gt.f32.partialorder %v365_v54, 0.0  ;;  %v429_v58 = vmul.f32 0.01, %v365_v54 }
  0x44   : > { %vm398_vm13 = vcmp.gt.f32.partialorder %v366_v55, 0.0  ;;  %v430_v59 = vmul.f32 0.01, %v366_v55  ;;  %v367_v60 = vadd.f32 %v1109_v9, %v331_v56  ;;  %v368_v61 = vadd.f32 %v1109_v9, %v332_v57 }
  0x45   : > { %v461_v62 = vsel %vm397_vm12, %v365_v54, %v429_v58 }
  0x46   : > { %v462_v63 = vsel %vm398_vm13, %v366_v55, %v430_v59  ;;  %vm399_vm14 = vcmp.gt.f32.partialorder %v367_v60, 0.0  ;;  %vm400_vm15 = vcmp.gt.f32.partialorder %v368_v61, 0.0  ;;  %v431_v1 = vmul.f32 0.01, %v367_v60 }
  0x47   : > { %v969_v2 = vpack.c.bf16 %v462_v63, %v461_v62  ;;  %v432_v3 = vmul.f32 0.01, %v368_v61 }
  0x48   : > { %v463_v4 = vsel %vm399_vm14, %v367_v60, %v431_v1 }
  0x49   : > { %1004 = vst [vmem:[%s1132_s23 + $0x70] sm:$0xff] %v969_v2   ;;  %v464_v5 = vsel %vm400_vm15, %v368_v61, %v432_v3 }
  0x4a   : > { %v974_v0 = vpack.c.bf16 %v464_v5, %v463_v4 }
  0x4c   : > { %1005 = vst [vmem:[%s1132_s23 + $0x78] sm:$0xff] %v974_v0  }
  0x4d PF: > { %s12_s11 = sadd.s32 1, %s1052_s11   ;;  %s1223_s9 = smov %s1048_s10 }
  0x4e   : > { %p9_p5 = scmp.ge.s32.totalorder %s12_s11, 4   ;;  %s1224_s10 = smov %s1226_s12 }
  0x50   :  { %11 = sbr.rel (!%p9_p5) target bundleno = 2 (0x2), region = 61 }

// kernel: encoder_forward_nchw.4
= control target key start
LH: loop header
LB: loop body
LE: loop exit
PB: predicated region body
PF: predicated region fallthrough
CT: control target
= control target key end

     0   :  { %s2464_s18 = smov 0   ;;  %s2466_s19 = smov 0   ;;  %s3019_s0 = inlined_call_operand.vmem [shape: bf16[2,1,18,18,4], index: 0, kind: input, shape index: {}]   ;;  %s3020_s1 = inlined_call_operand.vmem [shape: bf16[36,128], index: 1, kind: input, shape index: {}]   ;;  %s3021_s2 = inlined_call_operand.vmem [shape: f32[1,128], index: 2, kind: input, shape index: {}]   ;;  %s3022_s3 = inlined_call_operand.vmem [shape: f32[1,128], index: 3, kind: input, shape index: {}]   ;;  %s3023_s4 = inlined_call_operand.vmem [shape: bf16[2,16,16,128], index: 4, kind: output, shape index: {0}]   ;;  %s3024_s5 = inlined_call_operand.vmem [shape: f32[2,128], index: 5, kind: output, shape index: {1}]  }
   0x1   :  { %s2468_s20 = smov 0  }
   0x2 LB: > { %s31_s21 = sadd.s32 1, %s2419_s19  ;;  %p2035_p0 = scmp.ge.s32.totalorder %s2423_s20, 1  ;;  %s2423_s20 = sphi %s2468_s20, %s16_s20   ;;  %s2419_s19 = sphi %s2466_s19, %s3026_s19   ;;  %s2415_s18 = sphi %s2464_s18, %s3025_s18  }
   0x3   : > { %p33_p1 = scmp.ge.s32.totalorder %s31_s21, 2  ;;  %p244_p2 = scmp.lt.s32.totalorder %s2423_s20, 3 }
   0x5   : > { %s3028_s21 = smov (%p33_p1, %s31_s21), 0  ;;  %p245_p3 = pnand %p2035_p0, %p244_p2 }
   0x6   : > { %p298_p4 = scmp.lt.s32.totalorder (!%p245_p3), %s2415_s18, 1  ;;  %p336_p5 = scmp.eq.s32.totalorder (!%p245_p3), %s2415_s18, 0 }
   0x7   : > { %248 = sbr.rel (%p245_p3) target bundleno = 670 (0x29e), region = 36  ;;  %p340_p6 = scmp.eq.s32.totalorder (!%p245_p3), %s2415_s18, 1 }
   0xe   : > { %s299_s22 = scalar_select %p298_p4, %s2415_s18, 1 }
   0xf   : > { %344 = sbr.rel (!%p336_p5) target bundleno = 22 (0x16), region = 40  ;;  %v2425_v0 = vmov (%p336_p5), 0.0  }
  0x10   : > { %s2326_s23 = smul.u32 216, %s299_s22  ;;  %s2131_s24 = sshll.u32 %s299_s22, 7  ;;  %345 = vst [vmem:[#allocation2] sm:$0x1] (%p336_p5), %v2425_v0  ;;  %346 = vst [vmem:[#allocation3] sm:$0x1] (%p336_p5), %v2425_v0 }
  0x11   : > { %s2491_s27 = scalar_lea.vmem %s3023_s4, %s2131_s24 }
  0x12   : > { %s2496_s30 = scalar_lea.vmem %s3019_s0, %s2326_s23 }
  0x16 PF: > { %v2499_v1 = vld [vmem:[%s2496_s30 + $0xc] sm:$0xff]   ;;  %s2426_s6 = smov 12   ;;  %v2504_v2 = vld [vmem:[%s2496_s30] sm:$0xff]   ;;  %v2362_v3 = vld [vmem:[%s2496_s30 + $0x8] ss:$0 sps:$4 sm:$0x11]  }
  0x17   : > { %840 = vrot.lane.b32.xlu0 %v2499_v1, %s2426_s6  ;;  %vm754_vm0 = vcmask 1046528   ;;  %v2363_v4 = vld [vmem:[%s2496_s30 + $0x14] ss:$0 sps:$4 sm:$0x11]   ;;  %v755_v5 = vrot.slane %v2504_v2, 1  ;;  %v756_v6 = vrot.slane %v2362_v3, 1 }
  0x18   : > { %v758_v7 = vrot.slane %v2499_v1, 1  ;;  %v531_v8 = vshrl.u32 %v2504_v2, 16  ;;  %v759_v9 = vrot.slane %v2363_v4, 1  ;;  %v533_v10 = vshll.u32 %v2504_v2, 16  ;;  %v2513_v12 = vld [vmem:[%s2496_s30 + $0x18] sm:$0xff]   ;;  %s2427_s7 = smov 8  }
  0x19   : > { %v538_v11 = vshll.u32 %v2362_v3, 16  ;;  %v757_v13 = vsel %vm754_vm0, %v755_v5, %v756_v6  ;;  %v543_v14 = vshrl.u32 %v2499_v1, 16  ;;  %v545_v15 = vshll.u32 %v2499_v1, 16  ;;  %v2365_v21 = vld [vmem:[%s2496_s30 + $0x20] ss:$0 sps:$4 sm:$0x11]  }
  0x1a   : > { %v550_v16 = vshll.u32 %v2363_v4, 16  ;;  %803 = vrot.lane.b32.xlu1 %v757_v13, %s2427_s7  ;;  %vm529_vm1 = vsmask.f32 7424  ;;  %v535_v17 = vrot.slane %v533_v10, 1  ;;  %v760_v19 = vsel %vm754_vm0, %v758_v7, %v759_v9  ;;  %s2428_s8 = smov 4   ;;  %v2527_v32 = vld [vmem:[%s2496_s30 + $0x24] sm:$0xff]  }
  0x1b   : > { %v540_v18 = vrot.slane %v538_v11, 1  ;;  %v547_v20 = vrot.slane %v545_v15, 1  ;;  %v555_v22 = vshrl.u32 %v2513_v12, 16  ;;  %v557_v23 = vshll.u32 %v2513_v12, 16  ;;  %s2429_s9 = smov 16   ;;  %s2430_s10 = smov 20  }
  0x1c   : > { %v536_v24 = vor.u32 %v535_v17, %v531_v8  ;;  %v552_v25 = vrot.slane %v550_v16, 1  ;;  %v562_v28 = vshll.u32 %v2365_v21, 16  ;;  %v761_v34 = vrot.slane %v2513_v12, 1  ;;  %v2367_v37 = vld [vmem:[%s2496_s30 + $0x2c] ss:$0 sps:$4 sm:$0x11]  }
  0x1d   : > { %v548_v26 = vor.u32 %v547_v20, %v543_v14  ;;  %v559_v27 = vrot.slane %v557_v23, 1  ;;  %v762_v35 = vrot.slane %v2365_v21, 1  ;;  %v569_v38 = vshll.u32 %v2527_v32, 16  ;;  %s2431_s11 = smov 24   ;;  %v2380_v46 = vld [vmem:[%s3020_s1] sm:$0xff]   ;;  %s2432_s14 = smov 28  }
  0x1e   : > { %805 = vrot.lane.b32.xlu1 %v760_v19, %s2427_s7  ;;  %v541_v29 = vsel %vm529_vm1, %v536_v24, %v540_v18  ;;  %v564_v31 = vrot.slane %v562_v28, 1  ;;  %v567_v40 = vshrl.u32 %v2527_v32, 16  ;;  %v574_v42 = vshll.u32 %v2367_v37, 16  ;;  %2280 = vmatprep.subr.bf16.mxu0 %v2380_v46  ;;  %v2554_v47 = vld [vmem:[%s2496_s30 + $0x30] sm:$0xff]   ;;  %v2382_v48 = vld [vmem:[%s3020_s1 + $0x8] sm:$0xff]   ;;  %s2433_s23 = smov 32  }
  0x1f   : > { %722 = vrot.lane.b32.xlu0 %v541_v29, %s2428_s8  ;;  %v560_v30 = vor.u32 %v559_v27, %v555_v22  ;;  %v553_v33 = vsel %vm529_vm1, %v548_v26, %v552_v25  ;;  %v763_v39 = vsel %vm754_vm0, %v761_v34, %v762_v35  ;;  %v571_v41 = vrot.slane %v569_v38, 1  ;;  %2281 = vmatpush3.bf16.msra.mxu0 %v2380_v46  ;;  %v2369_v51 = vld [vmem:[%s2496_s30 + $0x38] ss:$0 sps:$4 sm:$0x11]   ;;  %v2573_v60 = vld [vmem:[%s2496_s30 + $0x3c] sm:$0xff]   ;;  %v2598_v13 = vld [vmem:[%s2496_s30 + $0x48] sm:$0xff]  }
  0x20   : > { %v576_v44 = vrot.slane %v574_v42, 1  ;;  %v764_v49 = vrot.slane %v2527_v32, 1  ;;  %v765_v50 = vrot.slane %v2367_v37, 1  ;;  %2318 = vmatprep.subr.bf16.mxu1 %v2380_v46  ;;  %2282 = vmatprep.subr.bf16.mxu0 %v2382_v48  ;;  %v2384_v52 = vld [vmem:[%s3020_s1 + $0x10] ss:$0 sps:$4 sm:$0x33]  }
  0x21   : > { %v565_v36 = vsel %vm529_vm1, %v560_v30, %v564_v31  ;;  %v572_v43 = vor.u32 %v571_v41, %v567_v40  ;;  %2321 = vmatpush3.bf16.msra.mxu1 %v2380_v46  ;;  %vm1390_vm2 = vcmask 1041408   ;;  %v581_v53 = vshll.u32 %v2554_v47, 16  ;;  %v2371_v3 = vld [vmem:[%s2496_s30 + $0x44] ss:$0 sps:$4 sm:$0x11]   ;;  %v2612_v24 = vld [vmem:[%s2496_s30 + $0x54] sm:$0xff]  }
  0x22   : > { %842 = vrot.lane.b32.xlu1 %v2513_v12, %s2426_s6  ;;  %2319 = vmatprep.subr.bf16.mxu1 %v2382_v48  ;;  %v766_v54 = vsel %vm754_vm0, %v764_v49, %v765_v50  ;;  %v1392_v55 = vsel %vm1390_vm2, %v2384_v52, 0  ;;  %v586_v56 = vshll.u32 %v2369_v51, 16  ;;  %v579_v57 = vshrl.u32 %v2554_v47, 16  ;;  %v2373_v16 = vld [vmem:[%s2496_s30 + $0x50] ss:$0 sps:$4 sm:$0x11]  }
  0x23   : > { %724 = vrot.lane.b32.xlu0 %v553_v33, %s2428_s8  ;;  %v577_v45 = vsel %vm529_vm1, %v572_v43, %v576_v44  ;;  %2283 = vmatpush3.bf16.msra.mxu0 %v2382_v48  ;;  %v583_v58 = vrot.slane %v581_v53, 1  ;;  %v767_v62 = vrot.slane %v2554_v47, 1  ;;  %v768_v63 = vrot.slane %v2369_v51, 1  ;;  %v2375_v28 = vld [vmem:[%s2496_s30 + $0x5c] ss:$0 sps:$4 sm:$0x11]  }
  0x24   : > { %2324 = vmatprep.subr.msk.bf16.mxu0 %vm1390_vm2, %v2384_v52  ;;  %v588_v59 = vrot.slane %v586_v56, 1  ;;  %v593_v4 = vshll.u32 %v2573_v60, 16  ;;  %v591_v6 = vshrl.u32 %v2573_v60, 16  ;;  %v598_v8 = vshll.u32 %v2371_v3, 16  ;;  %v2636_v38 = vld [vmem:[%s2496_s30 + $0x60] sm:$0xff]   ;;  %v2650_v50 = vld [vmem:[%s2496_s30 + $0x6c] sm:$0xff]  }
  0x25   : > { %2322 = vmatpush3.bf16.msra.mxu1 %v2382_v48  ;;  %v584_v61 = vor.u32 %v583_v58, %v579_v57  ;;  %v769_v5 = vsel %vm754_vm0, %v767_v62, %v768_v63  ;;  %v770_v14 = vrot.slane %v2573_v60, 1  ;;  %v771_v15 = vrot.slane %v2371_v3, 1  ;;  %v2377_v41 = vld [vmem:[%s2496_s30 + $0x68] ss:$0 sps:$4 sm:$0x11]  }
  0x26   : > { %889 = vrot.lane.b32.xlu1 %v565_v36, %s2429_s9  ;;  %2325 = vmatprep.subr.msk.bf16.mxu1 %vm1390_vm2, %v2384_v52  ;;  %v595_v7 = vrot.slane %v593_v4, 1  ;;  %v600_v10 = vrot.slane %v598_v8, 1  ;;  %v605_v17 = vshll.u32 %v2598_v13, 16  ;;  %v610_v21 = vshll.u32 %v2373_v16, 16 }
  0x27   : > { %887 = vrot.lane.b32.xlu0 %v553_v33, %s2429_s9  ;;  %2285 = vmatpush3.bf16.msra.mxu0 %v1392_v55  ;;  %v589_v0 = vsel %vm529_vm1, %v584_v61, %v588_v59  ;;  %v772_v18 = vsel %vm754_vm0, %v770_v14, %v771_v15  ;;  %v773_v26 = vrot.slane %v2598_v13, 1  ;;  %v774_v27 = vrot.slane %v2373_v16, 1 }
  0x28   : > { %v596_v9 = vor.u32 %v595_v7, %v591_v6  ;;  %v607_v20 = vrot.slane %v605_v17, 1  ;;  %v612_v23 = vrot.slane %v610_v21, 1  ;;  %v617_v29 = vshll.u32 %v2612_v24, 16  ;;  %v2674_v6 = vld [vmem:[%s2496_s30 + $0x78] sm:$0xff]  }
  0x29   : > { %2323 = vmatpush3.bf16.msra.mxu1 %v1392_v55  ;;  %v775_v30 = vsel %vm754_vm0, %v773_v26, %v774_v27  ;;  %v615_v31 = vshrl.u32 %v2612_v24, 16  ;;  %v622_v34 = vshll.u32 %v2375_v28, 16  ;;  %v777_v40 = vrot.slane %v2375_v28, 1  ;;  %v2690_v27 = vld [vmem:[%s2496_s30 + $0x84] sm:$0xff]  }
  0x2a   : > { %924 = vrot.lane.b32.xlu1 %v763_v39, %s2430_s10  ;;  %v601_v11 = vsel %vm529_vm1, %v596_v9, %v600_v10  ;;  %v619_v33 = vrot.slane %v617_v29, 1  ;;  %v629_v42 = vshll.u32 %v2636_v38, 16  ;;  %v627_v44 = vshrl.u32 %v2636_v38, 16 }
  0x2b   : > { %922 = vrot.lane.b32.xlu0 %v760_v19, %s2430_s10  ;;  %v603_v19 = vshrl.u32 %v2598_v13, 16  ;;  %v634_v46 = vshll.u32 %v2377_v41, 16  ;;  %v779_v52 = vrot.slane %v2636_v38, 1  ;;  %v780_v53 = vrot.slane %v2377_v41, 1 }
  0x2c   : > { %v620_v35 = vor.u32 %v619_v33, %v615_v31  ;;  %v641_v55 = vshll.u32 %v2650_v50, 16  ;;  %v639_v57 = vshrl.u32 %v2650_v50, 16  ;;  %v782_v8 = vrot.slane %v2650_v50, 1 }
  0x2d   : > { %v608_v22 = vor.u32 %v607_v20, %v603_v19  ;;  %v636_v49 = vrot.slane %v634_v46, 1  ;;  %v781_v56 = vsel %vm754_vm0, %v779_v52, %v780_v53  ;;  %v653_v14 = vshll.u32 %v2674_v6, 16 }
  0x2e   : > { %961 = vrot.lane.b32.xlu1 %v2527_v32, %s2431_s11  ;;  %v643_v58 = vrot.slane %v641_v55, 1  ;;  %vm1073_vm3 = vcmask 31744   ;;  %vm1106_vm4 = vcmask 64512   ;;  %vm1139_vm5 = vcmask 97280  }
  0x2f   : > { %959 = vrot.lane.b32.xlu0 %v2513_v12, %s2431_s11  ;;  %v613_v25 = vsel %vm529_vm1, %v608_v22, %v612_v23  ;;  %v655_v19 = vrot.slane %v653_v14, 1  ;;  %vm1172_vm6 = vcmask 130048   ;;  %vm1205_vm7 = vcmask 162816   ;;  %v2388_v14 = vld [vmem:[%s2496_s30 + $0x98] ss:$0 sps:$4 sm:$0x11]  }
  0x30   : > { %v644_v62 = vor.u32 %v643_v58, %v639_v57  ;;  %vm1238_vm8 = vcmask 195584   ;;  %vm1271_vm9 = vcmask 228352   ;;  %vm1304_vm10 = vcmask 261120  }
  0x31   : > { %vm1357_vm11 = vcmask 293888   ;;  %vm1849_vm12 = vcmask (%p340_p6), 1040384  }
  0x32   : > { %1008 = vrot.lane.b32.xlu1 %v577_v45, %s2432_s14 }
  0x33   : > { %1006 = vrot.lane.b32.xlu0 %v565_v36, %s2432_s14 }
  0x36   : > { %726 = vrot.lane.b32.xlu1 %v565_v36, %s2428_s8  ;;  %v624_v36 = vrot.slane %v622_v34, 1 }
  0x37   : > { %1041 = vrot.lane.b32.xlu0 %v763_v39, %s2433_s23 }
  0x38   : > { %v625_v37 = vsel %vm529_vm1, %v620_v35, %v624_v36  ;;  %v2386_v35 = vld [vmem:[%s2496_s30 + $0x8c] ss:$0 sps:$4 sm:$0x11]   ;;  %v665_v36 = vshll.u32 %v2690_v27, 16 }
  0x3a   : > { %728 = vrot.lane.b32.xlu1 %v577_v45, %s2428_s8  ;;  %v667_v46 = vrot.slane %v665_v36, 1 }
  0x3b   : > { %1043 = vrot.lane.b32.xlu0 %v766_v54, %s2433_s23 }
  0x3e   : > { %809 = vrot.lane.b32.xlu1 %v766_v54, %s2427_s7 }
  0x3f   : > { %807 = vrot.lane.b32.xlu0 %v763_v39, %s2427_s7  ;;  %v776_v39 = vrot.slane %v2612_v24, 1 }
  0x41   : > { %v778_v43 = vsel %vm754_vm0, %v776_v39, %v777_v40 }
  0x42   : > { %846 = vrot.lane.b32.xlu1 %v2554_v47, %s2426_s6 }
  0x43   : > { %844 = vrot.lane.b32.xlu0 %v2527_v32, %s2426_s6 }
  0x46   : > { %893 = vrot.lane.b32.xlu1 %v589_v0, %s2429_s9 }
  0x47   : > { %891 = vrot.lane.b32.xlu0 %v577_v45, %s2429_s9  ;;  %v631_v45 = vrot.slane %v629_v42, 1 }
  0x49   : > { %v632_v48 = vor.u32 %v631_v45, %v627_v44 }
  0x4a   : > { %928 = vrot.lane.b32.xlu1 %v769_v5, %s2430_s10 }
  0x4b   : > { %926 = vrot.lane.b32.xlu0 %v766_v54, %s2430_s10  ;;  %v637_v51 = vsel %vm529_vm1, %v632_v48, %v636_v49  ;;  %v2379_v54 = vld [vmem:[%s2496_s30 + $0x74] ss:$0 sps:$4 sm:$0x11]   ;;  %v670_v48 = vshll.u32 %v2386_v35, 16 }
  0x4c   : > { %v646_v59 = vshll.u32 %v2379_v54, 16  ;;  %v783_v9 = vrot.slane %v2379_v54, 1 }
  0x4d   : > { %v672_v58 = vrot.slane %v670_v48, 1 }
  0x4e   : > { %965 = vrot.lane.b32.xlu1 %v2573_v60, %s2431_s11  ;;  %v648_v63 = vrot.slane %v646_v59, 1  ;;  %v784_v16 = vsel %vm754_vm0, %v782_v8, %v783_v9  ;;  %v788_v9 = vrot.slane %v2690_v27, 1 }
  0x4f   : > { %963 = vrot.lane.b32.xlu0 %v2554_v47, %s2431_s11 }
  0x50   : > { %v649_v3 = vsel %vm529_vm1, %v644_v62, %v648_v63 }
  0x52   : > { %1012 = vrot.lane.b32.xlu1 %v601_v11, %s2432_s14 }
  0x53   : > { %1010 = vrot.lane.b32.xlu0 %v589_v0, %s2432_s14 }
  0x56   : > { %730 = vrot.lane.b32.xlu1 %v589_v0, %s2428_s8 }
  0x57   : > { %1045 = vrot.lane.b32.xlu0 %v769_v5, %s2433_s23 }
  0x5a   : > { %732 = vrot.lane.b32.xlu1 %v601_v11, %s2428_s8 }
  0x5b   : > { %1047 = vrot.lane.b32.xlu0 %v772_v18, %s2433_s23 }
  0x5e   : > { %813 = vrot.lane.b32.xlu1 %v772_v18, %s2427_s7 }
  0x5f   : > { %811 = vrot.lane.b32.xlu0 %v769_v5, %s2427_s7 }
  0x62   : > { %850 = vrot.lane.b32.xlu1 %v2598_v13, %s2426_s6 }
  0x63   : > { %848 = vrot.lane.b32.xlu0 %v2573_v60, %s2426_s6 }
  0x66   : > { %897 = vrot.lane.b32.xlu1 %v613_v25, %s2429_s9 }
  0x67   : > { %895 = vrot.lane.b32.xlu0 %v601_v11, %s2429_s9  ;;  %v2383_v11 = vld [vmem:[%s2496_s30 + $0x80] ss:$0 sps:$4 sm:$0x11]  }
  0x68   : > { %v658_v20 = vshll.u32 %v2383_v11, 16  ;;  %v786_v33 = vrot.slane %v2383_v11, 1 }
  0x6a   : > { %932 = vrot.lane.b32.xlu1 %v775_v30, %s2430_s10  ;;  %v660_v26 = vrot.slane %v658_v20, 1 }
  0x6b   : > { %930 = vrot.lane.b32.xlu0 %v772_v18, %s2430_s10  ;;  %v651_v18 = vshrl.u32 %v2674_v6, 16 }
  0x6e   : > { %969 = vrot.lane.b32.xlu1 %v2612_v24, %s2431_s11 }
  0x6f   : > { %967 = vrot.lane.b32.xlu0 %v2598_v13, %s2431_s11 }
  0x72   : > { %1016 = vrot.lane.b32.xlu1 %v625_v37, %s2432_s14 }
  0x73   : > { %1014 = vrot.lane.b32.xlu0 %v613_v25, %s2432_s14 }
  0x76   : > { %734 = vrot.lane.b32.xlu1 %v613_v25, %s2428_s8  ;;  %v656_v25 = vor.u32 %v655_v19, %v651_v18 }
  0x77   : > { %1049 = vrot.lane.b32.xlu0 %v775_v30, %s2433_s23 }
  0x78   : > { %v661_v34 = vsel %vm529_vm1, %v656_v25, %v660_v26 }
  0x7a   : > { %736 = vrot.lane.b32.xlu1 %v625_v37, %s2428_s8 }
  0x7b   : > { %1051 = vrot.lane.b32.xlu0 %v778_v43, %s2433_s23 }
  0x7e   : > { %817 = vrot.lane.b32.xlu1 %v778_v43, %s2427_s7 }
  0x7f   : > { %815 = vrot.lane.b32.xlu0 %v775_v30, %s2427_s7 }
  0x82   : > { %854 = vrot.lane.b32.xlu1 %v2636_v38, %s2426_s6 }
  0x83   : > { %852 = vrot.lane.b32.xlu0 %v2612_v24, %s2426_s6 }
  0x86   : > { %901 = vrot.lane.b32.xlu1 %v637_v51, %s2429_s9 }
  0x87   : > { %899 = vrot.lane.b32.xlu0 %v625_v37, %s2429_s9 }
  0x89   : > { %v841_v61 = vpop.permute.xlu0 %840 }
  0x8a   : > { %936 = vrot.lane.b32.xlu1 %v781_v56, %s2430_s10 }
  0x8b   : > { %934 = vrot.lane.b32.xlu0 %v778_v43, %s2430_s10  ;;  %v663_v43 = vshrl.u32 %v2690_v27, 16 }
  0x8c   : > { %v804_v0 = vpop.permute.xlu1 %803 }
  0x8d   : > { %v668_v57 = vor.u32 %v667_v46, %v663_v43 }
  0x8e   : > { %973 = vrot.lane.b32.xlu1 %v2650_v50, %s2431_s11 }
  0x8f   : > { %971 = vrot.lane.b32.xlu0 %v2636_v38, %s2431_s11 }
  0x90   : > { %v806_v4 = vpop.permute.xlu1 %805 }
  0x91   : > { %v723_v5 = vpop.permute.xlu0 %722 }
  0x92   : > { %1020 = vrot.lane.b32.xlu1 %v649_v3, %s2432_s14  ;;  %v1075_v23 = vsel %vm1073_vm3, %v2504_v2, %v723_v5  ;;  %v785_v2 = vrot.slane %v2674_v6, 1 }
  0x93   : > { %1018 = vrot.lane.b32.xlu0 %v637_v51, %s2432_s14  ;;  %v1108_v31 = vsel %vm1106_vm4, %v1075_v23, %v804_v0 }
  0x94   : > { %v843_v7 = vpop.permute.xlu1 %842  ;;  %v1141_v39 = vsel %vm1139_vm5, %v1108_v31, %v841_v61  ;;  %v787_v42 = vsel %vm754_vm0, %v785_v2, %v786_v33  ;;  %v792_v2 = vrot.slane %v2388_v14, 1 }
  0x95   : > { %v725_v10 = vpop.permute.xlu0 %724 }
  0x96   : > { %738 = vrot.lane.b32.xlu1 %v637_v51, %s2428_s8  ;;  %v1077_v29 = vsel %vm1073_vm3, %v2499_v1, %v725_v10  ;;  %v789_v10 = vrot.slane %v2386_v35, 1  ;;  %v2390_v35 = vld [vmem:[%s2496_s30 + $0xa4] ss:$0 sps:$4 sm:$0x11]  }
  0x97   : > { %1053 = vrot.lane.b32.xlu0 %v781_v56, %s2433_s23  ;;  %v1110_v1 = vsel %vm1106_vm4, %v1077_v29, %v806_v4  ;;  %v694_v46 = vshll.u32 %v2390_v35, 16 }
  0x98   : > { %v890_v15 = vpop.permute.xlu1 %889  ;;  %v1143_v44 = vsel %vm1139_vm5, %v1110_v1, %v843_v7  ;;  %v2732_v7 = vld [vmem:[%s2496_s30 + $0x90] sm:$0xff]  }
  0x99   : > { %v888_v17 = vpop.permute.xlu0 %887  ;;  %v1176_v54 = vsel %vm1172_vm6, %v1143_v44, %v890_v15  ;;  %v677_v15 = vshll.u32 %v2732_v7, 16  ;;  %v675_v19 = vshrl.u32 %v2732_v7, 16  ;;  %v791_v31 = vrot.slane %v2732_v7, 1 }
  0x9a   : > { %740 = vrot.lane.b32.xlu1 %v649_v3, %s2428_s8  ;;  %v1174_v41 = vsel %vm1172_vm6, %v1141_v39, %v888_v17  ;;  %v790_v17 = vsel %vm754_vm0, %v788_v9, %v789_v10 }
  0x9b   : > { %1055 = vrot.lane.b32.xlu0 %v784_v16, %s2433_s23  ;;  %v679_v20 = vrot.slane %v677_v15, 1  ;;  %v2392_v15 = vld [vmem:[%s2496_s30 + $0xb0] ss:$0 sps:$4 sm:$0x11]  }
  0x9c   : > { %v925_v21 = vpop.permute.xlu1 %924 }
  0x9d   : > { %v923_v22 = vpop.permute.xlu0 %922  ;;  %v680_v25 = vor.u32 %v679_v20, %v675_v19 }
  0x9e   : > { %821 = vrot.lane.b32.xlu1 %v784_v16, %s2427_s7  ;;  %v1207_v45 = vsel %vm1205_vm7, %v1174_v41, %v923_v22 }
  0x9f   : > { %819 = vrot.lane.b32.xlu0 %v781_v56, %s2427_s7  ;;  %v1209_v56 = vsel %vm1205_vm7, %v1176_v54, %v925_v21  ;;  %v682_v21 = vshll.u32 %v2388_v14, 16 }
  0xa0   : > { %v962_v28 = vpop.permute.xlu1 %961 }
  0xa1   : > { %v960_v30 = vpop.permute.xlu0 %959  ;;  %v1242_v59 = vsel %vm1238_vm8, %v1209_v56, %v962_v28  ;;  %v684_v26 = vrot.slane %v682_v21, 1  ;;  %v2746_v28 = vld [vmem:[%s2496_s30 + $0x9c] sm:$0xff]  }
  0xa2   : > { %858 = vrot.lane.b32.xlu1 %v2674_v6, %s2426_s6  ;;  %v1240_v49 = vsel %vm1238_vm8, %v1207_v45, %v960_v30  ;;  %v689_v36 = vshll.u32 %v2746_v28, 16  ;;  %v794_v10 = vrot.slane %v2746_v28, 1 }
  0xa3   : > { %856 = vrot.lane.b32.xlu0 %v2650_v50, %s2426_s6 }
  0xa4   : > { %v1009_v37 = vpop.permute.xlu1 %1008  ;;  %v691_v45 = vrot.slane %v689_v36, 1 }
  0xa5   : > { %v1007_v40 = vpop.permute.xlu0 %1006  ;;  %v1275_v62 = vsel %vm1271_vm9, %v1242_v59, %v1009_v37 }
  0xa6   : > { %905 = vrot.lane.b32.xlu1 %v661_v34, %s2429_s9  ;;  %v1273_v52 = vsel %vm1271_vm9, %v1240_v49, %v1007_v40 }
  0xa7   : > { %903 = vrot.lane.b32.xlu0 %v649_v3, %s2429_s9  ;;  %v673_v3 = vsel %vm529_vm1, %v668_v57, %v672_v58  ;;  %v696_v58 = vrot.slane %v694_v46, 1 }
  0xa8   : > { %v727_v51 = vpop.permute.xlu1 %726 }
  0xa9   : > { %v1042_v53 = vpop.permute.xlu0 %1041  ;;  %v1079_v33 = vsel %vm1073_vm3, %v2513_v12, %v727_v51  ;;  %v793_v12 = vsel %vm754_vm0, %v791_v31, %v792_v2 }
  0xaa   : > { %940 = vrot.lane.b32.xlu1 %v787_v42, %s2430_s10  ;;  %v1306_v55 = vsel %vm1304_vm10, %v1273_v52, %v1042_v53 }
  0xab   : > { %938 = vrot.lane.b32.xlu0 %v784_v16, %s2430_s10  ;;  %2286 = vmatprep.mubr.msk.bf16.mxu0 %vm1357_vm11, %v1306_v55 }
  0xac   : > { %v729_v61 = vpop.permute.xlu1 %728 }
  0xad   : > { %v1044_v63 = vpop.permute.xlu0 %1043  ;;  %v1081_v43 = vsel %vm1073_vm3, %v2527_v32, %v729_v61 }
  0xae   : > { %v1308_v0 = vsel %vm1304_vm10, %v1275_v62, %v1044_v63  ;;  %977 = vrot.lane.b32.xlu1 %v2690_v27, %s2431_s11 }
  0xaf   : > { %975 = vrot.lane.b32.xlu0 %v2674_v6, %s2431_s11  ;;  %2287 = vmatmul.mubr.msk.bf16.vlgmr.msra.gmra.mrb[0].mxu0 %vm1357_vm11, %v1308_v0 }
  0xb0   : > { %v810_v4 = vpop.permute.xlu1 %809 }
  0xb1   : > { %v808_v5 = vpop.permute.xlu0 %807  ;;  %v1114_v48 = vsel %vm1106_vm4, %v1081_v43, %v810_v4 }
  0xb2   : > { %1024 = vrot.lane.b32.xlu1 %v673_v3, %s2432_s14  ;;  %v1112_v1 = vsel %vm1106_vm4, %v1079_v33, %v808_v5 }
  0xb3   : > { %1022 = vrot.lane.b32.xlu0 %v661_v34, %s2432_s14 }
  0xb4   : > { %v847_v8 = vpop.permute.xlu1 %846 }
  0xb5   : > { %v845_v11 = vpop.permute.xlu0 %844  ;;  %v1147_v52 = vsel %vm1139_vm5, %v1114_v48, %v847_v8  ;;  %v2790_v8 = vld [vmem:[%s2496_s30 + $0xa8] sm:$0xff]  }
  0xb6   : > { %742 = vrot.lane.b32.xlu1 %v661_v34, %s2428_s8  ;;  %v685_v34 = vsel %vm529_vm1, %v680_v25, %v684_v26  ;;  %v1145_v39 = vsel %vm1139_vm5, %v1112_v1, %v845_v11  ;;  %v795_v11 = vrot.slane %v2390_v35, 1  ;;  %v699_v20 = vshrl.u32 %v2790_v8, 16  ;;  %v2394_v1 = vld [vmem:[%s2496_s30 + $0xbc] ss:$0 sps:$4 sm:$0x11]  }
  0xb7   : > { %1057 = vrot.lane.b32.xlu0 %v787_v42, %s2433_s23  ;;  %v797_v33 = vrot.slane %v2790_v8, 1  ;;  %v718_v48 = vshll.u32 %v2394_v1, 16 }
  0xb8   : > { %v894_v16 = vpop.permute.xlu1 %893 }
  0xb9   : > { %v892_v18 = vpop.permute.xlu0 %891  ;;  %v1180_v55 = vsel %vm1172_vm6, %v1147_v52, %v894_v16  ;;  %v701_v16 = vshll.u32 %v2790_v8, 16 }
  0xba   : > { %744 = vrot.lane.b32.xlu1 %v673_v3, %s2428_s8  ;;  %v1178_v41 = vsel %vm1172_vm6, %v1145_v39, %v892_v18  ;;  %v796_v18 = vsel %vm754_vm0, %v794_v10, %v795_v11 }
  0xbb   : > { %1059 = vrot.lane.b32.xlu0 %v790_v17, %s2433_s23  ;;  %v703_v21 = vrot.slane %v701_v16, 1  ;;  %v2396_v16 = vld [vmem:[%s2496_s30 + $0xc8] ss:$0 sps:$4 sm:$0x11]  }
  0xbc   : > { %v929_v22 = vpop.permute.xlu1 %928 }
  0xbd   : > { %v927_v23 = vpop.permute.xlu0 %926  ;;  %v1213_v56 = vsel %vm1205_vm7, %v1180_v55, %v929_v22  ;;  %v706_v22 = vshll.u32 %v2392_v15, 16  ;;  %v704_v26 = vor.u32 %v703_v21, %v699_v20 }
  0xbe   : > { %825 = vrot.lane.b32.xlu1 %v790_v17, %s2427_s7  ;;  %v1211_v44 = vsel %vm1205_vm7, %v1178_v41, %v927_v23 }
  0xbf   : > { %823 = vrot.lane.b32.xlu0 %v787_v42, %s2427_s7  ;;  %v687_v42 = vshrl.u32 %v2746_v28, 16 }
  0xc0   : > { %v966_v29 = vpop.permute.xlu1 %965 }
  0xc1   : > { %v964_v30 = vpop.permute.xlu0 %963  ;;  %v692_v57 = vor.u32 %v691_v45, %v687_v42  ;;  %v1246_v59 = vsel %vm1238_vm8, %v1213_v56, %v966_v29  ;;  %v708_v29 = vrot.slane %v706_v22, 1 }
  0xc2   : > { %862 = vrot.lane.b32.xlu1 %v2732_v7, %s2426_s6  ;;  %v1244_v49 = vsel %vm1238_vm8, %v1211_v44, %v964_v30  ;;  %v2804_v30 = vld [vmem:[%s2496_s30 + $0xb4] sm:$0xff]  }
  0xc3   : > { %860 = vrot.lane.b32.xlu0 %v2690_v27, %s2426_s6  ;;  %v709_v36 = vsel %vm529_vm1, %v704_v26, %v708_v29  ;;  %v711_v43 = vshrl.u32 %v2804_v30, 16  ;;  %v800_v11 = vrot.slane %v2804_v30, 1 }
  0xc4   : > { %v1013_v37 = vpop.permute.xlu1 %1012 }
  0xc5   : > { %v1011_v40 = vpop.permute.xlu0 %1010  ;;  %v1279_v62 = vsel %vm1271_vm9, %v1246_v59, %v1013_v37  ;;  %v713_v37 = vshll.u32 %v2804_v30, 16 }
  0xc6   : > { %909 = vrot.lane.b32.xlu1 %v685_v34, %s2429_s9  ;;  %v1277_v53 = vsel %vm1271_vm9, %v1244_v49, %v1011_v40 }
  0xc7   : > { %907 = vrot.lane.b32.xlu0 %v673_v3, %s2429_s9  ;;  %v697_v3 = vsel %vm529_vm1, %v692_v57, %v696_v58  ;;  %v715_v46 = vrot.slane %v713_v37, 1  ;;  %v720_v58 = vrot.slane %v718_v48, 1 }
  0xc8   : > { %v731_v51 = vpop.permute.xlu1 %730 }
  0xc9   : > { %v1046_v54 = vpop.permute.xlu0 %1045  ;;  %v1083_v35 = vsel %vm1073_vm3, %v2554_v47, %v731_v51  ;;  %v716_v57 = vor.u32 %v715_v46, %v711_v43 }
  0xca   : > { %v1310_v32 = vsel %vm1304_vm10, %v1277_v53, %v1046_v54  ;;  %944 = vrot.lane.b32.xlu1 %v793_v12, %s2430_s10 }
  0xcb   : > { %942 = vrot.lane.b32.xlu0 %v790_v17, %s2430_s10  ;;  %2290 = vmatprep.mubr.msk.bf16.mxu0 %vm1357_vm11, %v1310_v32 }
  0xcc   : > { %v733_v61 = vpop.permute.xlu1 %732 }
  0xcd   : > { %v1048_v63 = vpop.permute.xlu0 %1047  ;;  %v1085_v44 = vsel %vm1073_vm3, %v2573_v60, %v733_v61 }
  0xce   : > { %v1312_v0 = vsel %vm1304_vm10, %v1279_v62, %v1048_v63  ;;  %981 = vrot.lane.b32.xlu1 %v2746_v28, %s2431_s11 }
  0xcf   : > { %979 = vrot.lane.b32.xlu0 %v2732_v7, %s2431_s11  ;;  %2291 = vmatmul.mubr.msk.bf16.gmra.mrb[4].mxu0 %vm1357_vm11, %v1312_v0 }
  0xd0   : > { %v814_v4 = vpop.permute.xlu1 %813 }
  0xd1   : > { %v812_v5 = vpop.permute.xlu0 %811  ;;  %v1118_v49 = vsel %vm1106_vm4, %v1085_v44, %v814_v4 }
  0xd2   : > { %1028 = vrot.lane.b32.xlu1 %v697_v3, %s2432_s14  ;;  %v1116_v39 = vsel %vm1106_vm4, %v1083_v35, %v812_v5 }
  0xd3   : > { %1026 = vrot.lane.b32.xlu0 %v685_v34, %s2432_s14 }
  0xd4   : > { %v851_v9 = vpop.permute.xlu1 %850 }
  0xd5   : > { %v849_v14 = vpop.permute.xlu0 %848  ;;  %v1151_v53 = vsel %vm1139_vm5, %v1118_v49, %v851_v9  ;;  %v2848_v9 = vld [vmem:[%s2496_s30 + $0xc0] sm:$0xff]  }
  0xd6   : > { %746 = vrot.lane.b32.xlu1 %v685_v34, %s2428_s8  ;;  %v798_v34 = vrot.slane %v2392_v15, 1  ;;  %v1149_v41 = vsel %vm1139_vm5, %v1116_v39, %v849_v14  ;;  %v801_v14 = vrot.slane %v2394_v1, 1  ;;  %v876_v21 = vshrl.u32 %v2848_v9, 16  ;;  %v2398_v39 = vld [vmem:[%s2496_s30 + $0xd4] ss:$0 sps:$4 sm:$0x11]  }
  0xd7   : > { %1061 = vrot.lane.b32.xlu0 %v793_v12, %s2433_s23  ;;  %v919_v35 = vrot.slane %v2848_v9, 1  ;;  %v1002_v49 = vshll.u32 %v2398_v39, 16 }
  0xd8   : > { %v898_v17 = vpop.permute.xlu1 %897  ;;  %v799_v47 = vsel %vm754_vm0, %v797_v33, %v798_v34 }
  0xd9   : > { %v896_v19 = vpop.permute.xlu0 %895  ;;  %v1184_v32 = vsel %vm1172_vm6, %v1151_v53, %v898_v17  ;;  %v878_v17 = vshll.u32 %v2848_v9, 16 }
  0xda   : > { %748 = vrot.lane.b32.xlu1 %v697_v3, %s2428_s8  ;;  %v1182_v42 = vsel %vm1172_vm6, %v1149_v41, %v896_v19  ;;  %v802_v19 = vsel %vm754_vm0, %v800_v11, %v801_v14 }
  0xdb   : > { %1063 = vrot.lane.b32.xlu0 %v796_v18, %s2433_s23  ;;  %v880_v22 = vrot.slane %v878_v17, 1 }
  0xdc   : > { %v933_v23 = vpop.permute.xlu1 %932 }
  0xdd   : > { %v931_v25 = vpop.permute.xlu0 %930  ;;  %v1217_v56 = vsel %vm1205_vm7, %v1184_v32, %v933_v23  ;;  %v883_v23 = vshll.u32 %v2396_v16, 16  ;;  %v881_v29 = vor.u32 %v880_v22, %v876_v21 }
  0xde   : > { %829 = vrot.lane.b32.xlu1 %v796_v18, %s2427_s7  ;;  %v1215_v45 = vsel %vm1205_vm7, %v1182_v42, %v931_v25 }
  0xdf   : > { %827 = vrot.lane.b32.xlu0 %v793_v12, %s2427_s7 }
  0xe0   : > { %v970_v31 = vpop.permute.xlu1 %969 }
  0xe1   : > { %v968_v2 = vpop.permute.xlu0 %967  ;;  %v1250_v59 = vsel %vm1238_vm8, %v1217_v56, %v970_v31  ;;  %v885_v31 = vrot.slane %v883_v23, 1 }
  0xe2   : > { %866 = vrot.lane.b32.xlu1 %v2790_v8, %s2426_s6  ;;  %v1248_v51 = vsel %vm1238_vm8, %v1215_v45, %v968_v2  ;;  %v2397_v2 = vld [vmem:[%s2496_s30 + $0xcc] sm:$0xff]  }
  0xe3   : > { %864 = vrot.lane.b32.xlu0 %v2746_v28, %s2426_s6  ;;  %v886_v37 = vsel %vm529_vm1, %v881_v29, %v885_v31 }
  0xe4   : > { %v1017_v40 = vpop.permute.xlu1 %1016 }
  0xe5   : > { %v1015_v12 = vpop.permute.xlu0 %1014  ;;  %v1283_v62 = vsel %vm1271_vm9, %v1250_v59, %v1017_v40  ;;  %v997_v40 = vshll.u32 %v2397_v2, 16 }
  0xe6   : > { %913 = vrot.lane.b32.xlu1 %v709_v36, %s2429_s9  ;;  %v1281_v54 = vsel %vm1271_vm9, %v1248_v51, %v1015_v12 }
  0xe7   : > { %911 = vrot.lane.b32.xlu0 %v697_v3, %s2429_s9  ;;  %v721_v3 = vsel %vm529_vm1, %v716_v57, %v720_v58  ;;  %v999_v48 = vrot.slane %v997_v40, 1  ;;  %v1004_v58 = vrot.slane %v1002_v49, 1 }
  0xe8   : > { %v735_v52 = vpop.permute.xlu1 %734 }
  0xe9   : > { %v1050_v55 = vpop.permute.xlu0 %1049  ;;  %v1087_v1 = vsel %vm1073_vm3, %v2598_v13, %v735_v52  ;;  %v995_v13 = vshrl.u32 %v2397_v2, 16 }
  0xea   : > { %v1314_v60 = vsel %vm1304_vm10, %v1281_v54, %v1050_v55  ;;  %948 = vrot.lane.b32.xlu1 %v799_v47, %s2430_s10 }
  0xeb   : > { %946 = vrot.lane.b32.xlu0 %v796_v18, %s2430_s10  ;;  %2294 = vmatprep.mubr.msk.bf16.mxu0 %vm1357_vm11, %v1314_v60  ;;  %v1000_v57 = vor.u32 %v999_v48, %v995_v13 }
  0xec   : > { %v737_v61 = vpop.permute.xlu1 %736 }
  0xed   : > { %v1052_v63 = vpop.permute.xlu0 %1051  ;;  %v1089_v45 = vsel %vm1073_vm3, %v2612_v24, %v737_v61 }
  0xee   : > { %v1316_v0 = vsel %vm1304_vm10, %v1283_v62, %v1052_v63  ;;  %985 = vrot.lane.b32.xlu1 %v2804_v30, %s2431_s11 }
  0xef   : > { %983 = vrot.lane.b32.xlu0 %v2790_v8, %s2431_s11  ;;  %2295 = vmatmul.mubr.msk.bf16.gmra.mrb[8].mxu0 %vm1357_vm11, %v1316_v0 }
  0xf0   : > { %v818_v4 = vpop.permute.xlu1 %817 }
  0xf1   : > { %v816_v5 = vpop.permute.xlu0 %815  ;;  %v1122_v51 = vsel %vm1106_vm4, %v1089_v45, %v818_v4  ;;  %v1038_v4 = vrot.slane %v2397_v2, 1 }
  0xf2   : > { %1032 = vrot.lane.b32.xlu1 %v721_v3, %s2432_s14  ;;  %v1120_v41 = vsel %vm1106_vm4, %v1087_v1, %v816_v5  ;;  %v1039_v5 = vrot.slane %v2398_v39, 1 }
  0xf3   : > { %1030 = vrot.lane.b32.xlu0 %v709_v36, %s2432_s14 }
  0xf4   : > { %v855_v10 = vpop.permute.xlu1 %854  ;;  %v1040_v14 = vsel %vm754_vm0, %v1038_v4, %v1039_v5 }
  0xf5   : > { %v853_v15 = vpop.permute.xlu0 %852  ;;  %v1155_v54 = vsel %vm1139_vm5, %v1122_v51, %v855_v10 }
  0xf6   : > { %750 = vrot.lane.b32.xlu1 %v709_v36, %s2428_s8  ;;  %v920_v36 = vrot.slane %v2396_v16, 1  ;;  %v1153_v42 = vsel %vm1139_vm5, %v1120_v41, %v853_v15 }
  0xf7   : > { %1065 = vrot.lane.b32.xlu0 %v799_v47, %s2433_s23 }
  0xf8   : > { %v902_v18 = vpop.permute.xlu1 %901  ;;  %v921_v44 = vsel %vm754_vm0, %v919_v35, %v920_v36 }
  0xf9   : > { %v900_v20 = vpop.permute.xlu0 %899  ;;  %v1188_v60 = vsel %vm1172_vm6, %v1155_v54, %v902_v18 }
  0xfa   : > { %752 = vrot.lane.b32.xlu1 %v721_v3, %s2428_s8  ;;  %v1186_v43 = vsel %vm1172_vm6, %v1153_v42, %v900_v20 }
  0xfb   : > { %1067 = vrot.lane.b32.xlu0 %v802_v19, %s2433_s23 }
  0xfc   : > { %v937_v25 = vpop.permute.xlu1 %936 }
  0xfd   : > { %v935_v26 = vpop.permute.xlu0 %934  ;;  %v1221_v56 = vsel %vm1205_vm7, %v1188_v60, %v937_v25 }
  0xfe   : > { %833 = vrot.lane.b32.xlu1 %v802_v19, %s2427_s7  ;;  %v1219_v46 = vsel %vm1205_vm7, %v1186_v43, %v935_v26 }
  0xff   : > { %831 = vrot.lane.b32.xlu0 %v799_v47, %s2427_s7 }
 0x100   : > { %v974_v33 = vpop.permute.xlu1 %973 }
 0x101   : > { %v972_v34 = vpop.permute.xlu0 %971  ;;  %v1254_v59 = vsel %vm1238_vm8, %v1221_v56, %v974_v33 }
 0x102   : > { %870 = vrot.lane.b32.xlu1 %v2848_v9, %s2426_s6  ;;  %v1252_v52 = vsel %vm1238_vm8, %v1219_v46, %v972_v34 }
 0x103   : > { %868 = vrot.lane.b32.xlu0 %v2804_v30, %s2426_s6 }
 0x104   : > { %v1021_v12 = vpop.permute.xlu1 %1020 }
 0x105   : > { %v1019_v47 = vpop.permute.xlu0 %1018  ;;  %v1287_v62 = vsel %vm1271_vm9, %v1254_v59, %v1021_v12 }
 0x106   : > { %917 = vrot.lane.b32.xlu1 %v886_v37, %s2429_s9  ;;  %v1285_v55 = vsel %vm1271_vm9, %v1252_v52, %v1019_v47 }
 0x107   : > { %915 = vrot.lane.b32.xlu0 %v721_v3, %s2429_s9  ;;  %v1005_v3 = vsel %vm529_vm1, %v1000_v57, %v1004_v58 }
 0x108   : > { %v739_v53 = vpop.permute.xlu1 %738 }
 0x109   : > { %v1054_v32 = vpop.permute.xlu0 %1053  ;;  %v1091_v22 = vsel %vm1073_vm3, %v2636_v38, %v739_v53 }
 0x10a   : > { %v1318_v24 = vsel %vm1304_vm10, %v1285_v55, %v1054_v32  ;;  %952 = vrot.lane.b32.xlu1 %v921_v44, %s2430_s10 }
 0x10b   : > { %950 = vrot.lane.b32.xlu0 %v802_v19, %s2430_s10  ;;  %2298 = vmatprep.mubr.msk.bf16.mxu0 %vm1357_vm11, %v1318_v24 }
 0x10c   : > { %v741_v61 = vpop.permute.xlu1 %740 }
 0x10d   : > { %v1056_v63 = vpop.permute.xlu0 %1055 }
 0x10e   : > { %v1320_v0 = vsel %vm1304_vm10, %v1287_v62, %v1056_v63  ;;  %989 = vrot.lane.b32.xlu1 %v2397_v2, %s2431_s11  ;;  %v1093_v2 = vsel %vm1073_vm3, %v2650_v50, %v741_v61 }
 0x10f   : > { %987 = vrot.lane.b32.xlu0 %v2848_v9, %s2431_s11  ;;  %2299 = vmatmul.mubr.msk.bf16.gmra.mrb[12].mxu0 %vm1357_vm11, %v1320_v0 }
 0x110   : > { %v822_v10 = vpop.permute.xlu1 %821 }
 0x111   : > { %v820_v11 = vpop.permute.xlu0 %819  ;;  %v1126_v34 = vsel %vm1106_vm4, %v1093_v2, %v822_v10 }
 0x112   : > { %1036 = vrot.lane.b32.xlu1 %v1005_v3, %s2432_s14  ;;  %v1124_v23 = vsel %vm1106_vm4, %v1091_v22, %v820_v11 }
 0x113   : > { %1034 = vrot.lane.b32.xlu0 %v886_v37, %s2432_s14 }
 0x114   : > { %v859_v15 = vpop.permute.xlu1 %858 }
 0x115   : > { %v857_v16 = vpop.permute.xlu0 %856  ;;  %v1159_v38 = vsel %vm1139_vm5, %v1126_v34, %v859_v15 }
 0x116   : > { %1071 = vrot.lane.b32.xlu1 %v1040_v14, %s2433_s23  ;;  %v1157_v26 = vsel %vm1139_vm5, %v1124_v23, %v857_v16 }
 0x117   : > { %1069 = vrot.lane.b32.xlu0 %v921_v44, %s2433_s23 }
 0x118   : > { %v906_v9 = vpop.permute.xlu1 %905 }
 0x119   : > { %v904_v17 = vpop.permute.xlu0 %903  ;;  %v1192_v39 = vsel %vm1172_vm6, %v1159_v38, %v906_v9 }
 0x11a   : > { %v1190_v31 = vsel %vm1172_vm6, %v1157_v26, %v904_v17 }
 0x11c   : > { %v941_v18 = vpop.permute.xlu1 %940 }
 0x11d   : > { %v939_v19 = vpop.permute.xlu0 %938  ;;  %v1225_v41 = vsel %vm1205_vm7, %v1192_v39, %v941_v18 }
 0x11e   : > { %v1223_v33 = vsel %vm1205_vm7, %v1190_v31, %v939_v19 }
 0x120   : > { %v978_v20 = vpop.permute.xlu1 %977 }
 0x121   : > { %v976_v21 = vpop.permute.xlu0 %975  ;;  %v1258_v50 = vsel %vm1238_vm8, %v1225_v41, %v978_v20 }
 0x122   : > { %v1256_v35 = vsel %vm1238_vm8, %v1223_v33, %v976_v21 }
 0x124   : > { %v1025_v25 = vpop.permute.xlu1 %1024 }
 0x125   : > { %v1023_v29 = vpop.permute.xlu0 %1022  ;;  %v1291_v42 = vsel %vm1271_vm9, %v1258_v50, %v1025_v25 }
 0x126   : > { %v1289_v1 = vsel %vm1271_vm9, %v1256_v35, %v1023_v29 }
 0x128   : > { %v743_v36 = vpop.permute.xlu1 %742 }
 0x129   : > { %v1058_v37 = vpop.permute.xlu0 %1057  ;;  %v1095_v55 = vsel %vm1073_vm3, %v2674_v6, %v743_v36 }
 0x12a   : > { %v1322_v40 = vsel %vm1304_vm10, %v1289_v1, %v1058_v37 }
 0x12b   : > { %2302 = vmatprep.mubr.msk.bf16.mxu1 %vm1357_vm11, %v1322_v40 }
 0x12c   : > { %v745_v12 = vpop.permute.xlu1 %744 }
 0x12d   : > { %v1060_v47 = vpop.permute.xlu0 %1059  ;;  %v1097_v58 = vsel %vm1073_vm3, %v2690_v27, %v745_v12 }
 0x12e   : > { %v1324_v43 = vsel %vm1304_vm10, %v1291_v42, %v1060_v47 }
 0x12f   : > { %2303 = vmatmul.mubr.msk.bf16.vlgmr.msra.gmra.mrb[0].mxu1 %vm1357_vm11, %v1324_v43 }
 0x130   : > { %v826_v44 = vpop.permute.xlu1 %825 }
 0x131   : > { %v824_v13 = vpop.permute.xlu0 %823  ;;  %v1130_v61 = vsel %vm1106_vm4, %v1097_v58, %v826_v44 }
 0x132   : > { %v1128_v32 = vsel %vm1106_vm4, %v1095_v55, %v824_v13 }
 0x134   : > { %v863_v45 = vpop.permute.xlu1 %862 }
 0x135   : > { %v861_v46 = vpop.permute.xlu0 %860  ;;  %v1163_v6 = vsel %vm1139_vm5, %v1130_v61, %v863_v45 }
 0x136   : > { %v1161_v24 = vsel %vm1139_vm5, %v1128_v32, %v861_v46 }
 0x138   : > { %v910_v48 = vpop.permute.xlu1 %909 }
 0x139   : > { %v908_v49 = vpop.permute.xlu0 %907  ;;  %v1196_v4 = vsel %vm1172_vm6, %v1163_v6, %v910_v48 }
 0x13a   : > { %v1194_v57 = vsel %vm1172_vm6, %v1161_v24, %v908_v49 }
 0x13c   : > { %v945_v51 = vpop.permute.xlu1 %944 }
 0x13d   : > { %v943_v52 = vpop.permute.xlu0 %942  ;;  %v1229_v10 = vsel %vm1205_vm7, %v1196_v4, %v945_v51 }
 0x13e   : > { %v1227_v59 = vsel %vm1205_vm7, %v1194_v57, %v943_v52 }
 0x140   : > { %v982_v53 = vpop.permute.xlu1 %981 }
 0x141   : > { %v980_v54 = vpop.permute.xlu0 %979  ;;  %v1262_v27 = vsel %vm1238_vm8, %v1229_v10, %v982_v53 }
 0x142   : > { %v1260_v62 = vsel %vm1238_vm8, %v1227_v59, %v980_v54 }
 0x144   : > { %v1029_v60 = vpop.permute.xlu1 %1028 }
 0x145   : > { %v1027_v56 = vpop.permute.xlu0 %1026  ;;  %v1295_v14 = vsel %vm1271_vm9, %v1262_v27, %v1029_v60 }
 0x146   : > { %v1293_v0 = vsel %vm1271_vm9, %v1260_v62, %v1027_v56 }
 0x148   : > { %v747_v63 = vpop.permute.xlu1 %746 }
 0x149   : > { %v1062_v3 = vpop.permute.xlu0 %1061  ;;  %v1099_v29 = vsel %vm1073_vm3, %v2732_v7, %v747_v63 }
 0x14a   : > { %v1326_v5 = vsel %vm1304_vm10, %v1293_v0, %v1062_v3 }
 0x14b   : > { %2306 = vmatprep.mubr.msk.bf16.mxu1 %vm1357_vm11, %v1326_v5 }
 0x14c   : > { %v749_v11 = vpop.permute.xlu1 %748 }
 0x14d   : > { %v1064_v15 = vpop.permute.xlu0 %1063  ;;  %v1101_v36 = vsel %vm1073_vm3, %v2746_v28, %v749_v11 }
 0x14e   : > { %v1328_v16 = vsel %vm1304_vm10, %v1295_v14, %v1064_v15 }
 0x14f   : > { %2307 = vmatmul.mubr.msk.bf16.gmra.mrb[4].mxu1 %vm1357_vm11, %v1328_v16 }
 0x150   : > { %v830_v9 = vpop.permute.xlu1 %829 }
 0x151   : > { %v828_v17 = vpop.permute.xlu0 %827  ;;  %v1134_v1 = vsel %vm1106_vm4, %v1101_v36, %v830_v9 }
 0x152   : > { %v1132_v31 = vsel %vm1106_vm4, %v1099_v29, %v828_v17 }
 0x154   : > { %v867_v18 = vpop.permute.xlu1 %866 }
 0x155   : > { %v865_v19 = vpop.permute.xlu0 %864  ;;  %v1167_v7 = vsel %vm1139_vm5, %v1134_v1, %v867_v18 }
 0x156   : > { %v1165_v33 = vsel %vm1139_vm5, %v1132_v31, %v865_v19 }
 0x158   : > { %v914_v20 = vpop.permute.xlu1 %913 }
 0x159   : > { %v912_v21 = vpop.permute.xlu0 %911  ;;  %v1200_v50 = vsel %vm1172_vm6, %v1167_v7, %v914_v20 }
 0x15a   : > { %v1198_v35 = vsel %vm1172_vm6, %v1165_v33, %v912_v21 }
 0x15c   : > { %v949_v22 = vpop.permute.xlu1 %948 }
 0x15d   : > { %v947_v23 = vpop.permute.xlu0 %946  ;;  %v1233_v42 = vsel %vm1205_vm7, %v1200_v50, %v949_v22 }
 0x15e   : > { %v1231_v38 = vsel %vm1205_vm7, %v1198_v35, %v947_v23 }
 0x160   : > { %v986_v25 = vpop.permute.xlu1 %985 }
 0x161   : > { %v984_v26 = vpop.permute.xlu0 %983  ;;  %v1266_v28 = vsel %vm1238_vm8, %v1233_v42, %v986_v25 }
 0x162   : > { %v1264_v37 = vsel %vm1238_vm8, %v1231_v38, %v984_v26 }
 0x164   : > { %v1033_v2 = vpop.permute.xlu1 %1032 }
 0x165   : > { %v1031_v34 = vpop.permute.xlu0 %1030  ;;  %v1299_v43 = vsel %vm1271_vm9, %v1266_v28, %v1033_v2 }
 0x166   : > { %v1297_v40 = vsel %vm1271_vm9, %v1264_v37, %v1031_v34 }
 0x168   : > { %v751_v39 = vpop.permute.xlu1 %750 }
 0x169   : > { %v1066_v41 = vpop.permute.xlu0 %1065  ;;  %v1103_v32 = vsel %vm1073_vm3, %v2790_v8, %v751_v39 }
 0x16a   : > { %v1330_v12 = vsel %vm1304_vm10, %v1297_v40, %v1066_v41 }
 0x16b   : > { %2310 = vmatprep.mubr.msk.bf16.mxu1 %vm1357_vm11, %v1330_v12 }
 0x16c   : > { %v753_v47 = vpop.permute.xlu1 %752 }
 0x16d   : > { %v1068_v44 = vpop.permute.xlu0 %1067  ;;  %v1105_v60 = vsel %vm1073_vm3, %v2804_v30, %v753_v47 }
 0x16e   : > { %v1332_v13 = vsel %vm1304_vm10, %v1299_v43, %v1068_v44 }
 0x16f   : > { %2311 = vmatmul.mubr.msk.bf16.gmra.mrb[8].mxu1 %vm1357_vm11, %v1332_v13 }
 0x170   : > { %v834_v45 = vpop.permute.xlu1 %833 }
 0x171   : > { %v832_v46 = vpop.permute.xlu0 %831  ;;  %v1138_v56 = vsel %vm1106_vm4, %v1105_v60, %v834_v45 }
 0x172   : > { %v1136_v57 = vsel %vm1106_vm4, %v1103_v32, %v832_v46 }
 0x174   : > { %v871_v48 = vpop.permute.xlu1 %870 }
 0x175   : > { %v869_v49 = vpop.permute.xlu0 %868  ;;  %v1171_v59 = vsel %vm1139_vm5, %v1138_v56, %v871_v48 }
 0x176   : > { %v1169_v61 = vsel %vm1139_vm5, %v1136_v57, %v869_v49 }
 0x178   : > { %v918_v51 = vpop.permute.xlu1 %917 }
 0x179   : > { %v916_v52 = vpop.permute.xlu0 %915  ;;  %v1204_v63 = vsel %vm1172_vm6, %v1171_v59, %v918_v51 }
 0x17a   : > { %v1202_v6 = vsel %vm1172_vm6, %v1169_v61, %v916_v52 }
 0x17c   : > { %v953_v53 = vpop.permute.xlu1 %952 }
 0x17d   : > { %v951_v54 = vpop.permute.xlu0 %950  ;;  %v1237_v30 = vsel %vm1205_vm7, %v1204_v63, %v953_v53 }
 0x17e   : > { %v1235_v3 = vsel %vm1205_vm7, %v1202_v6, %v951_v54 }
 0x180   : > { %v990_v55 = vpop.permute.xlu1 %989 }
 0x181   : > { %v988_v24 = vpop.permute.xlu0 %987  ;;  %v1270_v16 = vsel %vm1238_vm8, %v1237_v30, %v990_v55 }
 0x182   : > { %v2288_v58 = vpop.f32.mrb[0].mxu0  ;;  %v1268_v9 = vsel %vm1238_vm8, %v1235_v3, %v988_v24 }
 0x183   : > { %v1428_v62 = vpop.f32.mrb[1].mxu0  ;;  %v1598_v17 = vmul.f32 %v2288_v58, %v2288_v58 }
 0x184   : > { %v2289_v8 = vpop.f32.mrb[2].mxu0  ;;  %v1037_v0 = vpop.permute.xlu1 %1036  ;;  %v1596_v27 = vmul.f32 %v1428_v62, %v1428_v62 }
 0x185   : > { %v2174_v4 = vpack.c.bf16 %v2289_v8, %v2288_v58  ;;  %v1431_v5 = vpop.f32.mrb[3].mxu0  ;;  %v1035_v10 = vpop.permute.xlu0 %1034  ;;  %v1303_v18 = vsel %vm1271_vm9, %v1270_v16, %v1037_v0  ;;  %v1599_v26 = vmul.f32 %v2289_v8, %v2289_v8 }
 0x186   : > { %v1556_v11 = vadd.f32 %v1431_v5, %v1428_v62  ;;  %v1597_v14 = vmul.f32 %v1431_v5, %v1431_v5  ;;  %v2169_v15 = vpack.c.bf16 %v1431_v5, %v1428_v62  ;;  %v1301_v22 = vsel %vm1271_vm9, %v1268_v9, %v1035_v10 }
 0x187   : > { %2246 = vst [vmem:[%s2491_s27 + $0x8] sm:$0xff] %v2174_v4  }
 0x188   : > { %v1557_v19 = vadd.f32 %v2288_v58, %v1556_v11  ;;  %v1628_v20 = vadd.f32 %v1597_v14, %v1596_v27  ;;  %2170 = vst [vmem:[%s2491_s27] sm:$0xff] %v2169_v15   ;;  %v1072_v21 = vpop.permute.xlu1 %1071 }
 0x189   : > { %v1336_v23 = vsel %vm1304_vm10, %v1303_v18, %v1072_v21  ;;  %v1070_v25 = vpop.permute.xlu0 %1069 }
 0x18a   : > { %v1629_v29 = vadd.f32 %v1628_v20, %v1598_v17  ;;  %v1334_v31 = vsel %vm1304_vm10, %v1301_v22, %v1070_v25  ;;  %v1558_v2 = vadd.f32 %v2289_v8, %v1557_v19 }
 0x18b   : > { %2314 = vmatprep.mubr.msk.bf16.mxu1 %vm1357_vm11, %v1334_v31 }
 0x18c   : > { %2315 = vmatmul.mubr.msk.bf16.gmra.mrb[12].mxu1 %vm1357_vm11, %v1336_v23  ;;  %v1630_v33 = vadd.f32 %v1629_v29, %v1599_v26 }
 0x1a2   : > { %v2292_v34 = vpop.f32.mrb[4].mxu0 }
 0x1a3   : > { %v1444_v35 = vpop.f32.mrb[5].mxu0  ;;  %v1602_v12 = vmul.f32 %v2292_v34, %v2292_v34 }
 0x1a4   : > { %v1559_v36 = vadd.f32 %v1558_v2, %v1444_v35  ;;  %v1600_v38 = vmul.f32 %v1444_v35, %v1444_v35  ;;  %v2293_v1 = vpop.f32.mrb[6].mxu0 }
 0x1a5   : > { %v2184_v37 = vpack.c.bf16 %v2293_v1, %v2292_v34  ;;  %v1447_v39 = vpop.f32.mrb[7].mxu0  ;;  %v1603_v47 = vmul.f32 %v2293_v1, %v2293_v1 }
 0x1a6   : > { %v1631_v7 = vadd.f32 %v1630_v33, %v1600_v38  ;;  %v1560_v40 = vadd.f32 %v1559_v36, %v1447_v39  ;;  %v1601_v41 = vmul.f32 %v1447_v39, %v1447_v39  ;;  %v2179_v50 = vpack.c.bf16 %v1447_v39, %v1444_v35 }
 0x1a7   : > { %2248 = vst [vmem:[%s2491_s27 + $0x18] sm:$0xff] %v2184_v37  }
 0x1a8   : > { %v1561_v42 = vadd.f32 %v2292_v34, %v1560_v40  ;;  %v1632_v28 = vadd.f32 %v1631_v7, %v1601_v41  ;;  %2247 = vst [vmem:[%s2491_s27 + $0x10] sm:$0xff] %v2179_v50  }
 0x1aa   : > { %v1633_v43 = vadd.f32 %v1632_v28, %v1602_v12  ;;  %v1562_v44 = vadd.f32 %v2293_v1, %v1561_v42 }
 0x1ac   : > { %v1634_v13 = vadd.f32 %v1633_v43, %v1603_v47 }
 0x1c2   : > { %v2296_v45 = vpop.f32.mrb[8].mxu0 }
 0x1c3   : > { %v1460_v46 = vpop.f32.mrb[9].mxu0  ;;  %v1606_v24 = vmul.f32 %v2296_v45, %v2296_v45 }
 0x1c4   : > { %v1563_v48 = vadd.f32 %v1562_v44, %v1460_v46  ;;  %v1604_v49 = vmul.f32 %v1460_v46, %v1460_v46  ;;  %v2297_v51 = vpop.f32.mrb[10].mxu0 }
 0x1c5   : > { %v2194_v52 = vpack.c.bf16 %v2297_v51, %v2296_v45  ;;  %v1463_v53 = vpop.f32.mrb[11].mxu0  ;;  %v1607_v58 = vmul.f32 %v2297_v51, %v2297_v51 }
 0x1c6   : > { %v1635_v54 = vadd.f32 %v1634_v13, %v1604_v49  ;;  %v1564_v55 = vadd.f32 %v1563_v48, %v1463_v53  ;;  %v1605_v32 = vmul.f32 %v1463_v53, %v1463_v53  ;;  %v2189_v60 = vpack.c.bf16 %v1463_v53, %v1460_v46 }
 0x1c7   : > { %2250 = vst [vmem:[%s2491_s27 + $0x28] sm:$0xff] %v2194_v52  }
 0x1c8   : > { %v1565_v56 = vadd.f32 %v2296_v45, %v1564_v55  ;;  %v1636_v57 = vadd.f32 %v1635_v54, %v1605_v32  ;;  %2249 = vst [vmem:[%s2491_s27 + $0x20] sm:$0xff] %v2189_v60  }
 0x1ca   : > { %v1637_v59 = vadd.f32 %v1636_v57, %v1606_v24  ;;  %v1566_v61 = vadd.f32 %v2297_v51, %v1565_v56 }
 0x1cc   : > { %v1638_v62 = vadd.f32 %v1637_v59, %v1607_v58 }
 0x1e2   : > { %v2300_v63 = vpop.f32.mrb[12].mxu0 }
 0x1e3   : > { %v1476_v6 = vpop.f32.mrb[13].mxu0  ;;  %v1610_v14 = vmul.f32 %v2300_v63, %v2300_v63 }
 0x1e4   : > { %v1567_v8 = vadd.f32 %v1566_v61, %v1476_v6  ;;  %v1608_v0 = vmul.f32 %v1476_v6, %v1476_v6  ;;  %v2301_v30 = vpop.f32.mrb[14].mxu0 }
 0x1e5   : > { %v2204_v3 = vpack.c.bf16 %v2301_v30, %v2300_v63  ;;  %v1479_v4 = vpop.f32.mrb[15].mxu0  ;;  %v1611_v9 = vmul.f32 %v2301_v30, %v2301_v30 }
 0x1e6   : > { %v1639_v5 = vadd.f32 %v1638_v62, %v1608_v0  ;;  %v1568_v10 = vadd.f32 %v1567_v8, %v1479_v4  ;;  %v1609_v27 = vmul.f32 %v1479_v4, %v1479_v4  ;;  %v2199_v11 = vpack.c.bf16 %v1479_v4, %v1476_v6 }
 0x1e7   : > { %2252 = vst [vmem:[%s2491_s27 + $0x38] sm:$0xff] %v2204_v3  }
 0x1e8   : > { %v1569_v15 = vadd.f32 %v2300_v63, %v1568_v10  ;;  %v1640_v16 = vadd.f32 %v1639_v5, %v1609_v27  ;;  %2251 = vst [vmem:[%s2491_s27 + $0x30] sm:$0xff] %v2199_v11  }
 0x1ea   : > { %v1641_v17 = vadd.f32 %v1640_v16, %v1610_v14  ;;  %v1570_v18 = vadd.f32 %v2301_v30, %v1569_v15 }
 0x1ec   : > { %v1642_v19 = vadd.f32 %v1641_v17, %v1611_v9 }
 0x202   : > { %v2304_v20 = vpop.f32.mrb[0].mxu1 }
 0x203   : > { %v1492_v21 = vpop.f32.mrb[1].mxu1  ;;  %v1614_v35 = vmul.f32 %v2304_v20, %v2304_v20 }
 0x204   : > { %v1571_v22 = vadd.f32 %v1570_v18, %v1492_v21  ;;  %v1612_v23 = vmul.f32 %v1492_v21, %v1492_v21  ;;  %v2305_v25 = vpop.f32.mrb[2].mxu1 }
 0x205   : > { %v2214_v26 = vpack.c.bf16 %v2305_v25, %v2304_v20  ;;  %v1495_v29 = vpop.f32.mrb[3].mxu1  ;;  %v1615_v1 = vmul.f32 %v2305_v25, %v2305_v25 }
 0x206   : > { %v1643_v31 = vadd.f32 %v1642_v19, %v1612_v23  ;;  %v1572_v2 = vadd.f32 %v1571_v22, %v1495_v29  ;;  %v1613_v33 = vmul.f32 %v1495_v29, %v1495_v29  ;;  %v2209_v34 = vpack.c.bf16 %v1495_v29, %v1492_v21 }
 0x207   : > { %2254 = vst [vmem:[%s2491_s27 + $0x48] sm:$0xff] %v2214_v26  }
 0x208   : > { %v1573_v36 = vadd.f32 %v2304_v20, %v1572_v2  ;;  %v1644_v38 = vadd.f32 %v1643_v31, %v1613_v33  ;;  %2253 = vst [vmem:[%s2491_s27 + $0x40] sm:$0xff] %v2209_v34  }
 0x20a   : > { %v1645_v37 = vadd.f32 %v1644_v38, %v1614_v35  ;;  %v1574_v39 = vadd.f32 %v2305_v25, %v1573_v36 }
 0x20c   : > { %v1646_v7 = vadd.f32 %v1645_v37, %v1615_v1 }
 0x222   : > { %v2308_v40 = vpop.f32.mrb[4].mxu1 }
 0x223   : > { %v1508_v41 = vpop.f32.mrb[5].mxu1  ;;  %v1618_v46 = vmul.f32 %v2308_v40, %v2308_v40 }
 0x224   : > { %v1575_v50 = vadd.f32 %v1574_v39, %v1508_v41  ;;  %v1616_v12 = vmul.f32 %v1508_v41, %v1508_v41  ;;  %v2309_v42 = vpop.f32.mrb[6].mxu1 }
 0x225   : > { %v2224_v28 = vpack.c.bf16 %v2309_v42, %v2308_v40  ;;  %v1511_v47 = vpop.f32.mrb[7].mxu1  ;;  %v1619_v51 = vmul.f32 %v2309_v42, %v2309_v42 }
 0x226   : > { %v1647_v43 = vadd.f32 %v1646_v7, %v1616_v12  ;;  %v1576_v44 = vadd.f32 %v1575_v50, %v1511_v47  ;;  %v1617_v13 = vmul.f32 %v1511_v47, %v1511_v47  ;;  %v2219_v45 = vpack.c.bf16 %v1511_v47, %v1508_v41  ;;  %v1555_v7 = vld [vmem:[#allocation2] sm:$0x1]  ;;  %v1595_v50 = vld [vmem:[#allocation3] sm:$0x1] }
 0x227   : > { %2256 = vst [vmem:[%s2491_s27 + $0x58] sm:$0xff] %v2224_v28  }
 0x228   : > { %v1577_v48 = vadd.f32 %v2308_v40, %v1576_v44  ;;  %v1648_v49 = vadd.f32 %v1647_v43, %v1617_v13  ;;  %2255 = vst [vmem:[%s2491_s27 + $0x50] sm:$0xff] %v2219_v45  }
 0x22a   : > { %v1649_v52 = vadd.f32 %v1648_v49, %v1618_v46  ;;  %v1578_v53 = vadd.f32 %v2309_v42, %v1577_v48 }
 0x22c   : > { %v1650_v54 = vadd.f32 %v1649_v52, %v1619_v51  ;;  %v1844_v51 = vlaneseq (%p340_p6)  ;;  %v1836_v52 = vld [vmem:[%s3021_s2] sm:$0x1] (%p340_p6) }
 0x242   : > { %v2312_v55 = vpop.f32.mrb[8].mxu1 }
 0x243   : > { %v1524_v32 = vpop.f32.mrb[9].mxu1  ;;  %v1622_v6 = vmul.f32 %v2312_v55, %v2312_v55 }
 0x244   : > { %v1579_v60 = vadd.f32 %v1578_v53, %v1524_v32  ;;  %v1620_v24 = vmul.f32 %v1524_v32, %v1524_v32  ;;  %v2313_v56 = vpop.f32.mrb[10].mxu1  ;;  %v1845_v53 = vshrl.u32 (%p340_p6), %v1844_v51, 7 }
 0x245   : > { %v2234_v57 = vpack.c.bf16 %v2313_v56, %v2312_v55  ;;  %v1527_v58 = vpop.f32.mrb[11].mxu1  ;;  %v1623_v30 = vmul.f32 %v2313_v56, %v2313_v56 }
 0x246   : > { %v1651_v59 = vadd.f32 %v1650_v54, %v1620_v24  ;;  %v1580_v61 = vadd.f32 %v1579_v60, %v1527_v58  ;;  %v1621_v62 = vmul.f32 %v1527_v58, %v1527_v58  ;;  %v2229_v63 = vpack.c.bf16 %v1527_v58, %v1524_v32  ;;  %v1840_v32 = vld [vmem:[%s3022_s3] sm:$0x1] (%p340_p6) }
 0x247   : > { %2258 = vst [vmem:[%s2491_s27 + $0x68] sm:$0xff] %v2234_v57   ;;  %v1846_v24 = vsub.s32 (%p340_p6), 0, %v1845_v53 }
 0x248   : > { %v1581_v8 = vadd.f32 %v2312_v55, %v1580_v61  ;;  %v1652_v0 = vadd.f32 %v1651_v59, %v1621_v62  ;;  %2257 = vst [vmem:[%s2491_s27 + $0x60] sm:$0xff] %v2229_v63  }
 0x24a   : > { %v1653_v3 = vadd.f32 %v1652_v0, %v1622_v6  ;;  %v1582_v4 = vadd.f32 %v2313_v56, %v1581_v8 }
 0x24c   : > { %v1654_v5 = vadd.f32 %v1653_v3, %v1623_v30 }
 0x25f   : > { %v2316_v10 = vpop.f32.mrb[12].mxu1 }
 0x260   : > { %v1540_v27 = vpop.f32.mrb[13].mxu1  ;;  %v1626_v21 = vmul.f32 %v2316_v10, %v2316_v10 }
 0x261   : > { %v1583_v11 = vadd.f32 %v1582_v4, %v1540_v27  ;;  %v1624_v14 = vmul.f32 %v1540_v27, %v1540_v27  ;;  %v2317_v15 = vpop.f32.mrb[14].mxu1 }
 0x262   : > { %v2244_v16 = vpack.c.bf16 %v2317_v15, %v2316_v10  ;;  %v1543_v9 = vpop.f32.mrb[15].mxu1  ;;  %v1627_v25 = vmul.f32 %v2317_v15, %v2317_v15 }
 0x263   : > { %v1655_v17 = vadd.f32 %v1654_v5, %v1624_v14  ;;  %v1584_v18 = vadd.f32 %v1583_v11, %v1543_v9  ;;  %v1625_v19 = vmul.f32 %v1543_v9, %v1543_v9  ;;  %v2239_v20 = vpack.c.bf16 %v1543_v9, %v1540_v27 }
 0x264   : > { %2260 = vst [vmem:[%s2491_s27 + $0x78] sm:$0xff] %v2244_v16  }
 0x265   : > { %v1585_v22 = vadd.f32 %v2316_v10, %v1584_v18  ;;  %v1656_v23 = vadd.f32 %v1655_v17, %v1625_v19  ;;  %2259 = vst [vmem:[%s2491_s27 + $0x70] sm:$0xff] %v2239_v20  }
 0x267   : > { %v1586_v26 = vadd.f32 %v2317_v15, %v1585_v22  ;;  %v1657_v29 = vadd.f32 %v1656_v23, %v1626_v21 }
 0x269   : > { %v1587_v31 = vrot.slane %v1586_v26, 4  ;;  %v1658_v2 = vadd.f32 %v1657_v29, %v1627_v25 }
 0x26b   : > { %v1588_v33 = vadd.f32 %v1587_v31, %v1586_v26  ;;  %v1659_v34 = vrot.slane %v1658_v2, 4 }
 0x26d   : > { %v1589_v35 = vrot.slane %v1588_v33, 2  ;;  %v1660_v36 = vadd.f32 %v1659_v34, %v1658_v2 }
 0x26f   : > { %v1590_v38 = vadd.f32 %v1589_v35, %v1588_v33  ;;  %v1661_v1 = vrot.slane %v1660_v36, 2 }
 0x271   : > { %v1591_v37 = vrot.slane %v1590_v38, 1  ;;  %v1662_v39 = vadd.f32 %v1661_v1, %v1660_v36 }
 0x273   : > { %v1592_v40 = vadd.f32 %v1591_v37, %v1590_v38  ;;  %v1663_v41 = vrot.slane %v1662_v39, 1  ;;  %1828 = sbr.rel (!%p340_p6) target bundleno = 670 (0x29e), region = 44 }
 0x275   : > { %v1593_v12 = vadd.f32 %v1592_v40, %v1555_v7  ;;  %v1664_v42 = vadd.f32 %v1663_v41, %v1662_v39 }
 0x277   : > { %1594 = vst [vmem:[#allocation2] sm:$0x1] %v1593_v12  ;;  %v1665_v28 = vadd.f32 %v1664_v42, %v1595_v50 }
 0x279   : > { %1666 = vst [vmem:[#allocation3] sm:$0x1] %v1665_v28 }
 0x27e   : > { %v1829_v47 = vld [vmem:[#allocation2] sm:$0x1] }
 0x27f   : > { %v1830_v44 = vmul.f32 0.001953125, %v1829_v47 }
 0x280   : > { %v1831_v43 = vld [vmem:[#allocation3] sm:$0x1] }
 0x281   : > { %v1832_v13 = vmul.f32 0.001953125, %v1831_v43  ;;  %v1833_v45 = vmul.f32 %v1830_v44, %v1830_v44 }
 0x283   : > { %v1834_v46 = vsub.f32 %v1832_v13, %v1833_v45 }
 0x285   : > { %v1835_v48 = vmax.f32 %v1834_v46, 0.0 }
 0x287   : > { %v1837_v49 = vadd.f32 1e-05, %v1835_v48 }
 0x289   : > { %2399 = vrsqrt.f32 %v1837_v49 }
 0x293   : > { %v2400_v54 = vpop.eup %2399 }
 0x294   : > { %v1839_v55 = vmul.f32 %v2400_v54, %v1836_v52 }
 0x296   : > { %v1841_v60 = vmul.f32 %v1839_v55, %v1830_v44 }
 0x298   : > { %v1842_v56 = vsub.f32 %v1840_v32, %v1841_v60 }
 0x29a   : > { %v1847_v57 = vrot.slane %v1842_v56, %v1846_v24 }
 0x29c   : > { %v1850_v58 = vsel %vm1849_vm12, %v1839_v55, %v1847_v57 }
 0x29d   : > { %1851 = vst [vmem:[%s3024_s5] sm:$0x3] %v1850_v58 }
 0x29e PF: > { %s16_s20 = sadd.s32 1, %s2423_s20   ;;  %s3025_s18 = smov %s2419_s19 }
 0x29f   : > { %p13_p7 = scmp.ge.s32.totalorder %s16_s20, 4   ;;  %s3026_s19 = smov %s3028_s21 }
 0x2a1   :  { %15 = sbr.rel (!%p13_p7) target bundleno = 2 (0x2), region = 95 }

// kernel: encoder_forward_nchw.7
= control target key start
LH: loop header
LB: loop body
LE: loop exit
PB: predicated region body
PF: predicated region fallthrough
CT: control target
= control target key end

     0   :  { %s1998_s12 = smov 0   ;;  %s2000_s13 = smov 0   ;;  %s2652_s0 = inlined_call_operand.vmem [shape: bf16[2,16,16,128], index: 0, kind: input, shape index: {}]   ;;  %s2653_s1 = inlined_call_operand.vmem [shape: f32[2,128], index: 1, kind: input, shape index: {}]   ;;  %s2654_s2 = inlined_call_operand.vmem [shape: f32[2,16,16,128], index: 2, kind: output, shape index: {0}]   ;;  %s2655_s3 = inlined_call_operand.vmem [shape: f32[2,8,8,128], index: 3, kind: output, shape index: {1}]  }
   0x1   :  { %s2002_s14 = smov 0  }
   0x2 LB: > { %s29_s15 = sadd.s32 1, %s1971_s13  ;;  %p1771_p0 = scmp.ge.s32.totalorder %s1975_s14, 1  ;;  %s1975_s14 = sphi %s2002_s14, %s14_s14   ;;  %s1971_s13 = sphi %s2000_s13, %s2714_s13   ;;  %s1967_s12 = sphi %s1998_s12, %s2713_s12  }
   0x3   : > { %p31_p1 = scmp.ge.s32.totalorder %s29_s15, 2  ;;  %p189_p2 = scmp.lt.s32.totalorder %s1975_s14, 3 }
   0x5   : > { %s2716_s15 = smov (%p31_p1, %s29_s15), 0  ;;  %p190_p3 = pnand %p1771_p0, %p189_p2 }
   0x7   : > { %193 = sbr.rel (%p190_p3) target bundleno = 160 (0xa0), region = 28 }
   0xe   : > { %p246_p4 = scmp.lt.s32.totalorder %s1967_s12, 1  ;;  %v592_v0 = vlaneseq  ;;  %v1977_v1 = vmov 1983009808   ;;  %v2029_v5 = vld [vmem:[%s2653_s1] ss:$0 sm:$0xff] }
   0xf   : > { %v590_v2 = vunpack.c.l.s4 %v1977_v1  ;;  %v2041_v15 = vld [vmem:[%s2653_s1 + $0x1] ss:$0 sm:$0xff] }
  0x10   : > { %s2718_s12 = smov (!%p246_p4, %s1967_s12), 1  ;;  %v2018_v3 = vshrl.u32 %v592_v0, 7 }
  0x11   : > { %s1846_s16 = sshll.u32 %s2718_s12, 7  ;;  %v591_v4 = vunpack.c.0.s8 %v590_v2  ;;  %s1847_s24 = sshll.u32 %s2718_s12, 8 }
  0x12   : > { %s2024_s19 = scalar_lea.vmem %s2652_s0, %s1846_s16  ;;  %s2063_s27 = scalar_lea.vmem %s2654_s2, %s1847_s24  ;;  %v2075_v57 = vsub.s32 0, %v2018_v3 }
  0x13   : > { %v1850_v6 = vld [vmem:[%s2024_s19] sm:$0xff]   ;;  %v1913_v7 = vld [vmem:[%s2024_s19 + $0x8] sm:$0xff]   ;;  %v2034_v8 = vsub.s32 %v591_v4, %v2018_v3  ;;  %v1914_v9 = vld [vmem:[%s2024_s19 + $0x10] sm:$0xff]   ;;  %s1848_s28 = sshll.u32 %s2718_s12, 6 }
  0x14   : > { %v1851_v10 = vunpack.c.l.bf16 %v1850_v6  ;;  %v1852_v11 = vunpack.c.h.bf16 %v1850_v6  ;;  %v1855_v12 = vunpack.c.l.bf16 %v1913_v7  ;;  %v1856_v13 = vunpack.c.h.bf16 %v1913_v7  ;;  %v1915_v14 = vld [vmem:[%s2024_s19 + $0x18] sm:$0xff]   ;;  %v1916_v49 = vld [vmem:[%s2024_s19 + $0x20] sm:$0xff]   ;;  %s2440_s4 = scalar_lea.vmem %s2655_s3, %s1848_s28 }
  0x15   : > { %v1859_v16 = vunpack.c.l.bf16 %v1914_v9  ;;  %v1860_v17 = vunpack.c.h.bf16 %v1914_v9  ;;  %v1863_v18 = vunpack.c.l.bf16 %v1915_v14  ;;  %v1864_v19 = vunpack.c.h.bf16 %v1915_v14 }
  0x16   : > { %v360_v20 = vmul.f32 %v1851_v10, %v2029_v5  ;;  %v361_v21 = vmul.f32 %v1852_v11, %v2029_v5  ;;  %v362_v22 = vmul.f32 %v1855_v12, %v2029_v5  ;;  %v363_v23 = vmul.f32 %v1856_v13, %v2029_v5 }
  0x17   : > { %v364_v24 = vmul.f32 %v1859_v16, %v2029_v5  ;;  %v365_v25 = vmul.f32 %v1860_v17, %v2029_v5  ;;  %v366_v26 = vmul.f32 %v1863_v18, %v2029_v5  ;;  %v367_v27 = vmul.f32 %v1864_v19, %v2029_v5 }
  0x18   : > { %v396_v28 = vadd.f32 %v2041_v15, %v360_v20  ;;  %v397_v29 = vadd.f32 %v2041_v15, %v361_v21  ;;  %v398_v30 = vadd.f32 %v2041_v15, %v362_v22  ;;  %v399_v31 = vadd.f32 %v2041_v15, %v363_v23 }
  0x19   : > { %v400_v32 = vadd.f32 %v2041_v15, %v364_v24  ;;  %v401_v33 = vadd.f32 %v2041_v15, %v365_v25  ;;  %v402_v34 = vadd.f32 %v2041_v15, %v366_v26  ;;  %v403_v35 = vadd.f32 %v2041_v15, %v367_v27 }
  0x1a   : > { %vm428_vm0 = vcmp.gt.f32.partialorder %v396_v28, 0.0  ;;  %v460_v36 = vmul.f32 0.01, %v396_v28  ;;  %vm429_vm1 = vcmp.gt.f32.partialorder %v397_v29, 0.0  ;;  %v461_v37 = vmul.f32 0.01, %v397_v29 }
  0x1b   : > { %vm430_vm2 = vcmp.gt.f32.partialorder %v398_v30, 0.0  ;;  %v462_v38 = vmul.f32 0.01, %v398_v30  ;;  %vm431_vm3 = vcmp.gt.f32.partialorder %v399_v31, 0.0  ;;  %v463_v39 = vmul.f32 0.01, %v399_v31 }
  0x1c   : > { %v492_v40 = vsel %vm428_vm0, %v396_v28, %v460_v36  ;;  %v493_v41 = vsel %vm429_vm1, %v397_v29, %v461_v37  ;;  %vm432_vm4 = vcmp.gt.f32.partialorder %v400_v32, 0.0  ;;  %v464_v42 = vmul.f32 0.01, %v400_v32 }
  0x1d   : > { %524 = vst [vmem:[%s2063_s27] sm:$0xff] %v492_v40  ;;  %525 = vst [vmem:[%s2063_s27 + $0x8] sm:$0xff] %v493_v41  ;;  %v494_v43 = vsel %vm430_vm2, %v398_v30, %v462_v38  ;;  %v495_v44 = vsel %vm431_vm3, %v399_v31, %v463_v39  ;;  %vm433_vm5 = vcmp.gt.f32.partialorder %v401_v33, 0.0  ;;  %v465_v45 = vmul.f32 0.01, %v401_v33 }
  0x1e   : > { %526 = vst [vmem:[%s2063_s27 + $0x10] sm:$0xff] %v494_v43  ;;  %v556_v46 = vmax.f32 %v492_v40, %v494_v43  ;;  %527 = vst [vmem:[%s2063_s27 + $0x18] sm:$0xff] %v495_v44  ;;  %v557_v47 = vmax.f32 %v493_v41, %v495_v44  ;;  %v496_v48 = vsel %vm432_vm4, %v400_v32, %v464_v42  ;;  %vm434_vm6 = vcmp.gt.f32.partialorder %v402_v34, 0.0  ;;  %v1917_v44 = vld [vmem:[%s2024_s19 + $0x28] sm:$0xff]   ;;  %v1926_v40 = vld [vmem:[%s2024_s19 + $0x70] sm:$0xff]  }
  0x1f   : > { %528 = vst [vmem:[%s2063_s27 + $0x20] sm:$0xff] %v496_v48  ;;  %v497_v50 = vsel %vm433_vm5, %v401_v33, %v465_v45  ;;  %v466_v51 = vmul.f32 0.01, %v402_v34  ;;  %vm435_vm7 = vcmp.gt.f32.partialorder %v403_v35, 0.0  ;;  %v467_v52 = vmul.f32 0.01, %v403_v35 }
  0x20   : > { %v588_v53 = vcombine.high %v556_v46, %v556_v46  ;;  %v595_v54 = vrot.slane %v556_v46, %v2034_v8  ;;  %v605_v55 = vcombine.high %v557_v47, %v557_v47  ;;  %v612_v56 = vrot.slane %v557_v47, %v2034_v8  ;;  %529 = vst [vmem:[%s2063_s27 + $0x28] sm:$0xff] %v497_v50 }
  0x21   : > { %v498_v58 = vsel %vm434_vm6, %v402_v34, %v466_v51  ;;  %v499_v59 = vsel %vm435_vm7, %v403_v35, %v467_v52  ;;  %v1867_v60 = vunpack.c.l.bf16 %v1916_v49  ;;  %v1868_v14 = vunpack.c.h.bf16 %v1916_v49  ;;  %v1918_v49 = vld [vmem:[%s2024_s19 + $0x30] sm:$0xff]  }
  0x22   : > { %v602_v61 = vrot.slane %v588_v53, %v2034_v8  ;;  %v603_v62 = vcombine.high %v595_v54, %v595_v54  ;;  %v1780_v63 = vrot.slane %v595_v54, 9  ;;  %v2079_v0 = vrot.slane %v605_v55, %v2034_v8  ;;  %530 = vst [vmem:[%s2063_s27 + $0x30] sm:$0xff] %v498_v58  ;;  %531 = vst [vmem:[%s2063_s27 + $0x38] sm:$0xff] %v499_v59 }
  0x23   : > { %v620_v1 = vcombine.high %v612_v56, %v612_v56  ;;  %v1784_v2 = vrot.slane %v612_v56, 9  ;;  %v558_v4 = vmax.f32 %v496_v48, %v498_v58  ;;  %v559_v6 = vmax.f32 %v497_v50, %v499_v59  ;;  %v1919_v58 = vld [vmem:[%s2024_s19 + $0x38] sm:$0xff]  }
  0x24   : > { %v604_v7 = vcombine.high %v602_v61, %v602_v61  ;;  %v1781_v9 = vrot.slane %v603_v62, 9  ;;  %v1782_v3 = vrot.slane %v602_v61, 9  ;;  %v2083_v10 = vmax.f32 %v595_v54, %v1780_v63 }
  0x25   : > { %v1785_v11 = vrot.slane %v620_v1, 9  ;;  %v2085_v12 = vmax.f32 %v612_v56, %v1784_v2  ;;  %v622_v13 = vcombine.high %v558_v4, %v558_v4  ;;  %v629_v22 = vrot.slane %v558_v4, %v2034_v8 }
  0x26   : > { %v1783_v16 = vrot.slane %v604_v7, 9  ;;  %v2087_v17 = vmax.f32 %v603_v62, %v1781_v9  ;;  %v2089_v18 = vmax.f32 %v602_v61, %v1782_v3  ;;  %v639_v27 = vcombine.high %v559_v6, %v559_v6 }
  0x27   : > { %v2094_v21 = vmax.f32 %v620_v1, %v1785_v11  ;;  %v636_v23 = vrot.slane %v622_v13, %v2034_v8  ;;  %v637_v28 = vcombine.high %v629_v22, %v629_v22  ;;  %v1788_v30 = vrot.slane %v629_v22, 9 }
  0x28   : > { %v2098_v24 = vmax.f32 %v604_v7, %v1783_v16  ;;  %v646_v32 = vrot.slane %v559_v6, %v2034_v8  ;;  %v2106_v33 = vrot.slane %v639_v27, %v2034_v8  ;;  %v368_v34 = vmul.f32 %v1867_v60, %v2029_v5 }
  0x29   : > { %v638_v29 = vcombine.high %v636_v23, %v636_v23  ;;  %v1790_v31 = vrot.slane %v636_v23, 9  ;;  %v369_v35 = vmul.f32 %v1868_v14, %v2029_v5  ;;  %v1789_v36 = vrot.slane %v637_v28, 9 }
  0x2a   : > { %v2110_v38 = vmax.f32 %v629_v22, %v1788_v30  ;;  %v654_v41 = vcombine.high %v646_v32, %v646_v32  ;;  %v1792_v42 = vrot.slane %v646_v32, 9  ;;  %v404_v43 = vadd.f32 %v2041_v15, %v368_v34 }
  0x2b   : > { %v1791_v37 = vrot.slane %v638_v29, 9  ;;  %v2112_v39 = vmax.f32 %v636_v23, %v1790_v31  ;;  %v2118_v45 = vmax.f32 %v637_v28, %v1789_v36  ;;  %v405_v54 = vadd.f32 %v2041_v15, %v369_v35  ;;  %v2150_v28 = vld [vmem:[%s2024_s19 + $0x40] sm:$0xff]  }
  0x2c   : > { %v1793_v51 = vrot.slane %v654_v41, 9  ;;  %vm436_vm8 = vcmp.gt.f32.partialorder %v404_v43, 0.0  ;;  %v468_v52 = vmul.f32 0.01, %v404_v43  ;;  %v2128_v53 = vmax.f32 %v646_v32, %v1792_v42 }
  0x2d   : > { %v2120_v46 = vmax.f32 %v638_v29, %v1791_v37  ;;  %v1871_v55 = vunpack.c.l.bf16 %v1917_v44  ;;  %v1872_v56 = vunpack.c.h.bf16 %v1917_v44  ;;  %v1875_v62 = vunpack.c.l.bf16 %v1918_v49 }
  0x2e   : > { %v2134_v60 = vmax.f32 %v654_v41, %v1793_v51  ;;  %v500_v61 = vsel %vm436_vm8, %v404_v43, %v468_v52  ;;  %vm437_vm9 = vcmp.gt.f32.partialorder %v405_v54, 0.0  ;;  %v469_v63 = vmul.f32 0.01, %v405_v54 }
  0x2f   : > { %532 = vst [vmem:[%s2063_s27 + $0x40] sm:$0xff] %v500_v61  ;;  %v370_v1 = vmul.f32 %v1871_v55, %v2029_v5  ;;  %v371_v2 = vmul.f32 %v1872_v56, %v2029_v5  ;;  %v372_v4 = vmul.f32 %v1875_v62, %v2029_v5  ;;  %v1876_v6 = vunpack.c.h.bf16 %v1918_v49 }
  0x30   : > { %v1879_v7 = vunpack.c.l.bf16 %v1919_v58  ;;  %v1880_v9 = vunpack.c.h.bf16 %v1919_v58  ;;  %v501_v11 = vsel %vm437_vm9, %v405_v54, %v469_v63  ;;  %v1883_v41 = vunpack.c.l.bf16 %v2150_v28 }
  0x31   : > { %v406_v13 = vadd.f32 %v2041_v15, %v370_v1  ;;  %v407_v14 = vadd.f32 %v2041_v15, %v371_v2  ;;  %533 = vst [vmem:[%s2063_s27 + $0x48] sm:$0xff] %v501_v11  ;;  %v408_v16 = vadd.f32 %v2041_v15, %v372_v4  ;;  %v373_v22 = vmul.f32 %v1876_v6, %v2029_v5 }
  0x32   : > { %v374_v23 = vmul.f32 %v1879_v7, %v2029_v5  ;;  %v375_v27 = vmul.f32 %v1880_v9, %v2029_v5  ;;  %v376_v63 = vmul.f32 %v1883_v41, %v2029_v5  ;;  %v1908_v19 = vunpack.c.h.bf16 %v1926_v40 }
  0x33   : > { %vm438_vm10 = vcmp.gt.f32.partialorder %v406_v13, 0.0  ;;  %v470_v29 = vmul.f32 0.01, %v406_v13  ;;  %vm439_vm11 = vcmp.gt.f32.partialorder %v407_v14, 0.0  ;;  %v471_v30 = vmul.f32 0.01, %v407_v14 }
  0x34   : > { %vm440_vm12 = vcmp.gt.f32.partialorder %v408_v16, 0.0  ;;  %v472_v31 = vmul.f32 0.01, %v408_v16  ;;  %v409_v32 = vadd.f32 %v2041_v15, %v373_v22  ;;  %v410_v34 = vadd.f32 %v2041_v15, %v374_v23 }
  0x35   : > { %v502_v35 = vsel %vm438_vm10, %v406_v13, %v470_v29  ;;  %v503_v36 = vsel %vm439_vm11, %v407_v14, %v471_v30  ;;  %v411_v37 = vadd.f32 %v2041_v15, %v375_v27 }
  0x36   : > { %534 = vst [vmem:[%s2063_s27 + $0x50] sm:$0xff] %v502_v35  ;;  %v560_v42 = vmax.f32 %v500_v61, %v502_v35  ;;  %535 = vst [vmem:[%s2063_s27 + $0x58] sm:$0xff] %v503_v36  ;;  %v561_v43 = vmax.f32 %v501_v11, %v503_v36  ;;  %v504_v44 = vsel %vm440_vm12, %v408_v16, %v472_v31  ;;  %vm441_vm13 = vcmp.gt.f32.partialorder %v409_v32, 0.0 }
  0x37   : > { %536 = vst [vmem:[%s2063_s27 + $0x60] sm:$0xff] %v504_v44  ;;  %v473_v49 = vmul.f32 0.01, %v409_v32  ;;  %vm442_vm14 = vcmp.gt.f32.partialorder %v410_v34, 0.0  ;;  %v474_v51 = vmul.f32 0.01, %v410_v34  ;;  %v412_v31 = vadd.f32 %v2041_v15, %v376_v63 }
  0x38   : > { %vm443_vm15 = vcmp.gt.f32.partialorder %v411_v37, 0.0  ;;  %v656_v52 = vcombine.high %v560_v42, %v560_v42  ;;  %v663_v54 = vrot.slane %v560_v42, %v2034_v8  ;;  %v673_v55 = vcombine.high %v561_v43, %v561_v43 }
  0x39   : > { %v680_v56 = vrot.slane %v561_v43, %v2034_v8  ;;  %v505_v58 = vsel %vm441_vm13, %v409_v32, %v473_v49  ;;  %v506_v62 = vsel %vm442_vm14, %v410_v34, %v474_v51  ;;  %v475_v61 = vmul.f32 0.01, %v411_v37 }
  0x3a   : > { %v670_v1 = vrot.slane %v656_v52, %v2034_v8  ;;  %v671_v2 = vcombine.high %v663_v54, %v663_v54  ;;  %v1796_v4 = vrot.slane %v663_v54, 9  ;;  %v2164_v6 = vrot.slane %v673_v55, %v2034_v8  ;;  %537 = vst [vmem:[%s2063_s27 + $0x68] sm:$0xff] %v505_v58  ;;  %538 = vst [vmem:[%s2063_s27 + $0x70] sm:$0xff] %v506_v62 }
  0x3b   : > { %v688_v7 = vcombine.high %v680_v56, %v680_v56  ;;  %v1800_v9 = vrot.slane %v680_v56, 9  ;;  %v562_v11 = vmax.f32 %v504_v44, %v506_v62  ;;  %v507_v13 = vsel %vm443_vm15, %v411_v37, %v475_v61 }
  0x3c   : > { %v672_v14 = vcombine.high %v670_v1, %v670_v1  ;;  %v1797_v16 = vrot.slane %v671_v2, 9  ;;  %v1798_v22 = vrot.slane %v670_v1, 9  ;;  %v2169_v23 = vmax.f32 %v663_v54, %v1796_v4  ;;  %539 = vst [vmem:[%s2063_s27 + $0x78] sm:$0xff] %v507_v13 }
  0x3d   : > { %v1801_v27 = vrot.slane %v688_v7, 9  ;;  %v2172_v29 = vmax.f32 %v680_v56, %v1800_v9  ;;  %v690_v30 = vcombine.high %v562_v11, %v562_v11  ;;  %v697_v42 = vrot.slane %v562_v11, %v2034_v8 }
  0x3e   : > { %v1799_v32 = vrot.slane %v672_v14, 9  ;;  %v2175_v34 = vmax.f32 %v671_v2, %v1797_v16  ;;  %v2177_v35 = vmax.f32 %v670_v1, %v1798_v22  ;;  %v563_v52 = vmax.f32 %v505_v58, %v507_v13  ;;  %v1921_v16 = vld [vmem:[%s2024_s19 + $0x48] sm:$0xff]   ;;  %v1922_v22 = vld [vmem:[%s2024_s19 + $0x50] sm:$0xff]  }
  0x3f   : > { %v2182_v41 = vmax.f32 %v688_v7, %v1801_v27  ;;  %v704_v43 = vrot.slane %v690_v30, %v2034_v8  ;;  %v705_v54 = vcombine.high %v697_v42, %v697_v42  ;;  %v1804_v56 = vrot.slane %v697_v42, 9 }
  0x40   : > { %v2186_v44 = vmax.f32 %v672_v14, %v1799_v32  ;;  %v707_v61 = vcombine.high %v563_v52, %v563_v52  ;;  %v714_v63 = vrot.slane %v563_v52, %v2034_v8  ;;  %vm444_vm0 = vcmp.gt.f32.partialorder %v412_v31, 0.0 }
  0x41   : > { %v706_v55 = vcombine.high %v704_v43, %v704_v43  ;;  %v1806_v62 = vrot.slane %v704_v43, 9  ;;  %v476_v1 = vmul.f32 0.01, %v412_v31  ;;  %v1805_v2 = vrot.slane %v705_v54, 9 }
  0x42   : > { %v2193_v7 = vmax.f32 %v697_v42, %v1804_v56  ;;  %v2198_v58 = vrot.slane %v707_v61, %v2034_v8  ;;  %v722_v11 = vcombine.high %v714_v63, %v714_v63  ;;  %v1808_v13 = vrot.slane %v714_v63, 9 }
  0x43   : > { %v1807_v4 = vrot.slane %v706_v55, 9  ;;  %v2195_v9 = vmax.f32 %v704_v43, %v1806_v62  ;;  %v508_v14 = vsel %vm444_vm0, %v412_v31, %v476_v1  ;;  %v2204_v30 = vmax.f32 %v705_v54, %v1805_v2  ;;  %v1923_v62 = vld [vmem:[%s2024_s19 + $0x58] sm:$0xff]  }
  0x44   : > { %540 = vst [vmem:[%s2063_s27 + $0x80] sm:$0xff] %v508_v14  ;;  %v1809_v52 = vrot.slane %v722_v11, 9  ;;  %v1884_v56 = vunpack.c.h.bf16 %v2150_v28  ;;  %v2216_v61 = vmax.f32 %v714_v63, %v1808_v13  ;;  %v1887_v1 = vunpack.c.l.bf16 %v1921_v16 }
  0x45   : > { %v2206_v32 = vmax.f32 %v706_v55, %v1807_v4  ;;  %v1888_v54 = vunpack.c.h.bf16 %v1921_v16  ;;  %v1891_v2 = vunpack.c.l.bf16 %v1922_v22  ;;  %v2219_v55 = vld [vmem:[%s2024_s19 + $0x60] sm:$0xff]   ;;  %v1892_v51 = vunpack.c.h.bf16 %v1922_v22 }
  0x46   : > { %v2223_v42 = vmax.f32 %v722_v11, %v1809_v52  ;;  %v377_v43 = vmul.f32 %v1884_v56, %v2029_v5  ;;  %v378_v31 = vmul.f32 %v1887_v1, %v2029_v5  ;;  %v1895_v13 = vunpack.c.l.bf16 %v1923_v62 }
  0x47   : > { %v379_v28 = vmul.f32 %v1888_v54, %v2029_v5  ;;  %v380_v63 = vmul.f32 %v1891_v2, %v2029_v5  ;;  %v381_v27 = vmul.f32 %v1892_v51, %v2029_v5  ;;  %v1896_v49 = vunpack.c.h.bf16 %v1923_v62 }
  0x48   : > { %v413_v16 = vadd.f32 %v2041_v15, %v377_v43  ;;  %v1899_v37 = vunpack.c.l.bf16 %v2219_v55  ;;  %v414_v11 = vadd.f32 %v2041_v15, %v378_v31  ;;  %v382_v56 = vmul.f32 %v1895_v13, %v2029_v5 }
  0x49   : > { %v415_v52 = vadd.f32 %v2041_v15, %v379_v28  ;;  %v416_v22 = vadd.f32 %v2041_v15, %v380_v63  ;;  %v417_v54 = vadd.f32 %v2041_v15, %v381_v27  ;;  %v383_v43 = vmul.f32 %v1896_v49, %v2029_v5 }
  0x4a   : > { %vm445_vm1 = vcmp.gt.f32.partialorder %v413_v16, 0.0  ;;  %v477_v1 = vmul.f32 0.01, %v413_v16  ;;  %vm446_vm2 = vcmp.gt.f32.partialorder %v414_v11, 0.0  ;;  %v478_v51 = vmul.f32 0.01, %v414_v11 }
  0x4b   : > { %vm447_vm3 = vcmp.gt.f32.partialorder %v415_v52, 0.0  ;;  %v479_v62 = vmul.f32 0.01, %v415_v52  ;;  %vm448_vm4 = vcmp.gt.f32.partialorder %v416_v22, 0.0  ;;  %v480_v2 = vmul.f32 0.01, %v416_v22 }
  0x4c   : > { %v509_v31 = vsel %vm445_vm1, %v413_v16, %v477_v1  ;;  %vm449_vm5 = vcmp.gt.f32.partialorder %v417_v54, 0.0  ;;  %v510_v28 = vsel %vm446_vm2, %v414_v11, %v478_v51  ;;  %v481_v13 = vmul.f32 0.01, %v417_v54 }
  0x4d   : > { %541 = vst [vmem:[%s2063_s27 + $0x88] sm:$0xff] %v509_v31  ;;  %v511_v63 = vsel %vm447_vm3, %v415_v52, %v479_v62  ;;  %v418_v4 = vadd.f32 %v2041_v15, %v382_v56  ;;  %542 = vst [vmem:[%s2063_s27 + $0x90] sm:$0xff] %v510_v28  ;;  %v564_v27 = vmax.f32 %v508_v14, %v510_v28  ;;  %vm1500_vm0 = vcmask 1041409  }
  0x4e   : > { %543 = vst [vmem:[%s2063_s27 + $0x98] sm:$0xff] %v511_v63  ;;  %v565_v49 = vmax.f32 %v509_v31, %v511_v63  ;;  %v512_v3 = vsel %vm448_vm4, %v416_v22, %v480_v2  ;;  %v419_v36 = vadd.f32 %v2041_v15, %v383_v43  ;;  %v513_v1 = vsel %vm449_vm5, %v417_v54, %v481_v13 }
  0x4f   : > { %544 = vst [vmem:[%s2063_s27 + $0xa0] sm:$0xff] %v512_v3  ;;  %vm450_vm6 = vcmp.gt.f32.partialorder %v418_v4, 0.0  ;;  %v482_v11 = vmul.f32 0.01, %v418_v4  ;;  %v724_v52 = vcombine.high %v564_v27, %v564_v27  ;;  %v731_v51 = vrot.slane %v564_v27, %v2034_v8  ;;  %545 = vst [vmem:[%s2063_s27 + $0xa8] sm:$0xff] %v513_v1 }
  0x50   : > { %v741_v56 = vcombine.high %v565_v49, %v565_v49  ;;  %v748_v62 = vrot.slane %v565_v49, %v2034_v8  ;;  %vm451_vm7 = vcmp.gt.f32.partialorder %v419_v36, 0.0  ;;  %v483_v22 = vmul.f32 0.01, %v419_v36 }
  0x51   : > { %v514_v14 = vsel %vm450_vm6, %v418_v4, %v482_v11  ;;  %v384_v43 = vmul.f32 %v1899_v37, %v2029_v5  ;;  %v738_v31 = vrot.slane %v724_v52, %v2034_v8  ;;  %v739_v2 = vcombine.high %v731_v51, %v731_v51 }
  0x52   : > { %v1812_v54 = vrot.slane %v731_v51, 9  ;;  %v2252_v28 = vrot.slane %v741_v56, %v2034_v8  ;;  %546 = vst [vmem:[%s2063_s27 + $0xb0] sm:$0xff] %v514_v14  ;;  %v756_v63 = vcombine.high %v748_v62, %v748_v62  ;;  %v1816_v13 = vrot.slane %v748_v62, 9 }
  0x53   : > { %v566_v27 = vmax.f32 %v512_v3, %v514_v14  ;;  %v515_v16 = vsel %vm451_vm7, %v419_v36, %v483_v22  ;;  %v740_v49 = vcombine.high %v738_v31, %v738_v31  ;;  %v1813_v50 = vrot.slane %v739_v2, 9  ;;  %v1925_v3 = vld [vmem:[%s2024_s19 + $0x68] sm:$0xff]  }
  0x54   : > { %v1814_v4 = vrot.slane %v738_v31, 9  ;;  %v2255_v11 = vmax.f32 %v731_v51, %v1812_v54  ;;  %547 = vst [vmem:[%s2063_s27 + $0xb8] sm:$0xff] %v515_v16  ;;  %v1817_v59 = vrot.slane %v756_v63, 9  ;;  %v2258_v37 = vmax.f32 %v748_v62, %v1816_v13 }
  0x55   : > { %v758_v52 = vcombine.high %v566_v27, %v566_v27  ;;  %v420_v47 = vadd.f32 %v2041_v15, %v384_v43  ;;  %v1815_v26 = vrot.slane %v740_v49, 9  ;;  %v2261_v56 = vmax.f32 %v739_v2, %v1813_v50 }
  0x56   : > { %2662 = vst [vmem:[#allocation2_spill] sm:$0xff] %v2258_v37  ;;  %v2263_v48 = vmax.f32 %v738_v31, %v1814_v4  ;;  %v2268_v14 = vmax.f32 %v756_v63, %v1817_v59  ;;  %v765_v51 = vrot.slane %v566_v27, %v2034_v8  ;;  %v567_v31 = vmax.f32 %v513_v1, %v515_v16 }
  0x57   : > { %v772_v62 = vrot.slane %v758_v52, %v2034_v8  ;;  %v2272_v22 = vmax.f32 %v740_v49, %v1815_v26  ;;  %vm452_vm8 = vcmp.gt.f32.partialorder %v420_v47, 0.0  ;;  %v484_v26 = vmul.f32 0.01, %v420_v47 }
  0x58   : > { %v773_v2 = vcombine.high %v765_v51, %v765_v51  ;;  %v1820_v13 = vrot.slane %v765_v51, 9  ;;  %v775_v63 = vcombine.high %v567_v31, %v567_v31  ;;  %v782_v27 = vrot.slane %v567_v31, %v2034_v8 }
  0x59   : > { %v774_v54 = vcombine.high %v772_v62, %v772_v62  ;;  %v1822_v59 = vrot.slane %v772_v62, 9  ;;  %v516_v36 = vsel %vm452_vm8, %v420_v47, %v484_v26  ;;  %v1900_v47 = vunpack.c.h.bf16 %v2219_v55 }
  0x5a   : > { %v1821_v49 = vrot.slane %v773_v2, 9  ;;  %v2279_v52 = vmax.f32 %v765_v51, %v1820_v13  ;;  %v2284_v16 = vrot.slane %v775_v63, %v2034_v8  ;;  %v790_v1 = vcombine.high %v782_v27, %v782_v27  ;;  %548 = vst [vmem:[%s2063_s27 + $0xc0] sm:$0xff] %v516_v36  ;;  %v1927_v63 = vld [vmem:[%s2024_s19 + $0x78] sm:$0xff]  }
  0x5b   : > { %v1823_v4 = vrot.slane %v774_v54, 9  ;;  %v2281_v43 = vmax.f32 %v772_v62, %v1822_v59  ;;  %v1824_v50 = vrot.slane %v782_v27, 9  ;;  %v1903_v31 = vunpack.c.l.bf16 %v1925_v3 }
  0x5c   : > { %2663 = vst [vmem:[#allocation3_spill] sm:$0xff] %v2279_v52  ;;  %v2290_v25 = vmax.f32 %v773_v2, %v1821_v49  ;;  %v1825_v13 = vrot.slane %v790_v1, 9  ;;  %v1904_v2 = vunpack.c.h.bf16 %v1925_v3  ;;  %v1907_v49 = vunpack.c.l.bf16 %v1926_v40 }
  0x5d   : > { %2664 = vst [vmem:[#allocation4_spill] sm:$0xff] %v2281_v43  ;;  %v2292_v20 = vmax.f32 %v774_v54, %v1823_v4  ;;  %v2302_v26 = vmax.f32 %v782_v27, %v1824_v50  ;;  %v385_v51 = vmul.f32 %v1900_v47, %v2029_v5  ;;  %v386_v62 = vmul.f32 %v1903_v31, %v2029_v5 }
  0x5e   : > { %2665 = vst [vmem:[#allocation5_spill] sm:$0xff] %v2290_v25  ;;  %v2306_v4 = vmax.f32 %v790_v1, %v1825_v13  ;;  %v387_v59 = vmul.f32 %v1904_v2, %v2029_v5  ;;  %v388_v55 = vmul.f32 %v1907_v49, %v2029_v5  ;;  %v1911_v43 = vunpack.c.l.bf16 %v1927_v63 }
  0x5f   : > { %2666 = vst [vmem:[#allocation6_spill] sm:$0xff] %v2292_v20  ;;  %2667 = vst [vmem:[#allocation7_spill] sm:$0xff] %v2302_v26  ;;  %v421_v50 = vadd.f32 %v2041_v15, %v385_v51  ;;  %v389_v3 = vmul.f32 %v1908_v19, %v2029_v5  ;;  %v1912_v27 = vunpack.c.h.bf16 %v1927_v63  ;;  %v2316_v54 = vcombine.high %v2079_v0, %v2079_v0 }
  0x60   : > { %2668 = vst [vmem:[#allocation8_spill] sm:$0xff] %v2306_v4  ;;  %v422_v1 = vadd.f32 %v2041_v15, %v386_v62  ;;  %v423_v40 = vadd.f32 %v2041_v15, %v387_v59  ;;  %v424_v31 = vadd.f32 %v2041_v15, %v388_v55  ;;  %v390_v13 = vmul.f32 %v1911_v43, %v2029_v5 }
  0x61   : > { %vm453_vm9 = vcmp.gt.f32.partialorder %v421_v50, 0.0  ;;  %v485_v47 = vmul.f32 0.01, %v421_v50  ;;  %v425_v51 = vadd.f32 %v2041_v15, %v389_v3  ;;  %v391_v19 = vmul.f32 %v1912_v27, %v2029_v5 }
  0x62   : > { %vm454_vm10 = vcmp.gt.f32.partialorder %v422_v1, 0.0  ;;  %v486_v63 = vmul.f32 0.01, %v422_v1  ;;  %vm455_vm11 = vcmp.gt.f32.partialorder %v423_v40, 0.0  ;;  %v487_v2 = vmul.f32 0.01, %v423_v40 }
  0x63   : > { %v517_v62 = vsel %vm453_vm9, %v421_v50, %v485_v47  ;;  %vm456_vm12 = vcmp.gt.f32.partialorder %v424_v31, 0.0  ;;  %v488_v59 = vmul.f32 0.01, %v424_v31  ;;  %vm457_vm13 = vcmp.gt.f32.partialorder %v425_v51, 0.0 }
  0x64   : > { %549 = vst [vmem:[%s2063_s27 + $0xc8] sm:$0xff] %v517_v62  ;;  %v518_v49 = vsel %vm454_vm10, %v422_v1, %v486_v63  ;;  %v519_v43 = vsel %vm455_vm11, %v423_v40, %v487_v2  ;;  %v489_v55 = vmul.f32 0.01, %v425_v51  ;;  %v426_v25 = vadd.f32 %v2041_v15, %v390_v13 }
  0x65   : > { %550 = vst [vmem:[%s2063_s27 + $0xd0] sm:$0xff] %v518_v49  ;;  %v568_v3 = vmax.f32 %v516_v36, %v518_v49  ;;  %551 = vst [vmem:[%s2063_s27 + $0xd8] sm:$0xff] %v519_v43  ;;  %v569_v5 = vmax.f32 %v517_v62, %v519_v43  ;;  %v520_v27 = vsel %vm456_vm12, %v424_v31, %v488_v59  ;;  %v2670_v37 = vrot.slane %v2079_v0, 9 }
  0x66   : > { %v427_v52 = vadd.f32 %v2041_v15, %v391_v19  ;;  %552 = vst [vmem:[%s2063_s27 + $0xe0] sm:$0xff] %v520_v27  ;;  %v521_v47 = vsel %vm457_vm13, %v425_v51, %v489_v55  ;;  %vm458_vm14 = vcmp.gt.f32.partialorder %v426_v25, 0.0  ;;  %v490_v1 = vmul.f32 0.01, %v426_v25 }
  0x67   : > { %v792_v40 = vcombine.high %v568_v3, %v568_v3  ;;  %v799_v63 = vrot.slane %v568_v3, %v2034_v8  ;;  %v809_v13 = vcombine.high %v569_v5, %v569_v5  ;;  %v816_v2 = vrot.slane %v569_v5, %v2034_v8  ;;  %553 = vst [vmem:[%s2063_s27 + $0xe8] sm:$0xff] %v521_v47 }
  0x68   : > { %v522_v36 = vsel %vm458_vm14, %v426_v25, %v490_v1  ;;  %vm459_vm15 = vcmp.gt.f32.partialorder %v427_v52, 0.0  ;;  %v491_v31 = vmul.f32 0.01, %v427_v52  ;;  %v1787_v15 = vrot.slane %v2316_v54, 9 }
  0x69   : > { %v806_v19 = vrot.slane %v792_v40, %v2034_v8  ;;  %v807_v62 = vcombine.high %v799_v63, %v799_v63  ;;  %v1828_v51 = vrot.slane %v799_v63, 9  ;;  %v2338_v59 = vrot.slane %v809_v13, %v2034_v8  ;;  %554 = vst [vmem:[%s2063_s27 + $0xf0] sm:$0xff] %v522_v36 }
  0x6a   : > { %v824_v49 = vcombine.high %v816_v2, %v816_v2  ;;  %v1832_v43 = vrot.slane %v816_v2, 9  ;;  %v570_v55 = vmax.f32 %v520_v27, %v522_v36  ;;  %v523_v3 = vsel %vm459_vm15, %v427_v52, %v491_v31 }
  0x6b   : > { %v808_v5 = vcombine.high %v806_v19, %v806_v19  ;;  %v1829_v50 = vrot.slane %v807_v62, 9  ;;  %v1830_v25 = vrot.slane %v806_v19, 9  ;;  %v2341_v1 = vmax.f32 %v799_v63, %v1828_v51  ;;  %555 = vst [vmem:[%s2063_s27 + $0xf8] sm:$0xff] %v523_v3 }
  0x6c   : > { %v1833_v26 = vrot.slane %v824_v49, 9  ;;  %v2344_v4 = vmax.f32 %v816_v2, %v1832_v43  ;;  %v826_v40 = vcombine.high %v570_v55, %v570_v55  ;;  %v2349_v13 = vmax.f32 %v2079_v0, %v2670_v37 }
  0x6d   : > { %vm1502_vm1 = vcmask 1042434   ;;  %v1831_v20 = vrot.slane %v808_v5, 9  ;;  %v2351_v27 = vmax.f32 %v807_v62, %v1829_v50  ;;  %v2353_v52 = vmax.f32 %v806_v19, %v1830_v25 }
  0x6e   : > { %2669 = vst [vmem:[#allocation9_spill] sm:$0xff] %v2344_v4  ;;  %vm1504_vm2 = vcmask 1043459   ;;  %v2358_v2 = vmax.f32 %v824_v49, %v1833_v26  ;;  %v833_v31 = vrot.slane %v570_v55, %v2034_v8  ;;  %v840_v51 = vrot.slane %v826_v40, %v2034_v8 }
  0x6f   : > { %vm1506_vm3 = vcmask 1044484   ;;  %v2362_v0 = vmax.f32 %v808_v5, %v1831_v20  ;;  %v571_v19 = vmax.f32 %v521_v47, %v523_v3  ;;  %vm1508_vm4 = vcmask 1045509  }
  0x70   : > { %v841_v62 = vcombine.high %v833_v31, %v833_v31  ;;  %v842_v43 = vcombine.high %v840_v51, %v840_v51  ;;  %v1836_v25 = vrot.slane %v833_v31, 9  ;;  %v1838_v26 = vrot.slane %v840_v51, 9 }
  0x71   : > { %vm1510_vm5 = vcmask 1046534   ;;  %v843_v55 = vcombine.high %v571_v19, %v571_v19  ;;  %v850_v20 = vrot.slane %v571_v19, %v2034_v8  ;;  %v1123_v5 = vmax.f32 %v2316_v54, %v1787_v15 }
  0x72   : > { %vm1512_vm6 = vcmask 1047559   ;;  %v1837_v40 = vrot.slane %v841_v62, 9  ;;  %v1839_v37 = vrot.slane %v842_v43, 9  ;;  %v2372_v36 = vmax.f32 %v833_v31, %v1836_v25 }
  0x73   : > { %v2374_v47 = vmax.f32 %v840_v51, %v1838_v26  ;;  %v2377_v3 = vrot.slane %v843_v55, %v2034_v8  ;;  %v858_v50 = vcombine.high %v850_v20, %v850_v20  ;;  %v1840_v63 = vrot.slane %v850_v20, 9 }
  0x74   : > { %v1259_v49 = vrot.slane %v2098_v24, %v2075_v57  ;;  %v2381_v4 = vmax.f32 %v841_v62, %v1837_v40  ;;  %v2383_v19 = vmax.f32 %v842_v43, %v1839_v37  ;;  %v1471_v54 = vrot.slane %v2372_v36, %v2075_v57 }
  0x75   : > { %v1267_v15 = vrot.slane %v2094_v21, %v2075_v57  ;;  %v1479_v8 = vrot.slane %v2374_v47, %v2075_v57  ;;  %v1841_v31 = vrot.slane %v858_v50, 9  ;;  %v1842_v51 = vrot.slane %v2377_v3, 9 }
  0x76   : > { %v2392_v25 = vmax.f32 %v850_v20, %v1840_v63  ;;  %v1475_v24 = vrot.slane %v2381_v4, %v2075_v57  ;;  %v1271_v37 = vrot.slane %v2349_v13, %v2075_v57  ;;  %v2671_v62 = vrot.slane %v2083_v10, %v2075_v57 }
  0x77   : > { %v2672_v21 = vrot.slane %v2087_v17, %v2075_v57  ;;  %v655_v26 = vcombine.high %v2106_v33, %v2106_v33  ;;  %v2407_v55 = vmax.f32 %v858_v50, %v1841_v31  ;;  %v1275_v63 = vrot.slane %v1123_v5, %v2075_v57 }
  0x78   : > { %v2673_v20 = vrot.slane %v2089_v18, %v2075_v57  ;;  %v2674_v10 = vrot.slane %v2106_v33, 9  ;;  %v1299_v50 = vrot.slane %v2134_v60, %v2075_v57  ;;  %v2675_v5 = vrot.slane %v2085_v12, %v2075_v57 }
  0x79   : > { %v1501_v43 = vsel %vm1500_vm0, %v2672_v21, %v2671_v62  ;;  %v1795_v62 = vrot.slane %v655_v26, 9  ;;  %v1291_v21 = vrot.slane %v2120_v46, %v2075_v57  ;;  %v689_v46 = vcombine.high %v2164_v6, %v2164_v6 }
  0x7a   : > { %v1503_v13 = vsel %vm1502_vm1, %v2673_v20, %v1501_v43  ;;  %v1130_v40 = vmax.f32 %v2106_v33, %v2674_v10  ;;  %v2676_v43 = vrot.slane %v2110_v38, %v2075_v57  ;;  %v2677_v33 = vrot.slane %v2118_v45, %v2075_v57 }
  0x7b   : > { %v1505_v17 = vsel %vm1504_vm2, %v1259_v49, %v1503_v13  ;;  %v1131_v60 = vmax.f32 %v655_v26, %v1795_v62  ;;  %v2678_v38 = vrot.slane %v2112_v39, %v2075_v57  ;;  %v2679_v45 = vrot.slane %v2164_v6, 9 }
  0x7c   : > { %v1507_v18 = vsel %vm1506_vm3, %v2675_v5, %v1505_v17  ;;  %v1303_v31 = vrot.slane %v1130_v40, %v2075_v57  ;;  %v1514_v49 = vsel %vm1500_vm0, %v2677_v33, %v2676_v43  ;;  %v1803_v17 = vrot.slane %v689_v46, 9 }
  0x7d   : > { %v1509_v12 = vsel %vm1508_vm4, %v1267_v15, %v1507_v18  ;;  %v1515_v20 = vsel %vm1502_vm1, %v2678_v38, %v1514_v49  ;;  %v1138_v13 = vmax.f32 %v2164_v6, %v2679_v45  ;;  %v1323_v5 = vrot.slane %v2186_v44, %v2075_v57 }
  0x7e   : > { %v1511_v10 = vsel %vm1510_vm5, %v1271_v37, %v1509_v12  ;;  %v1516_v40 = vsel %vm1504_vm2, %v1291_v21, %v1515_v20  ;;  %v1307_v26 = vrot.slane %v1131_v60, %v2075_v57  ;;  %v2680_v39 = vrot.slane %v2128_v53, %v2075_v57 }
  0x7f   : > { %v1513_v15 = vsel %vm1512_vm6, %v1275_v63, %v1511_v10  ;;  %v1331_v6 = vrot.slane %v2182_v41, %v2075_v57  ;;  %v1139_v21 = vmax.f32 %v689_v46, %v1803_v17  ;;  %v1335_v18 = vrot.slane %v1138_v13, %v2075_v57 }
  0x80   : > { %v1517_v62 = vsel %vm1506_vm3, %v2680_v39, %v1516_v40  ;;  %1571 = vst [vmem:[%s2440_s4] sm:$0xff] %v1513_v15  ;;  %v2681_v44 = vrot.slane %v2169_v23, %v2075_v57  ;;  %v2682_v63 = vrot.slane %v2175_v34, %v2075_v57  ;;  %v2683_v33 = vrot.slane %v2177_v35, %v2075_v57 }
  0x81   : > { %v1518_v37 = vsel %vm1508_vm4, %v1299_v50, %v1517_v62  ;;  %v723_v50 = vcombine.high %v2198_v58, %v2198_v58  ;;  %v2684_v49 = vrot.slane %v2198_v58, 9  ;;  %v1339_v34 = vrot.slane %v1139_v21, %v2075_v57 }
  0x82   : > { %v1521_v53 = vsel %vm1500_vm0, %v2682_v63, %v2681_v44  ;;  %v1519_v43 = vsel %vm1510_vm5, %v1303_v31, %v1518_v37  ;;  %v1355_v31 = vrot.slane %v2206_v32, %v2075_v57  ;;  %v2685_v35 = vrot.slane %v2172_v29, %v2075_v57 }
  0x83   : > { %v1522_v41 = vsel %vm1502_vm1, %v2683_v33, %v1521_v53  ;;  %v1146_v46 = vmax.f32 %v2198_v58, %v2684_v49  ;;  %v1520_v23 = vsel %vm1512_vm6, %v1307_v26, %v1519_v43  ;;  %v1811_v38 = vrot.slane %v723_v50, 9 }
  0x84   : > { %v1523_v12 = vsel %vm1504_vm2, %v1323_v5, %v1522_v41  ;;  %1572 = vst [vmem:[%s2440_s4 + $0x8] sm:$0xff] %v1520_v23  ;;  %v1363_v58 = vrot.slane %v2223_v42, %v2075_v57  ;;  %v2686_v13 = vrot.slane %v2193_v7, %v2075_v57  ;;  %v2687_v32 = vrot.slane %v2204_v30, %v2075_v57  ;;  %v2696_v23 = vld [vmem:[#allocation2_spill] sm:$0xff] }
  0x85   : > { %v1524_v60 = vsel %vm1506_vm3, %v2685_v35, %v1523_v12  ;;  %v1367_v20 = vrot.slane %v1146_v46, %v2075_v57  ;;  %v757_v29 = vcombine.high %v2252_v28, %v2252_v28  ;;  %v2688_v40 = vrot.slane %v2252_v28, 9 }
  0x86   : > { %v1525_v45 = vsel %vm1508_vm4, %v1331_v6, %v1524_v60  ;;  %v1528_v10 = vsel %vm1500_vm0, %v2687_v32, %v2686_v13  ;;  %v1147_v5 = vmax.f32 %v723_v50, %v1811_v38  ;;  %v2689_v15 = vrot.slane %v2195_v9, %v2075_v57  ;;  %v2695_v50 = vld [vmem:[#allocation6_spill] sm:$0xff]  ;;  %v2698_v60 = vld [vmem:[#allocation8_spill] sm:$0xff] }
  0x87   : > { %v1154_v17 = vmax.f32 %v2252_v28, %v2688_v40  ;;  %v1526_v42 = vsel %vm1510_vm5, %v1335_v18, %v1525_v45  ;;  %v1387_v30 = vrot.slane %v2272_v22, %v2075_v57  ;;  %v1819_v62 = vrot.slane %v757_v29, 9  ;;  %v2701_v45 = vld [vmem:[#allocation5_spill] sm:$0xff]  ;;  %v2703_v40 = vld [vmem:[#allocation4_spill] sm:$0xff] }
  0x88   : > { %v1529_v7 = vsel %vm1502_vm1, %v2689_v15, %v1528_v10  ;;  %v1527_v26 = vsel %vm1512_vm6, %v1339_v34, %v1526_v42  ;;  %v1395_v6 = vrot.slane %v2268_v14, %v2075_v57  ;;  %v1371_v28 = vrot.slane %v1147_v5, %v2075_v57 }
  0x89   : > { %v1530_v39 = vsel %vm1504_vm2, %v1355_v31, %v1529_v7  ;;  %1573 = vst [vmem:[%s2440_s4 + $0x10] sm:$0xff] %v1527_v26  ;;  %v2690_v37 = vrot.slane %v2216_v61, %v2075_v57  ;;  %v1399_v21 = vrot.slane %v1154_v17, %v2075_v57  ;;  %v2691_v22 = vrot.slane %v2255_v11, %v2075_v57 }
  0x8a   : > { %v2692_v18 = vrot.slane %v2261_v56, %v2075_v57  ;;  %v1155_v63 = vmax.f32 %v757_v29, %v1819_v62  ;;  %v2693_v53 = vrot.slane %v2263_v48, %v2075_v57  ;;  %v791_v43 = vcombine.high %v2284_v16, %v2284_v16 }
  0x8b   : > { %v1531_v9 = vsel %vm1506_vm3, %v2690_v37, %v1530_v39  ;;  %v2694_v41 = vrot.slane %v2284_v16, 9  ;;  %v1419_v49 = vrot.slane %v2695_v50, %v2075_v57  ;;  %v2697_v34 = vrot.slane %v2696_v23, %v2075_v57 }
  0x8c   : > { %v1535_v44 = vsel %vm1500_vm0, %v2692_v18, %v2691_v22  ;;  %v1532_v14 = vsel %vm1508_vm4, %v1363_v58, %v1531_v9  ;;  %v1403_v48 = vrot.slane %v1155_v63, %v2075_v57  ;;  %v1827_v31 = vrot.slane %v791_v43, 9  ;;  %v2699_v58 = vld [vmem:[#allocation3_spill] sm:$0xff] }
  0x8d   : > { %v1536_v61 = vsel %vm1502_vm1, %v2693_v53, %v1535_v44  ;;  %v1533_v33 = vsel %vm1510_vm5, %v1367_v20, %v1532_v14  ;;  %v1162_v56 = vmax.f32 %v2284_v16, %v2694_v41  ;;  %v1427_v16 = vrot.slane %v2698_v60, %v2075_v57 }
  0x8e   : > { %v1537_v11 = vsel %vm1504_vm2, %v1387_v30, %v1536_v61  ;;  %v1534_v46 = vsel %vm1512_vm6, %v1371_v28, %v1533_v33  ;;  %v2700_v20 = vrot.slane %v2699_v58, %v2075_v57  ;;  %v2702_v13 = vrot.slane %v2701_v45, %v2075_v57 }
  0x8f   : > { %v1538_v12 = vsel %vm1506_vm3, %v2697_v34, %v1537_v11  ;;  %1574 = vst [vmem:[%s2440_s4 + $0x18] sm:$0xff] %v1534_v46  ;;  %v1431_v38 = vrot.slane %v1162_v56, %v2075_v57  ;;  %v1163_v29 = vmax.f32 %v791_v43, %v1827_v31  ;;  %v2704_v17 = vrot.slane %v2703_v40, %v2075_v57  ;;  %v2711_v56 = vld [vmem:[#allocation9_spill] sm:$0xff] }
  0x90   : > { %v1539_v35 = vsel %vm1508_vm4, %v1395_v6, %v1538_v12  ;;  %v1542_v32 = vsel %vm1500_vm0, %v2702_v13, %v2700_v20  ;;  %v825_v5 = vcombine.high %v2338_v59, %v2338_v59  ;;  %v2705_v30 = vrot.slane %v2338_v59, 9  ;;  %v2706_v6 = vld [vmem:[#allocation7_spill] sm:$0xff] }
  0x91   : > { %v1540_v10 = vsel %vm1510_vm5, %v1399_v21, %v1539_v35  ;;  %v1543_v42 = vsel %vm1502_vm1, %v2704_v17, %v1542_v32  ;;  %v1451_v39 = vrot.slane %v2362_v0, %v2075_v57  ;;  %v1435_v62 = vrot.slane %v1163_v29, %v2075_v57 }
  0x92   : > { %v1541_v15 = vsel %vm1512_vm6, %v1403_v48, %v1540_v10  ;;  %v1544_v7 = vsel %vm1504_vm2, %v1419_v49, %v1543_v42  ;;  %v1170_v26 = vmax.f32 %v2338_v59, %v2705_v30  ;;  %v2707_v28 = vrot.slane %v2706_v6, %v2075_v57 }
  0x93   : > { %1575 = vst [vmem:[%s2440_s4 + $0x20] sm:$0xff] %v1541_v15  ;;  %v1835_v9 = vrot.slane %v825_v5, 9  ;;  %v1459_v21 = vrot.slane %v2358_v2, %v2075_v57  ;;  %v2708_v0 = vrot.slane %v2341_v1, %v2075_v57  ;;  %v2709_v18 = vrot.slane %v2351_v27, %v2075_v57 }
  0x94   : > { %v1545_v37 = vsel %vm1506_vm3, %v2707_v28, %v1544_v7  ;;  %v1463_v59 = vrot.slane %v1170_v26, %v2075_v57  ;;  %v859_v14 = vcombine.high %v2377_v3, %v2377_v3  ;;  %v2710_v2 = vrot.slane %v2353_v52, %v2075_v57 }
  0x95   : > { %v1546_v22 = vsel %vm1508_vm4, %v1427_v16, %v1545_v37  ;;  %v1549_v44 = vsel %vm1500_vm0, %v2709_v18, %v2708_v0  ;;  %v1171_v53 = vmax.f32 %v825_v5, %v1835_v9  ;;  %v1178_v1 = vmax.f32 %v2377_v3, %v1842_v51 }
  0x96   : > { %v1547_v63 = vsel %vm1510_vm5, %v1431_v38, %v1546_v22  ;;  %v1550_v61 = vsel %vm1502_vm1, %v2710_v2, %v1549_v44  ;;  %v1843_v33 = vrot.slane %v859_v14, 9  ;;  %v1483_v11 = vrot.slane %v2383_v19, %v2075_v57 }
  0x97   : > { %v1548_v43 = vsel %vm1512_vm6, %v1435_v62, %v1547_v63  ;;  %v1551_v27 = vsel %vm1504_vm2, %v1451_v39, %v1550_v61  ;;  %v1487_v41 = vrot.slane %v2392_v25, %v2075_v57  ;;  %v1467_v52 = vrot.slane %v1171_v53, %v2075_v57 }
  0x98   : > { %1576 = vst [vmem:[%s2440_s4 + $0x28] sm:$0xff] %v1548_v43  ;;  %v2712_v50 = vrot.slane %v2711_v56, %v2075_v57  ;;  %v1179_v49 = vmax.f32 %v859_v14, %v1843_v33  ;;  %v1491_v46 = vrot.slane %v2407_v55, %v2075_v57  ;;  %v1556_v19 = vsel %vm1500_vm0, %v1475_v24, %v1471_v54 }
  0x99   : > { %v1495_v48 = vrot.slane %v1178_v1, %v2075_v57  ;;  %v1557_v23 = vsel %vm1502_vm1, %v1479_v8, %v1556_v19 }
  0x9a   : > { %v1552_v3 = vsel %vm1506_vm3, %v2712_v50, %v1551_v27  ;;  %v1499_v55 = vrot.slane %v1179_v49, %v2075_v57  ;;  %v1558_v36 = vsel %vm1504_vm2, %v1483_v11, %v1557_v23 }
  0x9b   : > { %v1553_v51 = vsel %vm1508_vm4, %v1459_v21, %v1552_v3  ;;  %v1559_v4 = vsel %vm1506_vm3, %v1487_v41, %v1558_v36 }
  0x9c   : > { %v1554_v25 = vsel %vm1510_vm5, %v1463_v59, %v1553_v51  ;;  %v1560_v54 = vsel %vm1508_vm4, %v1491_v46, %v1559_v4 }
  0x9d   : > { %v1555_v34 = vsel %vm1512_vm6, %v1467_v52, %v1554_v25  ;;  %v1561_v24 = vsel %vm1510_vm5, %v1495_v48, %v1560_v54 }
  0x9e   : > { %1577 = vst [vmem:[%s2440_s4 + $0x30] sm:$0xff] %v1555_v34  ;;  %v1562_v12 = vsel %vm1512_vm6, %v1499_v55, %v1561_v24 }
  0x9f   : > { %1578 = vst [vmem:[%s2440_s4 + $0x38] sm:$0xff] %v1562_v12 }
  0xa0 PF: > { %s14_s14 = sadd.s32 1, %s1975_s14   ;;  %s2713_s12 = smov %s1971_s13 }
  0xa1   : > { %p11_p5 = scmp.ge.s32.totalorder %s14_s14, 4   ;;  %s2714_s13 = smov %s2716_s15 }
  0xa3   :  { %13 = sbr.rel (!%p11_p5) target bundleno = 2 (0x2), region = 73 }

// kernel: encoder_forward_nchw.6
= control target key start
LH: loop header
LB: loop body
LE: loop exit
PB: predicated region body
PF: predicated region fallthrough
CT: control target
= control target key end

     0   :  { %s3102_s18 = smov 0   ;;  %s3104_s19 = smov 0   ;;  %s3969_s0 = inlined_call_operand.vmem [shape: bf16[2,1,18,18,64], index: 0, kind: input, shape index: {}]   ;;  %s3970_s1 = inlined_call_operand.vmem [shape: bf16[576,128], index: 1, kind: input, shape index: {}]   ;;  %s3971_s2 = inlined_call_operand.vmem [shape: f32[1,128], index: 2, kind: input, shape index: {}]   ;;  %s3972_s3 = inlined_call_operand.vmem [shape: f32[1,128], index: 3, kind: input, shape index: {}]   ;;  %s3973_s4 = inlined_call_operand.vmem [shape: bf16[2,16,16,128], index: 4, kind: output, shape index: {0}]   ;;  %s3974_s5 = inlined_call_operand.vmem [shape: f32[2,128], index: 5, kind: output, shape index: {1}]  }
   0x1   :  { %s3106_s20 = smov 0  }
   0x2 LB: > { %s31_s21 = sadd.s32 1, %s3064_s19  ;;  %p2385_p0 = scmp.ge.s32.totalorder %s3068_s20, 1  ;;  %s3068_s20 = sphi %s3106_s20, %s16_s20   ;;  %s3064_s19 = sphi %s3104_s19, %s3985_s19   ;;  %s3060_s18 = sphi %s3102_s18, %s3984_s18  }
   0x3   : > { %p33_p1 = scmp.ge.s32.totalorder %s31_s21, 2  ;;  %p244_p2 = scmp.lt.s32.totalorder %s3068_s20, 3 }
   0x5   : > { %s3987_s21 = smov (%p33_p1, %s31_s21), 0  ;;  %p245_p3 = pnand %p2385_p0, %p244_p2 }
   0x7   : > { %248 = sbr.rel (%p245_p3) target bundleno = 581 (0x245), region = 36 }
   0xe   : > { %p298_p4 = scmp.lt.s32.totalorder %s3060_s18, 1  ;;  %p336_p5 = scmp.eq.s32.totalorder %s3060_s18, 0 }
   0xf   : > { %p340_p6 = scmp.eq.s32.totalorder %s3060_s18, 1  ;;  %v3070_v0 = vmov (%p336_p5), 0.0  }
  0x10   : > { %s299_s22 = scalar_select %p298_p4, %s3060_s18, 1 }
  0x11   : > { %344 = sbr.rel (!%p336_p5) target bundleno = 24 (0x18), region = 40  ;;  %345 = vst [vmem:[#allocation2] sm:$0x1] (%p336_p5), %v3070_v0  ;;  %346 = vst [vmem:[#allocation3] sm:$0x1] (%p336_p5), %v3070_v0 }
  0x12   : > { %s2944_s23 = smul.u32 216, %s299_s22  ;;  %s2514_s24 = sshll.u32 %s299_s22, 7 }
  0x13   : > { %s3129_s27 = scalar_lea.vmem %s3973_s4, %s2514_s24 }
  0x14   : > { %s3134_s30 = scalar_lea.vmem %s3969_s0, %s2944_s23 }
  0x18 PF: > { %v3137_v1 = vld [vmem:[%s3134_s30 + $0xc] sm:$0xff]   ;;  %v3140_v2 = vld [vmem:[%s3134_s30 + $0x9c] sm:$0xff]   ;;  %s3071_s6 = smov 64   ;;  %v3148_v4 = vld [vmem:[%s3134_s30 + $0x8] ss:$0 sps:$4 sm:$0x11]  }
  0x19   : > { %808 = vrot.lane.b32.xlu0 %v3137_v1, %s3071_s6  ;;  %v3145_v3 = vld [vmem:[%s3134_s30] sm:$0xff]   ;;  %vm529_vm0 = vsmask.f32 7424  ;;  %v3151_v5 = vld [vmem:[%s3134_s30 + $0x18] sm:$0xff]   ;;  %v538_v8 = vshll.u32 %v3148_v4, 16  ;;  %v3157_v9 = vld [vmem:[%s3134_s30 + $0x90] sm:$0xff]  }
  0x1a   : > { %v531_v6 = vshrl.u32 %v3145_v3, 16  ;;  %v533_v7 = vshll.u32 %v3145_v3, 16  ;;  %v3162_v12 = vld [vmem:[%s3134_s30 + $0x98] ss:$0 sps:$4 sm:$0x11]   ;;  %v543_v13 = vshrl.u32 %v3137_v1, 16 }
  0x1b   : > { %v540_v11 = vrot.slane %v538_v8, 1  ;;  %v675_v14 = vshrl.u32 %v3157_v9, 16  ;;  %v677_v15 = vshll.u32 %v3157_v9, 16  ;;  %v3168_v16 = vld [vmem:[%s3134_s30 + $0x14] ss:$0 sps:$4 sm:$0x11]  }
  0x1c   : > { %v535_v10 = vrot.slane %v533_v7, 1  ;;  %v545_v17 = vshll.u32 %v3137_v1, 16  ;;  %v682_v19 = vshll.u32 %v3162_v12, 16  ;;  %v550_v22 = vshll.u32 %v3168_v16, 16  ;;  %v3180_v30 = vld [vmem:[%s3134_s30 + $0xa8] sm:$0xff]   ;;  %v3230_v58 = vld [vmem:[%s3134_s30 + $0xb4] sm:$0xff]  }
  0x1d   : > { %832 = vrot.lane.b32.xlu0 %v3140_v2, %s3071_s6  ;;  %v679_v20 = vrot.slane %v677_v15, 1  ;;  %v687_v23 = vshrl.u32 %v3140_v2, 16  ;;  %v689_v26 = vshll.u32 %v3140_v2, 16  ;;  %v3183_v31 = vld [vmem:[%s3134_s30 + $0xa4] ss:$0 sps:$4 sm:$0x11]  }
  0x1e   : > { %v536_v18 = vor.u32 %v535_v10, %v531_v6  ;;  %v547_v21 = vrot.slane %v545_v17, 1  ;;  %v684_v25 = vrot.slane %v682_v19, 1  ;;  %v552_v29 = vrot.slane %v550_v22, 1  ;;  %v3186_v33 = vld [vmem:[%s3134_s30 + $0x20] ss:$0 sps:$4 sm:$0x11]  }
  0x1f   : > { %v680_v27 = vor.u32 %v679_v20, %v675_v14  ;;  %v691_v32 = vrot.slane %v689_v26, 1  ;;  %v555_v34 = vshrl.u32 %v3151_v5, 16  ;;  %v557_v35 = vshll.u32 %v3151_v5, 16  ;;  %v3197_v38 = vld [vmem:[%s3134_s30 + $0x24] sm:$0xff]   ;;  %v3233_v59 = vld [vmem:[%s3134_s30 + $0x30] sm:$0xff]   ;;  %v3242_v7 = vld [vmem:[%s3134_s30 + $0x3c] sm:$0xff]  }
  0x20   : > { %v541_v24 = vsel %vm529_vm0, %v536_v18, %v540_v11  ;;  %v548_v28 = vor.u32 %v547_v21, %v543_v13  ;;  %v694_v39 = vshll.u32 %v3183_v31, 16  ;;  %v562_v41 = vshll.u32 %v3186_v33, 16  ;;  %v3207_v47 = vld [vmem:[%s3134_s30 + $0xb0] ss:$0 sps:$4 sm:$0x11]   ;;  %v3271_v22 = vld [vmem:[%s3134_s30 + $0xc0] sm:$0xff]  }
  0x21   : > { %810 = vrot.lane.b32.xlu0 %v3151_v5, %s3071_s6  ;;  %722 = vrot.lane.b32.xlu1 %v541_v24, %s3071_s6  ;;  %v3191_v36 = vsel %vm529_vm0, %v680_v27, %v684_v25  ;;  %v559_v40 = vrot.slane %v557_v35, 1  ;;  %v701_v43 = vshll.u32 %v3180_v30, 16  ;;  %v692_v44 = vor.u32 %v691_v32, %v687_v23  ;;  %v3210_v48 = vld [vmem:[%s3134_s30 + $0x2c] ss:$0 sps:$4 sm:$0x11]  }
  0x22   : > { %v3194_v37 = vsel %vm529_vm0, %v548_v28, %v552_v29  ;;  %v696_v42 = vrot.slane %v694_v39, 1  ;;  %v564_v46 = vrot.slane %v562_v41, 1  ;;  %v569_v49 = vshll.u32 %v3197_v38, 16  ;;  %v3238_v62 = vld [vmem:[%s3134_s30 + $0xbc] ss:$0 sps:$4 sm:$0x11]  }
  0x23   : > { %v560_v45 = vor.u32 %v559_v40, %v555_v34  ;;  %v567_v51 = vshrl.u32 %v3197_v38, 16  ;;  %v574_v53 = vshll.u32 %v3210_v48, 16  ;;  %v699_v55 = vshrl.u32 %v3180_v30, 16  ;;  %v3247_v8 = vld [vmem:[%s3134_s30 + $0x44] ss:$0 sps:$4 sm:$0x11]  }
  0x24   : > { %v571_v52 = vrot.slane %v569_v49, 1  ;;  %v3223_v54 = vsel %vm529_vm0, %v692_v44, %v696_v42  ;;  %v703_v56 = vrot.slane %v701_v43, 1  ;;  %v706_v57 = vshll.u32 %v3207_v47, 16  ;;  %v3261_v18 = vld [vmem:[%s3134_s30 + $0x38] ss:$0 sps:$4 sm:$0x11]  }
  0x25   : > { %724 = vrot.lane.b32.xlu0 %v3194_v37, %s3071_s6  ;;  %746 = vrot.lane.b32.xlu1 %v3191_v36, %s3071_s6  ;;  %v3218_v50 = vsel %vm529_vm0, %v560_v45, %v564_v46  ;;  %3978 = vst [vmem:[#allocation4_spill] sm:$0xff] %v3223_v54  ;;  %v576_v61 = vrot.slane %v574_v53, 1  ;;  %v713_v6 = vshll.u32 %v3230_v58, 16  ;;  %v711_v11 = vshrl.u32 %v3230_v58, 16  ;;  %v3003_v34 = vld [vmem:[%s3970_s1 + $0x40] sm:$0xff]   ;;  %v3294_v44 = vld [vmem:[%s3134_s30 + $0x54] sm:$0xff]  }
  0x26   : > { %v572_v60 = vor.u32 %v571_v52, %v567_v51  ;;  %v704_v63 = vor.u32 %v703_v56, %v699_v55  ;;  %v708_v0 = vrot.slane %v706_v57, 1  ;;  %v593_v13 = vshll.u32 %v3242_v7, 16  ;;  %v3004_v40 = vld [vmem:[%s3970_s1] sm:$0xff]   ;;  %2644 = vmatprep.subr.bf16.mxu0 %v3003_v34  ;;  %2928 = vmatprep.subr.bf16.mxu1 %v3003_v34  ;;  %v3297_v45 = vld [vmem:[%s3134_s30 + $0x5c] ss:$0 sps:$4 sm:$0x11]  }
  0x27   : > { %v715_v15 = vrot.slane %v713_v6, 1  ;;  %v718_v17 = vshll.u32 %v3238_v62, 16  ;;  %v581_v19 = vshll.u32 %v3233_v59, 16  ;;  %vm754_vm1 = vcmask 1046528   ;;  %2645 = vmatpush3.bf16.msra.mxu0 %v3004_v40  ;;  %2936 = vmatpush3.bf16.msra.mxu1 %v3004_v40  ;;  %v3005_v46 = vld [vmem:[%s3970_s1 + $0x48] sm:$0xff]  }
  0x28   : > { %v3252_v10 = vsel %vm529_vm0, %v572_v60, %v576_v61  ;;  %v3257_v14 = vsel %vm529_vm0, %v704_v63, %v708_v0  ;;  %v579_v20 = vshrl.u32 %v3233_v59, 16  ;;  %v758_v21 = vrot.slane %v3137_v1, 1  ;;  %v3305_v49 = vld [vmem:[%s3134_s30 + $0x48] sm:$0xff]   ;;  %2646 = vmatprep.subr.bf16.mxu0 %v3005_v46  ;;  %v3320_v56 = vld [vmem:[%s3134_s30 + $0x50] ss:$0 sps:$4 sm:$0x11]   ;;  %2929 = vmatprep.subr.bf16.mxu1 %v3005_v46 }
  0x29   : > { %812 = vrot.lane.b32.xlu0 %v3197_v38, %s3071_s6  ;;  %834 = vrot.lane.b32.xlu1 %v3180_v30, %s3071_s6  ;;  %3979 = vst [vmem:[#allocation5_spill] sm:$0xff] %v3257_v14  ;;  %v759_v23 = vrot.slane %v3168_v16, 1  ;;  %v591_v24 = vshrl.u32 %v3242_v7, 16  ;;  %v595_v25 = vrot.slane %v593_v13, 1  ;;  %v598_v26 = vshll.u32 %v3247_v8, 16  ;;  %v3007_v52 = vld [vmem:[%s3970_s1 + $0x8] sm:$0xff]  }
  0x2a   : > { %v716_v27 = vor.u32 %v715_v15, %v711_v11  ;;  %v720_v28 = vrot.slane %v718_v17, 1  ;;  %v583_v29 = vrot.slane %v581_v19, 1  ;;  %v586_v32 = vshll.u32 %v3261_v18, 16  ;;  %v3008_v60 = vld [vmem:[%s3970_s1 + $0x50] sm:$0xff]  }
  0x2b   : > { %v3285_v16 = vsel %vm754_vm1, %v758_v21, %v759_v23  ;;  %v596_v35 = vor.u32 %v595_v25, %v591_v24  ;;  %v600_v39 = vrot.slane %v598_v26, 1  ;;  %v617_v51 = vshll.u32 %v3294_v44, 16  ;;  %2647 = vmatpush3.bf16.msra.mxu0 %v3007_v52  ;;  %2937 = vmatpush3.bf16.msra.mxu1 %v3007_v52  ;;  %v3346_v21 = vld [vmem:[%s3134_s30 + $0x60] sm:$0xff]   ;;  %v3349_v24 = vld [vmem:[%s3134_s30 + $0x6c] sm:$0xff]  }
  0x2c   : > { %v3291_v41 = vsel %vm529_vm0, %v716_v27, %v720_v28  ;;  %v584_v42 = vor.u32 %v583_v29, %v579_v20  ;;  %v588_v43 = vrot.slane %v586_v32, 1  ;;  %v605_v57 = vshll.u32 %v3305_v49, 16  ;;  %2648 = vmatprep.subr.bf16.mxu0 %v3008_v60  ;;  %2930 = vmatprep.subr.bf16.mxu1 %v3008_v60  ;;  %v3009_v25 = vld [vmem:[%s3970_s1 + $0x10] sm:$0xff]   ;;  %v3010_v29 = vld [vmem:[%s3970_s1 + $0x58] sm:$0xff]  }
  0x2d   : > { %726 = vrot.lane.b32.xlu0 %v3218_v50, %s3071_s6  ;;  %748 = vrot.lane.b32.xlu1 %v3223_v54, %s3071_s6  ;;  %3980 = vst [vmem:[#allocation6_spill] sm:$0xff] %v3291_v41  ;;  %v3314_v53 = vsel %vm529_vm0, %v596_v35, %v600_v39  ;;  %v761_v61 = vrot.slane %v3151_v5, 1  ;;  %v764_v63 = vrot.slane %v3197_v38, 1  ;;  %v765_v0 = vrot.slane %v3210_v48, 1  ;;  %v3011_v35 = vld [vmem:[%s3970_s1 + $0x18] sm:$0xff]  }
  0x2e   : > { %v3317_v55 = vsel %vm529_vm0, %v584_v42, %v588_v43  ;;  %v615_v6 = vshrl.u32 %v3294_v44, 16  ;;  %v619_v11 = vrot.slane %v617_v51, 1  ;;  %v622_v13 = vshll.u32 %v3297_v45, 16  ;;  %v3362_v34 = vld [vmem:[%s3134_s30 + $0x74] ss:$0 sps:$4 sm:$0x11]  }
  0x2f   : > { %v762_v15 = vrot.slane %v3186_v33, 1  ;;  %v603_v17 = vshrl.u32 %v3305_v49, 16  ;;  %v607_v19 = vrot.slane %v605_v57, 1  ;;  %v610_v20 = vshll.u32 %v3320_v56, 16  ;;  %2649 = vmatpush3.bf16.msra.mxu0 %v3009_v25  ;;  %2938 = vmatpush3.bf16.msra.mxu1 %v3009_v25  ;;  %v3012_v42 = vld [vmem:[%s3970_s1 + $0x60] sm:$0xff]  }
  0x30   : > { %v3343_v48 = vsel %vm754_vm1, %v764_v63, %v765_v0  ;;  %v620_v23 = vor.u32 %v619_v11, %v615_v6  ;;  %v624_v33 = vrot.slane %v622_v13, 1  ;;  %v767_v32 = vrot.slane %v3233_v59, 1  ;;  %v3371_v40 = vld [vmem:[%s3134_s30 + $0x68] ss:$0 sps:$4 sm:$0x11]   ;;  %2650 = vmatprep.subr.bf16.mxu0 %v3010_v29  ;;  %2931 = vmatprep.subr.bf16.mxu1 %v3010_v29 }
  0x31   : > { %814 = vrot.lane.b32.xlu0 %v3233_v59, %s3071_s6  ;;  %836 = vrot.lane.b32.xlu1 %v3230_v58, %s3071_s6  ;;  %v3355_v26 = vsel %vm754_vm1, %v761_v61, %v762_v15  ;;  %v608_v27 = vor.u32 %v607_v19, %v603_v17  ;;  %v612_v28 = vrot.slane %v610_v20, 1  ;;  %v768_v39 = vrot.slane %v3261_v18, 1  ;;  %v3013_v61 = vld [vmem:[%s3970_s1 + $0x20] sm:$0xff]   ;;  %v3014_v0 = vld [vmem:[%s3970_s1 + $0x68] sm:$0xff]  }
  0x32   : > { %v3379_v43 = vsel %vm529_vm0, %v620_v23, %v624_v33  ;;  %v627_v46 = vshrl.u32 %v3346_v21, 16  ;;  %v641_v51 = vshll.u32 %v3349_v24, 16  ;;  %v629_v52 = vshll.u32 %v3346_v21, 16  ;;  %v3015_v15 = vld [vmem:[%s3970_s1 + $0x28] sm:$0xff]   ;;  %v3408_v17 = vld [vmem:[%s3134_s30 + $0x78] sm:$0xff]   ;;  %v3016_v19 = vld [vmem:[%s3970_s1 + $0x70] sm:$0xff]  }
  0x33   : > { %v3384_v18 = vsel %vm529_vm0, %v608_v27, %v612_v28  ;;  %v770_v57 = vrot.slane %v3242_v7, 1  ;;  %v771_v60 = vrot.slane %v3247_v8, 1  ;;  %2651 = vmatpush3.bf16.msra.mxu0 %v3011_v35  ;;  %2939 = vmatpush3.bf16.msra.mxu1 %v3011_v35  ;;  %v639_v63 = vshrl.u32 %v3349_v24, 16  ;;  %v3419_v25 = vld [vmem:[%s3134_s30 + $0x84] sm:$0xff]  }
  0x34   : > { %2652 = vmatprep.subr.bf16.mxu0 %v3012_v42  ;;  %v643_v8 = vrot.slane %v641_v51, 1  ;;  %v646_v6 = vshll.u32 %v3362_v34, 16  ;;  %2932 = vmatprep.subr.bf16.mxu1 %v3012_v42  ;;  %v631_v11 = vrot.slane %v629_v52, 1  ;;  %v634_v13 = vshll.u32 %v3371_v40, 16  ;;  %v3017_v52 = vld [vmem:[%s3970_s1 + $0x30] sm:$0xff]  }
  0x35   : > { %728 = vrot.lane.b32.xlu0 %v3252_v10, %s3071_s6  ;;  %750 = vrot.lane.b32.xlu1 %v3257_v14, %s3071_s6  ;;  %v3416_v20 = vsel %vm754_vm1, %v770_v57, %v771_v60  ;;  %v3422_v27 = vsel %vm754_vm1, %v767_v32, %v768_v39  ;;  %v773_v35 = vrot.slane %v3305_v49, 1  ;;  %v3426_v42 = vld [vmem:[%s3134_s30 + $0x8c] ss:$0 sps:$4 sm:$0x11]   ;;  %v774_v51 = vrot.slane %v3320_v56, 1  ;;  %v3018_v39 = vld [vmem:[%s3970_s1 + $0x78] sm:$0xff]  }
  0x36   : > { %v644_v23 = vor.u32 %v643_v8, %v639_v63  ;;  %v648_v33 = vrot.slane %v646_v6, 1  ;;  %v632_v28 = vor.u32 %v631_v11, %v627_v46  ;;  %v636_v29 = vrot.slane %v634_v13, 1  ;;  %v3435_v57 = vld [vmem:[%s3134_s30 + $0x80] ss:$0 sps:$4 sm:$0x11]   ;;  %v3019_v6 = vld [vmem:[%s3970_s1 + $0x38] sm:$0xff]  }
  0x37   : > { %2653 = vmatpush3.bf16.msra.mxu0 %v3013_v61  ;;  %2940 = vmatpush3.bf16.msra.mxu1 %v3013_v61  ;;  %v651_v32 = vshrl.u32 %v3408_v17, 16  ;;  %v653_v46 = vshll.u32 %v3408_v17, 16  ;;  %v665_v60 = vshll.u32 %v3419_v25, 16  ;;  %v776_v63 = vrot.slane %v3294_v44, 1  ;;  %v3020_v13 = vld [vmem:[%s3970_s1 + $0xc0] sm:$0xff]  }
  0x38   : > { %2654 = vmatprep.subr.bf16.mxu0 %v3014_v0  ;;  %2933 = vmatprep.subr.bf16.mxu1 %v3014_v0  ;;  %v3444_v56 = vsel %vm529_vm0, %v644_v23, %v648_v33  ;;  %v3449_v61 = vsel %vm529_vm0, %v632_v28, %v636_v29  ;;  %v777_v0 = vrot.slane %v3297_v45, 1  ;;  %v663_v8 = vshrl.u32 %v3419_v25, 16 }
  0x39   : > { %816 = vrot.lane.b32.xlu0 %v3242_v7, %s3071_s6  ;;  %838 = vrot.lane.b32.xlu1 %v3271_v22, %s3071_s6  ;;  %v670_v11 = vshll.u32 %v3426_v42, 16  ;;  %v667_v45 = vrot.slane %v665_v60, 1  ;;  %v658_v23 = vshll.u32 %v3435_v57, 16  ;;  %v792_v54 = vrot.slane %v3162_v12, 1 }
  0x3a   : > { %v3476_v33 = vsel %vm754_vm1, %v776_v63, %v777_v0  ;;  %v782_v63 = vrot.slane %v3349_v24, 1  ;;  %v783_v0 = vrot.slane %v3362_v34, 1  ;;  %v789_v34 = vrot.slane %v3426_v42, 1  ;;  %v3519_v42 = vld [vmem:[%s3134_s30 + $0xd4] ss:$0 sps:$4 sm:$0x11]  }
  0x3b   : > { %2655 = vmatpush3.bf16.msra.mxu0 %v3015_v15  ;;  %2941 = vmatpush3.bf16.msra.mxu1 %v3015_v15  ;;  %v3468_v15 = vld [vmem:[%s3970_s1 + $0x100] sm:$0xff]   ;;  %v668_v28 = vor.u32 %v667_v45, %v663_v8  ;;  %v672_v29 = vrot.slane %v670_v11, 1  ;;  %v3506_v11 = vld [vmem:[%s3134_s30 + $0xcc] sm:$0xff]   ;;  %v780_v45 = vrot.slane %v3371_v40, 1  ;;  %v785_v40 = vrot.slane %v3408_v17, 1 }
  0x3c   : > { %2656 = vmatprep.subr.bf16.mxu0 %v3016_v19  ;;  %2934 = vmatprep.subr.bf16.mxu1 %v3016_v19  ;;  %v655_v19 = vrot.slane %v653_v46, 1  ;;  %v660_v46 = vrot.slane %v658_v23, 1  ;;  %vm917_vm2 = vcmask 523264   ;;  %vm2199_vm3 = vcmask (%p340_p6), 1040384  }
  0x3d   : > { %858 = vrot.lane.b32.xlu0 %v3285_v16, %s3071_s6  ;;  %752 = vrot.lane.b32.xlu1 %v3291_v41, %s3071_s6  ;;  %v3487_v60 = vsel %vm529_vm0, %v668_v28, %v672_v29  ;;  %v899_v41 = vshrl.u32 %v3506_v11, 16 }
  0x3f   : > { %2657 = vmatpush3.bf16.msra.mxu0 %v3017_v52  ;;  %2942 = vmatpush3.bf16.msra.mxu1 %v3017_v52  ;;  %v3480_v52 = vsel %vm754_vm1, %v773_v35, %v774_v51  ;;  %v788_v35 = vrot.slane %v3419_v25, 1  ;;  %v3036_v51 = vld [vmem:[%s3134_s30 + $0xc8] ss:$0 sps:$4 sm:$0x11]  }
  0x40   : > { %2658 = vmatprep.subr.bf16.mxu0 %v3018_v39  ;;  %2935 = vmatprep.subr.bf16.mxu1 %v3018_v39  ;;  %v656_v39 = vor.u32 %v655_v19, %v651_v32  ;;  %v846_v32 = vshll.u32 %v3271_v22, 16  ;;  %v844_v19 = vshrl.u32 %v3271_v22, 16  ;;  %v851_v29 = vshll.u32 %v3036_v51, 16 }
  0x41   : > { %732 = vrot.lane.b32.xlu0 %v3314_v53, %s3071_s6  ;;  %730 = vrot.lane.b32.xlu1 %v3317_v55, %s3071_s6  ;;  %v3516_v28 = vsel %vm754_vm1, %v788_v35, %v789_v34 }
  0x42   : > { %v3492_v8 = vsel %vm529_vm0, %v656_v39, %v660_v46  ;;  %v848_v23 = vrot.slane %v846_v32, 1  ;;  %v901_v39 = vshll.u32 %v3506_v11, 16  ;;  %v795_v32 = vrot.slane %v3183_v31, 1 }
  0x43   : > { %2659 = vmatpush3.bf16.msra.mxu0 %v3019_v6  ;;  %2943 = vmatpush3.bf16.msra.mxu1 %v3019_v6  ;;  %v3502_v6 = vsel %vm754_vm1, %v782_v63, %v783_v0  ;;  %v786_v63 = vrot.slane %v3435_v57, 1  ;;  %v794_v0 = vrot.slane %v3140_v2, 1  ;;  %v853_v34 = vrot.slane %v851_v29, 1 }
  0x44   : > { %2756 = vmatprep.subr.bf16.mxu1 %v3020_v13  ;;  %2888 = vmatprep.subr.bf16.mxu0 %v3468_v15  ;;  %v779_v13 = vrot.slane %v3346_v21, 1  ;;  %v849_v35 = vor.u32 %v848_v23, %v844_v19  ;;  %v791_v31 = vrot.slane %v3157_v9, 1 }
  0x45   : > { %820 = vrot.lane.b32.xlu0 %v3294_v44, %s3071_s6  ;;  %818 = vrot.lane.b32.xlu1 %v3305_v49, %s3071_s6  ;;  %v3536_v14 = vsel %vm754_vm1, %v785_v40, %v786_v63  ;;  %v3539_v57 = vsel %vm754_vm1, %v794_v0, %v795_v32  ;;  %v797_v40 = vrot.slane %v3180_v30, 1  ;;  %v798_v63 = vrot.slane %v3207_v47, 1 }
  0x46   : > { %v3523_v46 = vsel %vm754_vm1, %v779_v13, %v780_v45  ;;  %v903_v13 = vrot.slane %v901_v39, 1  ;;  %v906_v45 = vshll.u32 %v3519_v42, 16  ;;  %v3548_v19 = vsel %vm529_vm0, %v849_v35, %v853_v34 }
  0x47   : > { %v3551_v39 = vsel %vm754_vm1, %v791_v31, %v792_v54  ;;  %v3561_v0 = vsel %vm754_vm1, %v797_v40, %v798_v63  ;;  %v801_v54 = vrot.slane %v3238_v62, 1  ;;  %v855_v47 = vrot.slane %v3271_v22, 1 }
  0x48   : > { %v904_v23 = vor.u32 %v903_v13, %v899_v41  ;;  %v908_v29 = vrot.slane %v906_v45, 1  ;;  %v800_v41 = vrot.slane %v3230_v58, 1  ;;  %v856_v32 = vrot.slane %v3036_v51, 1 }
  0x49   : > { %862 = vrot.lane.b32.xlu0 %v3343_v48, %s3071_s6  ;;  %860 = vrot.lane.b32.xlu1 %v3355_v26, %s3071_s6  ;;  %v755_v62 = vrot.slane %v3145_v3, 1  ;;  %v756_v13 = vrot.slane %v3148_v4, 1  ;;  %v3034_v4 = vld [vmem:[%s3970_s1 + $0x108] sm:$0xff]  }
  0x4a   : > { %v909_v12 = vsel %vm529_vm0, %v904_v23, %v908_v29  ;;  %v3570_v35 = vsel %vm754_vm1, %v800_v41, %v801_v54  ;;  %v3575_v34 = vsel %vm754_vm1, %v855_v47, %v856_v32  ;;  %v3022_v41 = vld [vmem:[%s3970_s1 + $0x80] sm:$0xff]   ;;  %v3041_v32 = vld [vmem:[%s3970_s1 + $0x110] sm:$0xff]  }
  0x4b   : > { %v757_v45 = vsel %vm754_vm1, %v755_v62, %v756_v13  ;;  %v3024_v62 = vld [vmem:[%s3970_s1 + $0x88] sm:$0xff]  }
  0x4d   : > { %736 = vrot.lane.b32.xlu0 %v3379_v43, %s3071_s6  ;;  %734 = vrot.lane.b32.xlu1 %v3384_v18, %s3071_s6 }
  0x51   : > { %824 = vrot.lane.b32.xlu0 %v3349_v24, %s3071_s6  ;;  %822 = vrot.lane.b32.xlu1 %v3346_v21, %s3071_s6 }
  0x55   : > { %866 = vrot.lane.b32.xlu0 %v3416_v20, %s3071_s6  ;;  %864 = vrot.lane.b32.xlu1 %v3422_v27, %s3071_s6 }
  0x59   : > { %740 = vrot.lane.b32.xlu0 %v3444_v56, %s3071_s6  ;;  %738 = vrot.lane.b32.xlu1 %v3449_v61, %s3071_s6 }
  0x5d   : > { %828 = vrot.lane.b32.xlu0 %v3419_v25, %s3071_s6  ;;  %826 = vrot.lane.b32.xlu1 %v3408_v17, %s3071_s6 }
  0x61   : > { %870 = vrot.lane.b32.xlu0 %v3476_v33, %s3071_s6  ;;  %868 = vrot.lane.b32.xlu1 %v3480_v52, %s3071_s6 }
  0x65   : > { %744 = vrot.lane.b32.xlu0 %v3487_v60, %s3071_s6  ;;  %742 = vrot.lane.b32.xlu1 %v3492_v8, %s3071_s6 }
  0x69   : > { %874 = vrot.lane.b32.xlu0 %v3502_v6, %s3071_s6  ;;  %830 = vrot.lane.b32.xlu1 %v3157_v9, %s3071_s6 }
  0x6d   : > { %878 = vrot.lane.b32.xlu0 %v3516_v28, %s3071_s6  ;;  %872 = vrot.lane.b32.xlu1 %v3523_v46, %s3071_s6 }
  0x71   : > { %882 = vrot.lane.b32.xlu0 %v3539_v57, %s3071_s6  ;;  %876 = vrot.lane.b32.xlu1 %v3536_v14, %s3071_s6 }
  0x75   : > { %910 = vrot.lane.b32.xlu0 %v3548_v19, %s3071_s6  ;;  %880 = vrot.lane.b32.xlu1 %v3551_v39, %s3071_s6 }
  0x79   : > { %912 = vrot.lane.b32.xlu0 %v909_v12, %s3071_s6  ;;  %884 = vrot.lane.b32.xlu1 %v3561_v0, %s3071_s6 }
  0x7d   : > { %886 = vrot.lane.b32.xlu1 %v3570_v35, %s3071_s6 }
  0x81   : > { %888 = vrot.lane.b32.xlu1 %v3575_v34, %s3071_s6 }
  0x8b   : > { %v809_v22 = vpop.permute.xlu0 %808 }
  0x8c   : > { %v968_v51 = vsel %vm917_vm2, %v757_v45, %v809_v22  ;;  %v3025_v22 = vld [vmem:[%s3970_s1 + $0xd0] sm:$0xff]  }
  0x8d   : > { %1454 = vmatprep.mubr.bf16.mxu0 %v968_v51 }
  0x8f   : > { %v833_v31 = vpop.permute.xlu0 %832 }
  0x90   : > { %v1016_v23 = vsel %vm917_vm2, %v3551_v39, %v833_v31  ;;  %v3026_v31 = vld [vmem:[%s3970_s1 + $0x90] sm:$0xff]  }
  0x91   : > { %1550 = vmatprep.mubr.bf16.mxu1 %v1016_v23 }
  0x93   : > { %v811_v29 = vpop.permute.xlu0 %810  ;;  %v723_v40 = vpop.permute.xlu1 %722 }
  0x94   : > { %v972_v63 = vsel %vm917_vm2, %v3285_v16, %v811_v29  ;;  %v919_v12 = vsel %vm917_vm2, %v3145_v3, %v723_v40  ;;  %v3023_v16 = vld [vmem:[%s3970_s1 + $0xc8] sm:$0xff]   ;;  %v3027_v40 = vld [vmem:[%s3970_s1 + $0xd8] sm:$0xff]  }
  0x95   : > { %1455 = vmatmul.mubr.bf16.vlgmr.msra.gmra.mrb[0].mxu0 %v919_v12  ;;  %v3028_v12 = vld [vmem:[%s3970_s1 + $0x98] sm:$0xff]  }
  0x96   : > { %2889 = vmatpush3.bf16.msra.mxu0 %v3468_v15  ;;  %1462 = vmatprep.mubr.bf16.mxu0 %v972_v63 }
  0x97   : > { %v725_v54 = vpop.permute.xlu0 %724  ;;  %v747_v47 = vpop.permute.xlu1 %746  ;;  %2890 = vmatprep.subr.bf16.mxu0 %v3034_v4 }
  0x98   : > { %v3604_v3 = vsel %vm917_vm2, %v3157_v9, %v747_v47  ;;  %v922_v15 = vsel %vm917_vm2, %v3137_v1, %v725_v54  ;;  %v3042_v1 = vld [vmem:[%s3970_s1 + $0x118] sm:$0xff]   ;;  %v3029_v47 = vld [vmem:[%s3970_s1 + $0xe0] sm:$0xff]  }
  0x99   : > { %1551 = vmatmul.mubr.bf16.vlgmr.msra.gmra.mrb[0].mxu1 %v3604_v3 }
  0x9a   : > { %2757 = vmatpush3.bf16.msra.mxu1 %v3022_v41  ;;  %2891 = vmatpush3.bf16.msra.mxu0 %v3034_v4 }
  0x9b   : > { %v813_v13 = vpop.permute.xlu0 %812  ;;  %v835_v45 = vpop.permute.xlu1 %834  ;;  %2758 = vmatprep.subr.bf16.mxu1 %v3023_v16  ;;  %2892 = vmatprep.subr.bf16.mxu0 %v3041_v32 }
  0x9c   : > { %v976_v9 = vsel %vm917_vm2, %v3355_v26, %v813_v13  ;;  %v1020_v51 = vsel %vm917_vm2, %v3539_v57, %v835_v45 }
  0x9d   : > { %1463 = vmatmul.mubr.bf16.gmra.mrb[4].mxu0 %v922_v15  ;;  %1558 = vmatprep.mubr.bf16.mxu1 %v1020_v51 }
  0x9e   : > { %2759 = vmatpush3.bf16.msra.mxu1 %v3024_v62  ;;  %1470 = vmatprep.mubr.bf16.mxu0 %v976_v9  ;;  %v3031_v62 = vld [vmem:[%s3970_s1 + $0xe8] sm:$0xff]  }
  0x9f   : > { %v727_v23 = vpop.permute.xlu0 %726  ;;  %v749_v29 = vpop.permute.xlu1 %748  ;;  %2760 = vmatprep.subr.bf16.mxu1 %v3025_v22  ;;  %2893 = vmatpush3.bf16.msra.mxu0 %v3041_v32  ;;  %v3032_v22 = vld [vmem:[%s3970_s1 + $0xa8] sm:$0xff]  }
  0xa0   : > { %v3630_v63 = vsel %vm917_vm2, %v3140_v2, %v749_v29  ;;  %2894 = vmatprep.subr.bf16.mxu0 %v3042_v1  ;;  %v925_v4 = vsel %vm917_vm2, %v3151_v5, %v727_v23  ;;  %v3030_v5 = vld [vmem:[%s3970_s1 + $0xa0] sm:$0xff]  }
  0xa1   : > { %1559 = vmatmul.mubr.bf16.gmra.mrb[4].mxu1 %v3630_v63 }
  0xa2   : > { %2761 = vmatpush3.bf16.msra.mxu1 %v3026_v31 }
  0xa3   : > { %v815_v41 = vpop.permute.xlu0 %814  ;;  %v837_v54 = vpop.permute.xlu1 %836  ;;  %2762 = vmatprep.subr.bf16.mxu1 %v3027_v40  ;;  %2895 = vmatpush3.bf16.msra.mxu0 %v3042_v1  ;;  %v3033_v1 = vld [vmem:[%s3970_s1 + $0xf0] sm:$0xff]   ;;  %v3037_v40 = vld [vmem:[%s3970_s1 + $0xf8] sm:$0xff]  }
  0xa4   : > { %v980_v2 = vsel %vm917_vm2, %v3343_v48, %v815_v41  ;;  %v1024_v16 = vsel %vm917_vm2, %v3561_v0, %v837_v54  ;;  %v3038_v41 = vld [vmem:[%s3970_s1 + $0xb8] sm:$0xff]  }
  0xa5   : > { %1471 = vmatmul.mubr.bf16.gmra.mrb[8].mxu0 %v925_v4  ;;  %1566 = vmatprep.mubr.bf16.mxu1 %v1024_v16 }
  0xa6   : > { %2763 = vmatpush3.bf16.msra.mxu1 %v3028_v12  ;;  %1478 = vmatprep.mubr.bf16.mxu0 %v980_v2 }
  0xa7   : > { %v729_v32 = vpop.permute.xlu0 %728  ;;  %v751_v15 = vpop.permute.xlu1 %750  ;;  %2764 = vmatprep.subr.bf16.mxu1 %v3029_v47 }
  0xa8   : > { %v3653_v13 = vsel %vm917_vm2, %v3180_v30, %v751_v15  ;;  %v928_v45 = vsel %vm917_vm2, %v3197_v38, %v729_v32  ;;  %v3035_v38 = vld [vmem:[%s3970_s1 + $0xb0] sm:$0xff]  }
  0xa9   : > { %1567 = vmatmul.mubr.bf16.gmra.mrb[8].mxu1 %v3653_v13 }
  0xaa   : > { %2765 = vmatpush3.bf16.msra.mxu1 %v3030_v5 }
  0xab   : > { %v817_v9 = vpop.permute.xlu0 %816  ;;  %v839_v51 = vpop.permute.xlu1 %838  ;;  %2766 = vmatprep.subr.bf16.mxu1 %v3031_v62 }
  0xac   : > { %v984_v30 = vsel %vm917_vm2, %v3422_v27, %v817_v9  ;;  %v1028_v31 = vsel %vm917_vm2, %v3570_v35, %v839_v51 }
  0xad   : > { %1479 = vmatmul.mubr.bf16.gmra.mrb[12].mxu0 %v928_v45  ;;  %1574 = vmatprep.mubr.bf16.mxu1 %v1028_v31 }
  0xae   : > { %2767 = vmatpush3.bf16.msra.mxu1 %v3032_v22  ;;  %1486 = vmatprep.mubr.bf16.mxu0 %v984_v30 }
  0xaf   : > { %v859_v23 = vpop.permute.xlu0 %858  ;;  %v753_v29 = vpop.permute.xlu1 %752  ;;  %2768 = vmatprep.subr.bf16.mxu1 %v3033_v1 }
  0xb0   : > { %v3676_v12 = vsel %vm917_vm2, %v3230_v58, %v753_v29  ;;  %v1032_v58 = vsel %vm917_vm2, %v3194_v37, %v859_v23 }
  0xb1   : > { %1575 = vmatmul.mubr.bf16.gmra.mrb[12].mxu1 %v3676_v12 }
  0xb2   : > { %2769 = vmatpush3.bf16.msra.mxu1 %v3035_v38  ;;  %1615 = vmatprep.mubr.bf16.mxu1 %v925_v4 }
  0xb3   : > { %v731_v54 = vpop.permute.xlu1 %730  ;;  %2770 = vmatprep.subr.bf16.mxu1 %v3037_v40  ;;  %v733_v2 = vpop.permute.xlu0 %732 }
  0xb4   : > { %v931_v47 = vsel %vm917_vm2, %v3233_v59, %v731_v54  ;;  %v934_v32 = vsel %vm917_vm2, %v3242_v7, %v733_v2 }
  0xb5   : > { %1487 = vmatmul.mubr.bf16.gmra.mrb[16].mxu0 %v931_v47 }
  0xb6   : > { %2771 = vmatpush3.bf16.msra.mxu1 %v3038_v41 }
  0xb7   : > { %v819_v16 = vpop.permute.xlu1 %818  ;;  %v821_v4 = vpop.permute.xlu0 %820 }
  0xb8   : > { %v988_v5 = vsel %vm917_vm2, %v3416_v20, %v819_v16  ;;  %v992_v59 = vsel %vm917_vm2, %v3480_v52, %v821_v4 }
  0xb9   : > { %1616 = vmatmul.mubr.bf16.vlgmr.msra.gmra.mrb[16].mxu1 %v1032_v58  ;;  %1494 = vmatprep.mubr.bf16.mxu0 %v988_v5 }
  0xba   : > { %1623 = vmatprep.mubr.bf16.mxu1 %v928_v45 }
  0xbb   : > { %v861_v15 = vpop.permute.xlu1 %860  ;;  %v863_v37 = vpop.permute.xlu0 %862 }
  0xbc   : > { %v1036_v62 = vsel %vm917_vm2, %v3218_v50, %v861_v15  ;;  %v1040_v1 = vsel %vm917_vm2, %v3252_v10, %v863_v37 }
  0xbd   : > { %1495 = vmatmul.mubr.bf16.gmra.mrb[20].mxu0 %v934_v32 }
  0xbe   : > { %1502 = vmatprep.mubr.bf16.mxu0 %v992_v59 }
  0xbf   : > { %v735_v22 = vpop.permute.xlu1 %734  ;;  %v737_v51 = vpop.permute.xlu0 %736 }
  0xc0   : > { %v937_v9 = vsel %vm917_vm2, %v3305_v49, %v735_v22  ;;  %v940_v31 = vsel %vm917_vm2, %v3294_v44, %v737_v51 }
  0xc1   : > { %1624 = vmatmul.mubr.bf16.gmra.mrb[20].mxu1 %v1036_v62 }
  0xc2   : > { %1631 = vmatprep.mubr.bf16.mxu1 %v931_v47 }
  0xc3   : > { %v823_v45 = vpop.permute.xlu1 %822  ;;  %v825_v50 = vpop.permute.xlu0 %824 }
  0xc4   : > { %v996_v7 = vsel %vm917_vm2, %v3476_v33, %v823_v45  ;;  %v1000_v49 = vsel %vm917_vm2, %v3523_v46, %v825_v50 }
  0xc5   : > { %1503 = vmatmul.mubr.bf16.gmra.mrb[24].mxu0 %v937_v9 }
  0xc6   : > { %1510 = vmatprep.mubr.bf16.mxu0 %v996_v7 }
  0xc7   : > { %v865_v30 = vpop.permute.xlu1 %864  ;;  %v867_v29 = vpop.permute.xlu0 %866 }
  0xc8   : > { %v1044_v23 = vsel %vm917_vm2, %v3317_v55, %v865_v30  ;;  %v1048_v54 = vsel %vm917_vm2, %v3314_v53, %v867_v29 }
  0xc9   : > { %1632 = vmatmul.mubr.bf16.gmra.mrb[24].mxu1 %v1040_v1 }
  0xca   : > { %1639 = vmatprep.mubr.bf16.mxu1 %v934_v32 }
  0xcb   : > { %v739_v38 = vpop.permute.xlu1 %738  ;;  %v741_v44 = vpop.permute.xlu0 %740 }
  0xcc   : > { %v943_v10 = vsel %vm917_vm2, %v3346_v21, %v739_v38  ;;  %v946_v55 = vsel %vm917_vm2, %v3349_v24, %v741_v44 }
  0xcd   : > { %1511 = vmatmul.mubr.bf16.gmra.mrb[28].mxu0 %v940_v31 }
  0xce   : > { %1518 = vmatprep.mubr.bf16.mxu0 %v1000_v49 }
  0xcf   : > { %v827_v40 = vpop.permute.xlu1 %826  ;;  %v829_v2 = vpop.permute.xlu0 %828 }
  0xd0   : > { %v1004_v41 = vsel %vm917_vm2, %v3502_v6, %v827_v40  ;;  %v1008_v58 = vsel %vm917_vm2, %v3536_v14, %v829_v2 }
  0xd1   : > { %1640 = vmatmul.mubr.bf16.gmra.mrb[28].mxu1 %v1044_v23 }
  0xd2   : > { %1647 = vmatprep.mubr.bf16.mxu1 %v937_v9 }
  0xd3   : > { %v869_v47 = vpop.permute.xlu1 %868  ;;  %v871_v53 = vpop.permute.xlu0 %870 }
  0xd4   : > { %v1052_v16 = vsel %vm917_vm2, %v3384_v18, %v869_v47  ;;  %v1056_v24 = vsel %vm917_vm2, %v3379_v43, %v871_v53 }
  0xd5   : > { %1519 = vmatmul.mubr.bf16.gmra.mrb[32].mxu0 %v943_v10 }
  0xd6   : > { %1526 = vmatprep.mubr.bf16.mxu0 %v1004_v41 }
  0xd7   : > { %v743_v21 = vpop.permute.xlu1 %742  ;;  %v745_v15 = vpop.permute.xlu0 %744 }
  0xd8   : > { %v949_v4 = vsel %vm917_vm2, %v3408_v17, %v743_v21  ;;  %v952_v18 = vsel %vm917_vm2, %v3419_v25, %v745_v15 }
  0xd9   : > { %1648 = vmatmul.mubr.bf16.gmra.mrb[32].mxu1 %v1048_v54 }
  0xda   : > { %1655 = vmatprep.mubr.bf16.mxu1 %v940_v31 }
  0xdb   : > { %v831_v5 = vpop.permute.xlu1 %830  ;;  %v875_v17 = vpop.permute.xlu0 %874 }
  0xdc   : > { %v1012_v32 = vsel %vm917_vm2, %v3516_v28, %v831_v5  ;;  %v1064_v43 = vsel %vm917_vm2, %v3444_v56, %v875_v17 }
  0xdd   : > { %1527 = vmatmul.mubr.bf16.gmra.mrb[36].mxu0 %v946_v55 }
  0xde   : > { %1534 = vmatprep.mubr.bf16.mxu0 %v1008_v58 }
  0xdf   : > { %v873_v59 = vpop.permute.xlu1 %872 }
  0xe0   : > { %v1060_v62 = vsel %vm917_vm2, %v3449_v61, %v873_v59 }
  0xe1   : > { %1656 = vmatmul.mubr.bf16.gmra.mrb[36].mxu1 %v1052_v16 }
  0xe2   : > { %1663 = vmatprep.mubr.bf16.mxu1 %v943_v10 }
  0xe3   : > { %v877_v25 = vpop.permute.xlu1 %876 }
  0xe5   : > { %1535 = vmatmul.mubr.bf16.gmra.mrb[40].mxu0 %v949_v4 }
  0xe6   : > { %1542 = vmatprep.mubr.bf16.mxu0 %v1012_v32 }
  0xe9   : > { %1664 = vmatmul.mubr.bf16.gmra.mrb[40].mxu1 %v1056_v24 }
  0xea   : > { %1671 = vmatprep.mubr.bf16.mxu1 %v946_v55 }
  0xed   : > { %1543 = vmatmul.mubr.bf16.gmra.mrb[44].mxu0 %v952_v18 }
  0xee   : > { %2896 = vmatprep.mubr.msk.bf16.mxu0 %vm917_vm2, %v3355_v26  ;;  %v1068_v26 = vsel %vm917_vm2, %v3492_v8, %v877_v25 }
  0xf1   : > { %1672 = vmatmul.mubr.bf16.gmra.mrb[44].mxu1 %v1060_v62 }
  0xf2   : > { %1679 = vmatprep.mubr.bf16.mxu1 %v949_v4 }
  0xf5   : > { %2897 = vmatmul.mubr.msk.bf16.vlgmr.msra.gmra.mrb[48].mxu0 %vm917_vm2, %v3343_v48  ;;  %v879_v48 = vpop.permute.xlu0 %878 }
  0xf6   : > { %2900 = vmatprep.mubr.msk.bf16.mxu0 %vm917_vm2, %v3422_v27  ;;  %v1072_v27 = vsel %vm917_vm2, %v3487_v60, %v879_v48 }
  0xf9   : > { %1680 = vmatmul.mubr.bf16.gmra.mrb[48].mxu1 %v1064_v43  ;;  %v883_v61 = vpop.permute.xlu0 %882 }
  0xfa   : > { %1687 = vmatprep.mubr.bf16.mxu1 %v952_v18 }
  0xfd   : > { %2901 = vmatmul.mubr.msk.bf16.gmra.mrb[52].mxu0 %vm917_vm2, %v3416_v20  ;;  %v881_v20 = vpop.permute.xlu1 %880  ;;  %v911_v60 = vpop.permute.xlu0 %910 }
  0xfe   : > { %2904 = vmatprep.mubr.msk.bf16.mxu0 %vm917_vm2, %v3480_v52  ;;  %v1076_v56 = vsel %vm917_vm2, %v3191_v36, %v881_v20 }
 0x101   : > { %1688 = vmatmul.mubr.bf16.gmra.mrb[52].mxu1 %v1068_v26  ;;  %v885_v36 = vpop.permute.xlu1 %884 }
 0x102   : > { %1695 = vmatprep.mubr.bf16.mxu1 %v3604_v3  ;;  %v3983_v3 = vld [vmem:[#allocation6_spill] sm:$0xff] }
 0x105   : > { %2905 = vmatmul.mubr.msk.bf16.gmra.mrb[56].mxu0 %vm917_vm2, %v3476_v33  ;;  %v3981_v33 = vld [vmem:[#allocation4_spill] sm:$0xff] }
 0x106   : > { %2908 = vmatprep.mubr.msk.bf16.mxu0 %vm917_vm2, %v3523_v46  ;;  %v1080_v52 = vsel %vm917_vm2, %v3981_v33, %v883_v61  ;;  %v887_v46 = vpop.permute.xlu1 %886 }
 0x109   : > { %1696 = vmatmul.mubr.bf16.gmra.mrb[56].mxu1 %v1072_v27 }
 0x10a   : > { %1703 = vmatprep.mubr.bf16.mxu1 %v3630_v63  ;;  %v1088_v63 = vsel %vm917_vm2, %v3983_v3, %v887_v46  ;;  %v889_v37 = vpop.permute.xlu1 %888 }
 0x10d   : > { %2909 = vmatmul.mubr.msk.bf16.gmra.mrb[60].mxu0 %vm917_vm2, %v3502_v6  ;;  %v3043_v6 = vld [vmem:[%s3134_s30 + $0xc0] sm:$0xff]  }
 0x10e   : > { %2912 = vmatprep.mubr.msk.bf16.mxu0 %vm917_vm2, %v3536_v14  ;;  %v3982_v14 = vld [vmem:[#allocation5_spill] sm:$0xff] }
 0x10f   : > { %v1084_v8 = vsel %vm917_vm2, %v3982_v14, %v885_v36 }
 0x111   : > { %1704 = vmatmul.mubr.bf16.gmra.mrb[60].mxu1 %v1076_v56 }
 0x112   : > { %1711 = vmatprep.mubr.bf16.mxu1 %v3653_v13 }
 0x115   : > { %2913 = vmatmul.mubr.msk.bf16.gmra.mrb[64].mxu0 %vm917_vm2, %v3516_v28  ;;  %v1095_v28 = vsel %vm917_vm2, %v3043_v6, %v911_v60 }
 0x116   : > { %2916 = vmatprep.mubr.msk.bf16.mxu0 %vm917_vm2, %v3551_v39  ;;  %v913_v39 = vpop.permute.xlu0 %912 }
 0x117   : > { %v1098_v13 = vsel %vm917_vm2, %v3506_v11, %v913_v39 }
 0x119   : > { %1712 = vmatmul.mubr.bf16.gmra.mrb[64].mxu1 %v1080_v52 }
 0x11a   : > { %1719 = vmatprep.mubr.bf16.mxu1 %v3676_v12 }
 0x11d   : > { %2917 = vmatmul.mubr.msk.bf16.gmra.mrb[68].mxu0 %vm917_vm2, %v3539_v57  ;;  %v914_v57 = vrot.slane %v3506_v11, 1 }
 0x11e   : > { %2920 = vmatprep.mubr.msk.bf16.mxu0 %vm917_vm2, %v3561_v0  ;;  %v915_v0 = vrot.slane %v3519_v42, 1 }
 0x120   : > { %v916_v12 = vsel %vm754_vm1, %v914_v57, %v915_v0 }
 0x121   : > { %1720 = vmatmul.mubr.bf16.gmra.mrb[68].mxu1 %v1084_v8 }
 0x122   : > { %1727 = vmatprep.mubr.bf16.mxu1 %v1095_v28 }
 0x125   : > { %2921 = vmatmul.mubr.msk.bf16.gmra.mrb[72].mxu0 %vm917_vm2, %v3570_v35  ;;  %v1092_v35 = vsel %vm917_vm2, %v3548_v19, %v889_v37 }
 0x126   : > { %2924 = vmatprep.mubr.msk.bf16.mxu0 %vm917_vm2, %v3575_v34 }
 0x129   : > { %1728 = vmatmul.mubr.bf16.gmra.mrb[72].mxu1 %v1088_v63 }
 0x12a   : > { %1735 = vmatprep.mubr.bf16.mxu1 %v1098_v13 }
 0x12d   : > { %2925 = vmatmul.mubr.msk.bf16.gmra.mrb[76].mxu0 %vm917_vm2, %v916_v12 }
 0x131   : > { %1736 = vmatmul.mubr.bf16.gmra.mrb[76].mxu1 %v1092_v35 }
 0x168   : > { %v2660_v22 = vpop.f32.mrb[0].mxu0 }
 0x169   : > { %v2661_v34 = vpop.f32.mrb[1].mxu0 }
 0x16a   : > { %v2662_v9 = vadd.f32 %v2661_v34, %v2660_v22  ;;  %v2663_v45 = vpop.f32.mrb[2].mxu0 }
 0x16b   : > { %v2664_v51 = vpop.f32.mrb[3].mxu0 }
 0x16c   : > { %v2665_v42 = vadd.f32 %v2664_v51, %v2663_v45  ;;  %v2732_v7 = vpop.f32.mrb[0].mxu1 }
 0x16d   : > { %v2733_v1 = vpop.f32.mrb[1].mxu1 }
 0x16e   : > { %v3786_v11 = vadd.f32 %v2733_v1, %v2732_v7  ;;  %v2735_v30 = vpop.f32.mrb[2].mxu1 }
 0x16f   : > { %v2736_v50 = vpop.f32.mrb[3].mxu1 }
 0x170   : > { %v3788_v31 = vadd.f32 %v2736_v50, %v2735_v30  ;;  %v2666_v49 = vpop.f32.mrb[4].mxu0 }
 0x171   : > { %v2667_v38 = vpop.f32.mrb[5].mxu0 }
 0x172   : > { %v2668_v23 = vadd.f32 %v2667_v38, %v2666_v49  ;;  %v2669_v29 = vpop.f32.mrb[6].mxu0 }
 0x173   : > { %v2670_v19 = vpop.f32.mrb[7].mxu0 }
 0x174   : > { %v2671_v40 = vadd.f32 %v2670_v19, %v2669_v29  ;;  %v2738_v10 = vpop.f32.mrb[4].mxu1 }
 0x175   : > { %v2739_v41 = vpop.f32.mrb[5].mxu1 }
 0x176   : > { %v3790_v44 = vadd.f32 %v2739_v41, %v2738_v10  ;;  %v2741_v54 = vpop.f32.mrb[6].mxu1 }
 0x177   : > { %v2742_v47 = vpop.f32.mrb[7].mxu1 }
 0x178   : > { %v3792_v2 = vadd.f32 %v2742_v47, %v2741_v54  ;;  %v2672_v55 = vpop.f32.mrb[8].mxu0 }
 0x179   : > { %v2673_v58 = vpop.f32.mrb[9].mxu0 }
 0x17a   : > { %v3794_v21 = vadd.f32 %v2673_v58, %v2672_v55  ;;  %v2675_v16 = vpop.f32.mrb[10].mxu0 }
 0x17b   : > { %v2676_v5 = vpop.f32.mrb[11].mxu0 }
 0x17c   : > { %v3796_v53 = vadd.f32 %v2676_v5, %v2675_v16  ;;  %v2744_v4 = vpop.f32.mrb[8].mxu1 }
 0x17d   : > { %v2745_v32 = vpop.f32.mrb[9].mxu1 }
 0x17e   : > { %v3798_v24 = vadd.f32 %v2745_v32, %v2744_v4  ;;  %v2747_v15 = vpop.f32.mrb[10].mxu1 }
 0x17f   : > { %v2748_v18 = vpop.f32.mrb[11].mxu1 }
 0x180   : > { %v3800_v59 = vadd.f32 %v2748_v18, %v2747_v15  ;;  %v2678_v62 = vpop.f32.mrb[12].mxu0 }
 0x181   : > { %v2679_v17 = vpop.f32.mrb[13].mxu0 }
 0x182   : > { %v3802_v43 = vadd.f32 %v2679_v17, %v2678_v62  ;;  %v2681_v25 = vpop.f32.mrb[14].mxu0 }
 0x183   : > { %v2682_v26 = vpop.f32.mrb[15].mxu0 }
 0x184   : > { %v3804_v48 = vadd.f32 %v2682_v26, %v2681_v25  ;;  %v2750_v27 = vpop.f32.mrb[12].mxu1 }
 0x185   : > { %v2751_v20 = vpop.f32.mrb[13].mxu1 }
 0x186   : > { %v3806_v56 = vadd.f32 %v2751_v20, %v2750_v27  ;;  %v2753_v61 = vpop.f32.mrb[14].mxu1 }
 0x187   : > { %v2754_v33 = vpop.f32.mrb[15].mxu1 }
 0x188   : > { %v3808_v52 = vadd.f32 %v2754_v33, %v2753_v61  ;;  %v2684_v36 = vpop.f32.mrb[16].mxu0 }
 0x189   : > { %v2685_v60 = vpop.f32.mrb[17].mxu0 }
 0x18a   : > { %v3810_v14 = vadd.f32 %v2685_v60, %v2684_v36  ;;  %v2687_v8 = vpop.f32.mrb[18].mxu0 }
 0x18b   : > { %v2688_v6 = vpop.f32.mrb[19].mxu0 }
 0x18c   : > { %v3812_v28 = vadd.f32 %v2688_v6, %v2687_v8  ;;  %v2772_v46 = vpop.f32.mrb[16].mxu1 }
 0x18d   : > { %v2773_v39 = vpop.f32.mrb[17].mxu1 }
 0x18e   : > { %v2774_v3 = vadd.f32 %v2773_v39, %v2772_v46  ;;  %v2775_v63 = vpop.f32.mrb[18].mxu1 }
 0x18f   : > { %v2776_v57 = vpop.f32.mrb[19].mxu1 }
 0x190   : > { %v2777_v0 = vadd.f32 %v2776_v57, %v2775_v63  ;;  %v2690_v13 = vpop.f32.mrb[20].mxu0  ;;  %v3814_v12 = vadd.f32 %v2774_v3, %v2662_v9 }
 0x191   : > { %v2691_v37 = vpop.f32.mrb[21].mxu0 }
 0x192   : > { %v3816_v35 = vadd.f32 %v2691_v37, %v2690_v13  ;;  %v2693_v22 = vpop.f32.mrb[22].mxu0  ;;  %v3818_v34 = vadd.f32 %v2777_v0, %v2665_v42 }
 0x193   : > { %v2694_v45 = vpop.f32.mrb[23].mxu0 }
 0x194   : > { %v3820_v51 = vadd.f32 %v2694_v45, %v2693_v22  ;;  %v2778_v7 = vpop.f32.mrb[20].mxu1 }
 0x195   : > { %v2779_v1 = vpop.f32.mrb[21].mxu1 }
 0x196   : > { %v2780_v30 = vadd.f32 %v2779_v1, %v2778_v7  ;;  %v2781_v50 = vpop.f32.mrb[22].mxu1 }
 0x197   : > { %v2782_v49 = vpop.f32.mrb[23].mxu1 }
 0x198   : > { %v2783_v38 = vadd.f32 %v2782_v49, %v2781_v50  ;;  %v2696_v29 = vpop.f32.mrb[24].mxu0  ;;  %v3822_v19 = vadd.f32 %v2780_v30, %v2668_v23 }
 0x199   : > { %v2697_v9 = vpop.f32.mrb[25].mxu0 }
 0x19a   : > { %v3824_v10 = vadd.f32 %v2697_v9, %v2696_v29  ;;  %v2699_v41 = vpop.f32.mrb[26].mxu0  ;;  %v3826_v54 = vadd.f32 %v2783_v38, %v2671_v40 }
 0x19b   : > { %v2700_v42 = vpop.f32.mrb[27].mxu0 }
 0x19c   : > { %v3828_v47 = vadd.f32 %v2700_v42, %v2699_v41  ;;  %v2784_v55 = vpop.f32.mrb[24].mxu1 }
 0x19d   : > { %v2785_v58 = vpop.f32.mrb[25].mxu1 }
 0x19e   : > { %v2786_v16 = vadd.f32 %v2785_v58, %v2784_v55  ;;  %v2787_v5 = vpop.f32.mrb[26].mxu1 }
 0x19f   : > { %v2788_v4 = vpop.f32.mrb[27].mxu1 }
 0x1a0   : > { %v2789_v32 = vadd.f32 %v2788_v4, %v2787_v5  ;;  %v2702_v15 = vpop.f32.mrb[28].mxu0  ;;  %v3831_v18 = vadd.f32 %v2786_v16, %v3794_v21 }
 0x1a1   : > { %v2703_v23 = vpop.f32.mrb[29].mxu0 }
 0x1a2   : > { %v3833_v62 = vadd.f32 %v2703_v23, %v2702_v15  ;;  %v2705_v17 = vpop.f32.mrb[30].mxu0  ;;  %v3836_v40 = vadd.f32 %v2789_v32, %v3796_v53 }
 0x1a3   : > { %v2706_v25 = vpop.f32.mrb[31].mxu0 }
 0x1a4   : > { %v3838_v26 = vadd.f32 %v2706_v25, %v2705_v17  ;;  %v2790_v27 = vpop.f32.mrb[28].mxu1 }
 0x1a5   : > { %v2791_v20 = vpop.f32.mrb[29].mxu1 }
 0x1a6   : > { %v2792_v61 = vadd.f32 %v2791_v20, %v2790_v27  ;;  %v2793_v33 = vpop.f32.mrb[30].mxu1 }
 0x1a7   : > { %v2794_v36 = vpop.f32.mrb[31].mxu1 }
 0x1a8   : > { %v2795_v60 = vadd.f32 %v2794_v36, %v2793_v33  ;;  %v2708_v8 = vpop.f32.mrb[32].mxu0  ;;  %v3841_v21 = vadd.f32 %v2792_v61, %v3802_v43 }
 0x1a9   : > { %v2709_v6 = vpop.f32.mrb[33].mxu0 }
 0x1aa   : > { %v3843_v46 = vadd.f32 %v2709_v6, %v2708_v8  ;;  %v2711_v39 = vpop.f32.mrb[34].mxu0  ;;  %v3846_v53 = vadd.f32 %v2795_v60, %v3804_v48 }
 0x1ab   : > { %v2712_v3 = vpop.f32.mrb[35].mxu0 }
 0x1ac   : > { %v3848_v63 = vadd.f32 %v2712_v3, %v2711_v39  ;;  %v2796_v57 = vpop.f32.mrb[32].mxu1 }
 0x1ad   : > { %v2797_v0 = vpop.f32.mrb[33].mxu1 }
 0x1ae   : > { %v2798_v13 = vadd.f32 %v2797_v0, %v2796_v57  ;;  %v2799_v37 = vpop.f32.mrb[34].mxu1 }
 0x1af   : > { %v2800_v22 = vpop.f32.mrb[35].mxu1 }
 0x1b0   : > { %v2801_v45 = vadd.f32 %v2800_v22, %v2799_v37  ;;  %v2714_v7 = vpop.f32.mrb[36].mxu0  ;;  %v3851_v43 = vadd.f32 %v2798_v13, %v3810_v14 }
 0x1b1   : > { %v2715_v1 = vpop.f32.mrb[37].mxu0 }
 0x1b2   : > { %v3853_v30 = vadd.f32 %v2715_v1, %v2714_v7  ;;  %v2717_v50 = vpop.f32.mrb[38].mxu0  ;;  %v3856_v48 = vadd.f32 %v2801_v45, %v3812_v28 }
 0x1b3   : > { %v2718_v49 = vpop.f32.mrb[39].mxu0 }
 0x1b4   : > { %v3858_v38 = vadd.f32 %v2718_v49, %v2717_v50  ;;  %v2802_v29 = vpop.f32.mrb[36].mxu1 }
 0x1b5   : > { %v2803_v9 = vpop.f32.mrb[37].mxu1 }
 0x1b6   : > { %v2804_v41 = vadd.f32 %v2803_v9, %v2802_v29  ;;  %v2805_v42 = vpop.f32.mrb[38].mxu1 }
 0x1b7   : > { %v2806_v55 = vpop.f32.mrb[39].mxu1 }
 0x1b8   : > { %v2807_v58 = vadd.f32 %v2806_v55, %v2805_v42  ;;  %v2720_v16 = vpop.f32.mrb[40].mxu0  ;;  %v3861_v14 = vadd.f32 %v2804_v41, %v3816_v35 }
 0x1b9   : > { %v2721_v5 = vpop.f32.mrb[41].mxu0 }
 0x1ba   : > { %v3863_v4 = vadd.f32 %v2721_v5, %v2720_v16  ;;  %v2723_v32 = vpop.f32.mrb[42].mxu0  ;;  %v3866_v28 = vadd.f32 %v2807_v58, %v3820_v51 }
 0x1bb   : > { %v2724_v15 = vpop.f32.mrb[43].mxu0 }
 0x1bc   : > { %v3868_v23 = vadd.f32 %v2724_v15, %v2723_v32  ;;  %v2808_v17 = vpop.f32.mrb[40].mxu1 }
 0x1bd   : > { %v2809_v25 = vpop.f32.mrb[41].mxu1 }
 0x1be   : > { %v2810_v27 = vadd.f32 %v2809_v25, %v2808_v17  ;;  %v2811_v20 = vpop.f32.mrb[42].mxu1 }
 0x1bf   : > { %v2812_v61 = vpop.f32.mrb[43].mxu1 }
 0x1c0   : > { %v2813_v33 = vadd.f32 %v2812_v61, %v2811_v20  ;;  %v2726_v36 = vpop.f32.mrb[44].mxu0  ;;  %v3871_v35 = vadd.f32 %v2810_v27, %v3824_v10 }
 0x1c1   : > { %v2727_v60 = vpop.f32.mrb[45].mxu0 }
 0x1c2   : > { %v3873_v8 = vadd.f32 %v2727_v60, %v2726_v36  ;;  %v2729_v6 = vpop.f32.mrb[46].mxu0  ;;  %v3876_v51 = vadd.f32 %v2813_v33, %v3828_v47 }
 0x1c3   : > { %v2730_v39 = vpop.f32.mrb[47].mxu0 }
 0x1c4   : > { %v3878_v3 = vadd.f32 %v2730_v39, %v2729_v6  ;;  %v2814_v57 = vpop.f32.mrb[44].mxu1 }
 0x1c5   : > { %v2815_v0 = vpop.f32.mrb[45].mxu1 }
 0x1c6   : > { %v2816_v13 = vadd.f32 %v2815_v0, %v2814_v57  ;;  %v2817_v37 = vpop.f32.mrb[46].mxu1 }
 0x1c7   : > { %v2818_v22 = vpop.f32.mrb[47].mxu1 }
 0x1c8   : > { %v2819_v45 = vadd.f32 %v2818_v22, %v2817_v37  ;;  %v2898_v7 = vpop.f32.mrb[48].mxu0  ;;  %v3881_v10 = vadd.f32 %v2816_v13, %v3833_v62 }
 0x1c9   : > { %v1787_v1 = vadd.f32 %v2898_v7, %v3822_v19  ;;  %v1778_v50 = vpop.f32.mrb[49].mxu0 }
 0x1ca   : > { %v1779_v49 = vadd.f32 %v1778_v50, %v3814_v12  ;;  %v2899_v47 = vpop.f32.mrb[50].mxu0  ;;  %v3886_v29 = vadd.f32 %v2819_v45, %v3838_v26 }
 0x1cb   : > { %v1790_v9 = vadd.f32 %v2899_v47, %v3826_v54  ;;  %v1781_v41 = vpop.f32.mrb[51].mxu0  ;;  %v1948_v17 = vmul.f32 %v1787_v1, %v1787_v1 }
 0x1cc   : > { %v1782_v42 = vadd.f32 %v1781_v41, %v3818_v34  ;;  %v2820_v55 = vpop.f32.mrb[48].mxu1  ;;  %v1946_v58 = vmul.f32 %v1779_v49, %v1779_v49 }
 0x1cd   : > { %v2557_v62 = vpack.c.bf16 %v1790_v9, %v1787_v1  ;;  %v2821_v16 = vpop.f32.mrb[49].mxu1  ;;  %v1949_v34 = vmul.f32 %v1790_v9, %v1790_v9 }
 0x1ce   : > { %v1906_v5 = vadd.f32 %v1782_v42, %v1779_v49  ;;  %v1947_v19 = vmul.f32 %v1782_v42, %v1782_v42  ;;  %v2552_v32 = vpack.c.bf16 %v1782_v42, %v1779_v49  ;;  %v2822_v15 = vadd.f32 %v2821_v16, %v2820_v55  ;;  %v2823_v12 = vpop.f32.mrb[50].mxu1 }
 0x1cf   : > { %2629 = vst [vmem:[%s3129_s27 + $0x8] sm:$0xff] %v2557_v62   ;;  %v2824_v25 = vpop.f32.mrb[51].mxu1 }
 0x1d0   : > { %v1907_v26 = vadd.f32 %v1906_v5, %v1787_v1  ;;  %v1978_v27 = vadd.f32 %v1947_v19, %v1946_v58  ;;  %2553 = vst [vmem:[%s3129_s27] sm:$0xff] %v2552_v32   ;;  %v2825_v54 = vadd.f32 %v2824_v25, %v2823_v12  ;;  %v2902_v20 = vpop.f32.mrb[52].mxu0  ;;  %v3893_v61 = vadd.f32 %v2822_v15, %v3843_v46 }
 0x1d1   : > { %v1803_v33 = vadd.f32 %v2902_v20, %v3841_v21  ;;  %v1794_v36 = vpop.f32.mrb[53].mxu0 }
 0x1d2   : > { %v1979_v60 = vadd.f32 %v1978_v27, %v1948_v17  ;;  %v1795_v6 = vadd.f32 %v1794_v36, %v3831_v18  ;;  %v1908_v39 = vadd.f32 %v1907_v26, %v1790_v9  ;;  %v2903_v57 = vpop.f32.mrb[54].mxu0  ;;  %v3898_v0 = vadd.f32 %v2825_v54, %v3848_v63 }
 0x1d3   : > { %v1806_v13 = vadd.f32 %v2903_v57, %v3846_v53  ;;  %v1797_v37 = vpop.f32.mrb[55].mxu0  ;;  %v1952_v55 = vmul.f32 %v1803_v33, %v1803_v33 }
 0x1d4   : > { %v1909_v22 = vadd.f32 %v1908_v39, %v1795_v6  ;;  %v1950_v45 = vmul.f32 %v1795_v6, %v1795_v6  ;;  %v1980_v46 = vadd.f32 %v1979_v60, %v1949_v34  ;;  %v1798_v7 = vadd.f32 %v1797_v37, %v3836_v40  ;;  %v2826_v21 = vpop.f32.mrb[52].mxu1 }
 0x1d5   : > { %v2567_v1 = vpack.c.bf16 %v1806_v13, %v1803_v33  ;;  %v2827_v50 = vpop.f32.mrb[53].mxu1  ;;  %v1953_v5 = vmul.f32 %v1806_v13, %v1806_v13 }
 0x1d6   : > { %v1981_v49 = vadd.f32 %v1980_v46, %v1950_v45  ;;  %v1910_v18 = vadd.f32 %v1909_v22, %v1798_v7  ;;  %v1951_v47 = vmul.f32 %v1798_v7, %v1798_v7  ;;  %v2562_v9 = vpack.c.bf16 %v1798_v7, %v1795_v6  ;;  %v2829_v41 = vpop.f32.mrb[54].mxu1 }
 0x1d7   : > { %2631 = vst [vmem:[%s3129_s27 + $0x18] sm:$0xff] %v2567_v1   ;;  %v2828_v63 = vadd.f32 %v2827_v50, %v2826_v21  ;;  %v2830_v42 = vpop.f32.mrb[55].mxu1 }
 0x1d8   : > { %v1911_v53 = vadd.f32 %v1910_v18, %v1803_v33  ;;  %v1982_v58 = vadd.f32 %v1981_v49, %v1951_v47  ;;  %2630 = vst [vmem:[%s3129_s27 + $0x10] sm:$0xff] %v2562_v9   ;;  %v2831_v62 = vadd.f32 %v2830_v42, %v2829_v41  ;;  %v2906_v16 = vpop.f32.mrb[56].mxu0 }
 0x1d9   : > { %v1819_v40 = vadd.f32 %v2906_v16, %v3861_v14  ;;  %v1810_v19 = vpop.f32.mrb[57].mxu0  ;;  %v1690_v32 = vadd.f32 %v2828_v63, %v3853_v30 }
 0x1da   : > { %v1983_v15 = vadd.f32 %v1982_v58, %v1952_v55  ;;  %v1811_v12 = vadd.f32 %v1810_v19, %v3851_v43  ;;  %v1912_v17 = vadd.f32 %v1911_v53, %v1806_v13  ;;  %v2907_v25 = vpop.f32.mrb[58].mxu0  ;;  %v3908_v26 = vadd.f32 %v2831_v62, %v3858_v38 }
 0x1db   : > { %v1822_v27 = vadd.f32 %v2907_v25, %v3866_v28  ;;  %v1813_v54 = vpop.f32.mrb[59].mxu0  ;;  %v1956_v22 = vmul.f32 %v1819_v40, %v1819_v40 }
 0x1dc   : > { %v1913_v20 = vadd.f32 %v1912_v17, %v1811_v12  ;;  %v1954_v34 = vmul.f32 %v1811_v12, %v1811_v12  ;;  %v1984_v33 = vadd.f32 %v1983_v15, %v1953_v5  ;;  %v1814_v14 = vadd.f32 %v1813_v54, %v3856_v48  ;;  %v2832_v36 = vpop.f32.mrb[56].mxu1 }
 0x1dd   : > { %v2577_v30 = vpack.c.bf16 %v1822_v27, %v1819_v40  ;;  %v2833_v60 = vpop.f32.mrb[57].mxu1  ;;  %v1957_v21 = vmul.f32 %v1822_v27, %v1822_v27 }
 0x1de   : > { %v1985_v6 = vadd.f32 %v1984_v33, %v1954_v34  ;;  %v1914_v43 = vadd.f32 %v1913_v20, %v1814_v14  ;;  %v1955_v39 = vmul.f32 %v1814_v14, %v1814_v14  ;;  %v2572_v57 = vpack.c.bf16 %v1814_v14, %v1811_v12  ;;  %v2835_v13 = vpop.f32.mrb[58].mxu1 }
 0x1df   : > { %2633 = vst [vmem:[%s3129_s27 + $0x28] sm:$0xff] %v2577_v30   ;;  %v2834_v38 = vadd.f32 %v2833_v60, %v2832_v36  ;;  %v2836_v37 = vpop.f32.mrb[59].mxu1 }
 0x1e0   : > { %v1915_v28 = vadd.f32 %v1914_v43, %v1819_v40  ;;  %v1986_v45 = vadd.f32 %v1985_v6, %v1955_v39  ;;  %2632 = vst [vmem:[%s3129_s27 + $0x20] sm:$0xff] %v2572_v57   ;;  %v2837_v46 = vadd.f32 %v2836_v37, %v2835_v13  ;;  %v2910_v7 = vpop.f32.mrb[60].mxu0 }
 0x1e1   : > { %v1835_v48 = vadd.f32 %v2910_v7, %v3881_v10  ;;  %v1826_v1 = vpop.f32.mrb[61].mxu0  ;;  %v3916_v50 = vadd.f32 %v2834_v38, %v3863_v4 }
 0x1e2   : > { %v1987_v49 = vadd.f32 %v1986_v45, %v1956_v22  ;;  %v1827_v18 = vadd.f32 %v1826_v1, %v3871_v35  ;;  %v1916_v47 = vadd.f32 %v1915_v28, %v1822_v27  ;;  %v2911_v9 = vpop.f32.mrb[62].mxu0  ;;  %v3920_v41 = vadd.f32 %v2837_v46, %v3868_v23 }
 0x1e3   : > { %v1838_v63 = vadd.f32 %v2911_v9, %v3886_v29  ;;  %v1829_v42 = vpop.f32.mrb[63].mxu0  ;;  %v1960_v17 = vmul.f32 %v1835_v48, %v1835_v48 }
 0x1e4   : > { %v1917_v55 = vadd.f32 %v1916_v47, %v1827_v18  ;;  %v1958_v53 = vmul.f32 %v1827_v18, %v1827_v18  ;;  %v1988_v58 = vadd.f32 %v1987_v49, %v1957_v21  ;;  %v1830_v10 = vadd.f32 %v1829_v42, %v3876_v51  ;;  %v2838_v4 = vpop.f32.mrb[60].mxu1 }
 0x1e5   : > { %v2587_v62 = vpack.c.bf16 %v1838_v63, %v1835_v48  ;;  %v2839_v16 = vpop.f32.mrb[61].mxu1  ;;  %v1961_v20 = vmul.f32 %v1838_v63, %v1838_v63 }
 0x1e6   : > { %v1989_v5 = vadd.f32 %v1988_v58, %v1958_v53  ;;  %v1918_v35 = vadd.f32 %v1917_v55, %v1830_v10  ;;  %v1959_v40 = vmul.f32 %v1830_v10, %v1830_v10  ;;  %v2582_v19 = vpack.c.bf16 %v1830_v10, %v1827_v18  ;;  %v2841_v15 = vpop.f32.mrb[62].mxu1 }
 0x1e7   : > { %2635 = vst [vmem:[%s3129_s27 + $0x38] sm:$0xff] %v2587_v62   ;;  %v2840_v23 = vadd.f32 %v2839_v16, %v2838_v4  ;;  %v2842_v12 = vpop.f32.mrb[63].mxu1 }
 0x1e8   : > { %v1919_v29 = vadd.f32 %v1918_v35, %v1835_v48  ;;  %v1990_v25 = vadd.f32 %v1989_v5, %v1959_v40  ;;  %2634 = vst [vmem:[%s3129_s27 + $0x30] sm:$0xff] %v2582_v19   ;;  %v2843_v27 = vadd.f32 %v2842_v12, %v2841_v15  ;;  %v2914_v54 = vpop.f32.mrb[64].mxu0 }
 0x1e9   : > { %v1851_v34 = vadd.f32 %v2914_v54, %v1690_v32  ;;  %v1842_v51 = vpop.f32.mrb[65].mxu0  ;;  %v1706_v33 = vadd.f32 %v2840_v23, %v3873_v8 }
 0x1ea   : > { %v1991_v14 = vadd.f32 %v1990_v25, %v1960_v17  ;;  %v1843_v36 = vadd.f32 %v1842_v51, %v3893_v61  ;;  %v1920_v30 = vadd.f32 %v1919_v29, %v1838_v63  ;;  %v2915_v60 = vpop.f32.mrb[66].mxu0  ;;  %v1709_v6 = vadd.f32 %v2843_v27, %v3878_v3 }
 0x1eb   : > { %v1854_v43 = vadd.f32 %v2915_v60, %v3908_v26  ;;  %v1845_v39 = vpop.f32.mrb[67].mxu0  ;;  %v1964_v48 = vmul.f32 %v1851_v34, %v1851_v34 }
 0x1ec   : > { %v1921_v57 = vadd.f32 %v1920_v30, %v1843_v36  ;;  %v1962_v13 = vmul.f32 %v1843_v36, %v1843_v36  ;;  %v1992_v38 = vadd.f32 %v1991_v14, %v1961_v20  ;;  %v1846_v32 = vadd.f32 %v1845_v39, %v3898_v0  ;;  %v2844_v37 = vpop.f32.mrb[64].mxu1 }
 0x1ed   : > { %v2597_v22 = vpack.c.bf16 %v1854_v43, %v1851_v34  ;;  %v2845_v8 = vpop.f32.mrb[65].mxu1  ;;  %v1965_v47 = vmul.f32 %v1854_v43, %v1854_v43 }
 0x1ee   : > { %v1993_v28 = vadd.f32 %v1992_v38, %v1962_v13  ;;  %v1922_v45 = vadd.f32 %v1921_v57, %v1846_v32  ;;  %v1963_v61 = vmul.f32 %v1846_v32, %v1846_v32  ;;  %v2592_v46 = vpack.c.bf16 %v1846_v32, %v1843_v36  ;;  %v2847_v7 = vpop.f32.mrb[66].mxu1 }
 0x1ef   : > { %2637 = vst [vmem:[%s3129_s27 + $0x48] sm:$0xff] %v2597_v22   ;;  %v2846_v21 = vadd.f32 %v2845_v8, %v2844_v37  ;;  %v2848_v3 = vpop.f32.mrb[67].mxu1 }
 0x1f0   : > { %v1923_v26 = vadd.f32 %v1922_v45, %v1851_v34  ;;  %v1994_v1 = vadd.f32 %v1993_v28, %v1963_v61  ;;  %2636 = vst [vmem:[%s3129_s27 + $0x40] sm:$0xff] %v2592_v46   ;;  %v2849_v49 = vadd.f32 %v2848_v3, %v2847_v7  ;;  %v2918_v18 = vpop.f32.mrb[68].mxu0 }
 0x1f1   : > { %v1867_v9 = vadd.f32 %v2918_v18, %v1706_v33  ;;  %v1858_v0 = vpop.f32.mrb[69].mxu0  ;;  %v1714_v63 = vadd.f32 %v2846_v21, %v3786_v11 }
 0x1f2   : > { %v1995_v42 = vadd.f32 %v1994_v1, %v1964_v48  ;;  %v1859_v55 = vadd.f32 %v1858_v0, %v3916_v50  ;;  %v1924_v53 = vadd.f32 %v1923_v26, %v1854_v43  ;;  %v2919_v58 = vpop.f32.mrb[70].mxu0  ;;  %v1717_v10 = vadd.f32 %v2849_v49, %v3788_v31 }
 0x1f3   : > { %v1870_v4 = vadd.f32 %v2919_v58, %v1709_v6  ;;  %v1861_v62 = vpop.f32.mrb[71].mxu0  ;;  %v1968_v31 = vmul.f32 %v1867_v9, %v1867_v9 }
 0x1f4   : > { %v1925_v16 = vadd.f32 %v1924_v53, %v1859_v55  ;;  %v1966_v5 = vmul.f32 %v1859_v55, %v1859_v55  ;;  %v1996_v35 = vadd.f32 %v1995_v42, %v1965_v47  ;;  %v1862_v40 = vadd.f32 %v1861_v62, %v3920_v41  ;;  %v2850_v19 = vpop.f32.mrb[68].mxu1 }
 0x1f5   : > { %v2607_v15 = vpack.c.bf16 %v1870_v4, %v1867_v9  ;;  %v2851_v23 = vpop.f32.mrb[69].mxu1  ;;  %v1969_v33 = vmul.f32 %v1870_v4, %v1870_v4 }
 0x1f6   : > { %v1997_v11 = vadd.f32 %v1996_v35, %v1966_v5  ;;  %v1926_v12 = vadd.f32 %v1925_v16, %v1862_v40  ;;  %v1967_v17 = vmul.f32 %v1862_v40, %v1862_v40  ;;  %v2602_v50 = vpack.c.bf16 %v1862_v40, %v1859_v55  ;;  %v2853_v29 = vpop.f32.mrb[70].mxu1 }
 0x1f7   : > { %2639 = vst [vmem:[%s3129_s27 + $0x58] sm:$0xff] %v2607_v15   ;;  %v2852_v25 = vadd.f32 %v2851_v23, %v2850_v19  ;;  %v2854_v27 = vpop.f32.mrb[71].mxu1 }
 0x1f8   : > { %v1927_v54 = vadd.f32 %v1926_v12, %v1867_v9  ;;  %v1998_v20 = vadd.f32 %v1997_v11, %v1967_v17  ;;  %2638 = vst [vmem:[%s3129_s27 + $0x50] sm:$0xff] %v2602_v50   ;;  %v2855_v34 = vadd.f32 %v2854_v27, %v2853_v29  ;;  %v2922_v51 = vpop.f32.mrb[72].mxu0 }
 0x1f9   : > { %v1722_v41 = vadd.f32 %v2852_v25, %v3790_v44  ;;  %v1874_v14 = vpop.f32.mrb[73].mxu0 }
 0x1fa   : > { %v1999_v36 = vadd.f32 %v1998_v20, %v1968_v31  ;;  %v1875_v30 = vadd.f32 %v1874_v14, %v1714_v63  ;;  %v1928_v60 = vadd.f32 %v1927_v54, %v1870_v4  ;;  %v1725_v6 = vadd.f32 %v2855_v34, %v3792_v2  ;;  %v2923_v43 = vpop.f32.mrb[74].mxu0 }
 0x1fb   : > { %v1883_v39 = vadd.f32 %v2922_v51, %v1722_v41  ;;  %v1877_v57 = vpop.f32.mrb[75].mxu0 }
 0x1fc   : > { %v1929_v13 = vadd.f32 %v1928_v60, %v1875_v30  ;;  %v1970_v38 = vmul.f32 %v1875_v30, %v1875_v30  ;;  %v2000_v32 = vadd.f32 %v1999_v36, %v1969_v33  ;;  %v1886_v37 = vadd.f32 %v2923_v43, %v1725_v6  ;;  %v2856_v22 = vpop.f32.mrb[72].mxu1 }
 0x1fd   : > { %v1878_v8 = vadd.f32 %v1877_v57, %v1717_v10  ;;  %v2857_v28 = vpop.f32.mrb[73].mxu1  ;;  %v1972_v49 = vmul.f32 %v1883_v39, %v1883_v39 }
 0x1fe   : > { %v2001_v45 = vadd.f32 %v2000_v32, %v1970_v38  ;;  %v2617_v44 = vpack.c.bf16 %v1886_v37, %v1883_v39  ;;  %v2858_v61 = vadd.f32 %v2857_v28, %v2856_v22  ;;  %v2859_v46 = vpop.f32.mrb[74].mxu1  ;;  %v1973_v55 = vmul.f32 %v1886_v37, %v1886_v37  ;;  %v1905_v38 = vld [vmem:[#allocation2] sm:$0x1] }
 0x1ff   : > { %v1930_v7 = vadd.f32 %v1929_v13, %v1878_v8  ;;  %v1971_v21 = vmul.f32 %v1878_v8, %v1878_v8  ;;  %v2612_v3 = vpack.c.bf16 %v1878_v8, %v1875_v30  ;;  %v2860_v2 = vpop.f32.mrb[75].mxu1 }
 0x200   : > { %2641 = vst [vmem:[%s3129_s27 + $0x68] sm:$0xff] %v2617_v44   ;;  %v2861_v48 = vadd.f32 %v2860_v2, %v2859_v46  ;;  %v2926_v26 = vpop.f32.mrb[76].mxu0  ;;  %v1730_v1 = vadd.f32 %v2858_v61, %v3798_v24 }
 0x201   : > { %v1931_v18 = vadd.f32 %v1930_v7, %v1883_v39  ;;  %v2002_v47 = vadd.f32 %v2001_v45, %v1971_v21  ;;  %2640 = vst [vmem:[%s3129_s27 + $0x60] sm:$0xff] %v2612_v3   ;;  %v1890_v9 = vpop.f32.mrb[77].mxu0 }
 0x202   : > { %v1891_v0 = vadd.f32 %v1890_v9, %v1730_v1  ;;  %v2927_v63 = vpop.f32.mrb[78].mxu0  ;;  %v1733_v42 = vadd.f32 %v2861_v48, %v3800_v59  ;;  %v2194_v48 = vlaneseq (%p340_p6) }
 0x203   : > { %v2003_v53 = vadd.f32 %v2002_v47, %v1972_v49  ;;  %v1932_v58 = vadd.f32 %v1931_v18, %v1886_v37  ;;  %v1893_v10 = vpop.f32.mrb[79].mxu0  ;;  %v1945_v37 = vld [vmem:[#allocation3] sm:$0x1]  ;;  %v2190_v47 = vld [vmem:[%s3972_s3] sm:$0x1] (%p340_p6) }
 0x204   : > { %v1974_v4 = vmul.f32 %v1891_v0, %v1891_v0  ;;  %v1894_v62 = vadd.f32 %v1893_v10, %v1733_v42  ;;  %v2862_v16 = vpop.f32.mrb[76].mxu1  ;;  %v2195_v1 = vshrl.u32 (%p340_p6), %v2194_v48, 7 }
 0x205   : > { %v1933_v5 = vadd.f32 %v1932_v58, %v1891_v0  ;;  %v2004_v35 = vadd.f32 %v2003_v53, %v1973_v55  ;;  %v2863_v24 = vpop.f32.mrb[77].mxu1 }
 0x206   : > { %v1975_v40 = vmul.f32 %v1894_v62, %v1894_v62  ;;  %v2622_v19 = vpack.c.bf16 %v1894_v62, %v1891_v0  ;;  %v2864_v15 = vadd.f32 %v2863_v24, %v2862_v16  ;;  %v2865_v23 = vpop.f32.mrb[78].mxu1  ;;  %v2196_v0 = vsub.s32 (%p340_p6), 0, %v2195_v1 }
 0x207   : > { %v2005_v11 = vadd.f32 %v2004_v35, %v1974_v4  ;;  %v1934_v12 = vadd.f32 %v1933_v5, %v1894_v62  ;;  %v2866_v17 = vpop.f32.mrb[79].mxu1 }
 0x208   : > { %2642 = vst [vmem:[%s3129_s27 + $0x70] sm:$0xff] %v2622_v19   ;;  %v1738_v59 = vadd.f32 %v2864_v15, %v3806_v56  ;;  %v2867_v50 = vadd.f32 %v2866_v17, %v2865_v23 }
 0x209   : > { %v2006_v29 = vadd.f32 %v2005_v11, %v1975_v40 }
 0x20a   : > { %v1899_v25 = vadd.f32 %v2926_v26, %v1738_v59  ;;  %v1741_v27 = vadd.f32 %v2867_v50, %v3808_v52  ;;  %v2186_v26 = vld [vmem:[%s3971_s2] sm:$0x1] (%p340_p6) }
 0x20c   : > { %v1935_v31 = vadd.f32 %v1934_v12, %v1899_v25  ;;  %v1976_v54 = vmul.f32 %v1899_v25, %v1899_v25  ;;  %v1902_v20 = vadd.f32 %v2927_v63, %v1741_v27 }
 0x20e   : > { %v2007_v34 = vadd.f32 %v2006_v29, %v1976_v54  ;;  %v1936_v51 = vadd.f32 %v1935_v31, %v1902_v20  ;;  %v1977_v33 = vmul.f32 %v1902_v20, %v1902_v20  ;;  %v2627_v41 = vpack.c.bf16 %v1902_v20, %v1899_v25 }
 0x210   : > { %v1937_v14 = vrot.slane %v1936_v51, 4  ;;  %v2008_v36 = vadd.f32 %v2007_v34, %v1977_v33  ;;  %2643 = vst [vmem:[%s3129_s27 + $0x78] sm:$0xff] %v2627_v41  }
 0x212   : > { %v1938_v30 = vadd.f32 %v1937_v14, %v1936_v51  ;;  %v2009_v60 = vrot.slane %v2008_v36, 4 }
 0x214   : > { %v1939_v6 = vrot.slane %v1938_v30, 2  ;;  %v2010_v43 = vadd.f32 %v2009_v60, %v2008_v36 }
 0x216   : > { %v1940_v56 = vadd.f32 %v1939_v6, %v1938_v30  ;;  %v2011_v39 = vrot.slane %v2010_v43, 2 }
 0x218   : > { %v1941_v57 = vrot.slane %v1940_v56, 1  ;;  %v2012_v13 = vadd.f32 %v2011_v39, %v2010_v43 }
 0x21a   : > { %v1942_v52 = vadd.f32 %v1941_v57, %v1940_v56  ;;  %v2013_v32 = vrot.slane %v2012_v13, 1  ;;  %2178 = sbr.rel (!%p340_p6) target bundleno = 581 (0x245), region = 44 }
 0x21c   : > { %v1943_v22 = vadd.f32 %v1942_v52, %v1905_v38  ;;  %v2014_v8 = vadd.f32 %v2013_v32, %v2012_v13 }
 0x21e   : > { %1944 = vst [vmem:[#allocation2] sm:$0x1] %v1943_v22  ;;  %v2015_v28 = vadd.f32 %v2014_v8, %v1945_v37 }
 0x220   : > { %2016 = vst [vmem:[#allocation3] sm:$0x1] %v2015_v28 }
 0x225   : > { %v2179_v45 = vld [vmem:[#allocation2] sm:$0x1] }
 0x226   : > { %v2180_v61 = vmul.f32 0.001953125, %v2179_v45 }
 0x227   : > { %v2181_v44 = vld [vmem:[#allocation3] sm:$0x1] }
 0x228   : > { %v2182_v46 = vmul.f32 0.001953125, %v2181_v44  ;;  %v2183_v7 = vmul.f32 %v2180_v61, %v2180_v61 }
 0x22a   : > { %v2184_v21 = vsub.f32 %v2182_v46, %v2183_v7 }
 0x22c   : > { %v2185_v3 = vmax.f32 %v2184_v21, 0.0 }
 0x22e   : > { %v2187_v2 = vadd.f32 1e-05, %v2185_v3 }
 0x230   : > { %3044 = vrsqrt.f32 %v2187_v2 }
 0x23a   : > { %v3045_v49 = vpop.eup %3044 }
 0x23b   : > { %v2189_v18 = vmul.f32 %v3045_v49, %v2186_v26 }
 0x23d   : > { %v2191_v9 = vmul.f32 %v2189_v18, %v2180_v61 }
 0x23f   : > { %v2192_v63 = vsub.f32 %v2190_v47, %v2191_v9 }
 0x241   : > { %v2197_v42 = vrot.slane %v2192_v63, %v2196_v0 }
 0x243   : > { %v2200_v55 = vsel %vm2199_vm3, %v2189_v18, %v2197_v42 }
 0x244   : > { %2201 = vst [vmem:[%s3974_s5] sm:$0x3] %v2200_v55 }
 0x245 PF: > { %s16_s20 = sadd.s32 1, %s3068_s20   ;;  %s3984_s18 = smov %s3064_s19 }
 0x246   : > { %p13_p7 = scmp.ge.s32.totalorder %s16_s20, 4   ;;  %s3985_s19 = smov %s3987_s21 }
 0x248   :  { %15 = sbr.rel (!%p13_p7) target bundleno = 2 (0x2), region = 95 }

</bundles_post_ra>
